<compile_context>
chip_gen: v7x
topology: tpu7x:2x2x1
jax: 0.10.0
libtpu: 0.0.40
codegen_flags: <defaults>
</compile_context>

<pallas_src>
import functools

import jax
import jax.numpy as jnp
from jax.experimental import pallas as pl
from jax.experimental.pallas import tpu as pltpu


GB = 16  # graphs processed per grid step in the per-graph kernel


# ------------------------------------------------------------------ utilities

def _round_up(a, b):
    return ((a + b - 1) // b) * b


def _cayley_graph_size(n):
    # |SL(2, Z_n)| = n^3 * prod_{p | n, p prime} (1 - 1/p^2)
    size = n ** 3
    m, p, primes = n, 2, set()
    while p * p <= m:
        if m % p == 0:
            primes.add(p)
            while m % p == 0:
                m //= p
        p += 1
    if m > 1:
        primes.add(m)
    for q in primes:
        size = size * (q * q - 1) // (q * q)
    return size


def calculate_optimal_virtual_nodes(num_base_nodes):
    # TODO(synk): approximation of models.cayley_utils.calculate_optimal_virtual_nodes
    n = 2
    while _cayley_graph_size(n) < num_base_nodes:
        n += 1
    return max(_cayley_graph_size(n) - num_base_nodes, 1), n


def _make_vne(key, num_graphs, v_pad, hidden):
    # one vmapped RNG launch; per-graph values independent of padding (fold_in per graph)
    def one(g):
        e = jax.random.normal(jax.random.fold_in(key, g), (v_pad, hidden), jnp.float32)
        return e / jnp.linalg.norm(e, axis=1, keepdims=True)
    return jax.vmap(one)(jnp.arange(num_graphs))


# ------------------------------------------------------------------ kernels

def _gcn_affinity_kernel(ahat_ref, x_ref, w_comb_ref, b_comb_ref, b_g_ref,
                         w_a1_ref, b_a1_ref, w_a2_ref, b_a2_ref,
                         x1_ref, aff_ref, acc_ref):
    k = pl.program_id(1)

    @pl.when(k == 0)
    def _():
        acc_ref[...] = jnp.zeros_like(acc_ref)

    # folded node_embedding + conv1 weight: z_k = x_k @ (W_emb @ W_g) + b_emb @ W_g,
    # recomputed per (i, k) step (Din is tiny) instead of round-tripping z through HBM.
    z = (jnp.dot(x_ref[...], w_comb_ref[...], preferred_element_type=jnp.float32)
         + b_comb_ref[...]).astype(jnp.bfloat16)

    # tiled aggregation:  acc[i] += A_hat[i, k] @ z[k]
    acc_ref[...] += jnp.dot(ahat_ref[...], z, preferred_element_type=jnp.float32)

    @pl.when(k == pl.num_programs(1) - 1)
    def _():
        x1 = jnp.maximum(acc_ref[...] + b_g_ref[...], 0.0)
        x1_ref[...] = x1.astype(x1_ref.dtype)
        # affinity MLP: Linear -> ReLU -> Linear
        a = jnp.maximum(
            jnp.dot(x1.astype(jnp.bfloat16), w_a1_ref[...],
                    preferred_element_type=jnp.float32) + b_a1_ref[...], 0.0)
        aff = jnp.dot(a.astype(jnp.bfloat16), w_a2_ref[...],
                      preferred_element_type=jnp.float32) + b_a2_ref[...]
        # TODO(synk): emit aff pre-transposed from this epilogue to drop the wrapper transpose.
        aff_ref[...] = aff.astype(aff_ref.dtype)


def _graph_kernel(x1_ref, afft_ref, batch_ref, gid_ref, vne_ref, vmask_ref,
                  w_v1_ref, b_v1_ref, w_v2_ref, b_v2_ref,
                  w_m1_ref, b_m1_ref, w_m2_ref, b_m2_ref,
                  out_ref, acc_ref, *, gb, v_pad):
    c = pl.program_id(1)

    @pl.when(c == 0)
    def _():
        acc_ref[...] = jnp.zeros_like(acc_ref)

    V, H = vne_ref.shape                   # V = gb * v_pad

    # attention scores, virtual-node-major with nodes on the lane axis; afft is already (H, nc)
    # so both big dots below are standard (no in-kernel relayout of a grid-invariant operand).
    att = jnp.dot(vne_ref[...], afft_ref[...],
                  preferred_element_type=jnp.float32) * (float(H) ** -0.5)   # (V, nc)

    # masks built in-kernel from tiny int32 streams (no dense f32 mask DMA):
    #   gid_ref: per virtual-node row its absolute graph id (-2 for padded virtual rows)
    #   batch_ref: per node its graph id (-1 for padded nodes)
    nmask = gid_ref[...] == batch_ref[...]                                   # (V,1)==(1,nc)->(V,nc)

    # edge_weights = (1/V_g) * (1 + sigmoid(att)); the uniform 1/V_g factor cancels under the
    # per-node normalization below, so it is omitted.
    ewt = jnp.where(nmask, 1.0 + jax.nn.sigmoid(att), 0.0)                   # (V, nc)
    col = jnp.sum(ewt, axis=0, keepdims=True)                                # per-node sum over v
    col = jnp.where(col == 0.0, 1.0, col)
    ewt = ewt / col                                                          # exact (per review)

    # virtual_nodes[v] += sum_{i in chunk} ew[i, v] * x1[i]
    acc_ref[...] += jnp.dot(ewt.astype(jnp.bfloat16), x1_ref[...],
                            preferred_element_type=jnp.float32)              # (V, H)

    @pl.when(c == pl.num_programs(1) - 1)
    def _():
        # virtual_node_mlp: Linear -> ReLU -> Linear
        vn = acc_ref[...]
        hv = jnp.maximum(
            jnp.dot(vn.astype(jnp.bfloat16), w_v1_ref[...],
                    preferred_element_type=jnp.float32) + b_v1_ref[...], 0.0)
        vn = jnp.dot(hv.astype(jnp.bfloat16), w_v2_ref[...],
                     preferred_element_type=jnp.float32) + b_v2_ref[...]

        # masked mean over real virtual nodes
        vm3 = vmask_ref[...]                                                 # (gb, v_pad, 1)
        vn3 = vn.reshape(gb, v_pad, H)
        cnt = jnp.maximum(jnp.sum(vm3, axis=1), 1.0)                         # (gb, 1)
        gf = jnp.sum(vn3 * vm3, axis=1) / cnt                                # (gb, H)

        # fused readout MLP (former separate kernel): Linear -> ReLU -> Linear
        hm = jnp.maximum(
            jnp.dot(gf.astype(jnp.bfloat16), w_m1_ref[...],
                    preferred_element_type=jnp.float32) + b_m1_ref[...], 0.0)
        out = jnp.dot(hm.astype(jnp.bfloat16), w_m2_ref[...],
                      preferred_element_type=jnp.float32) + b_m2_ref[...]
        out_ref[...] = out.astype(out_ref.dtype)


# ------------------------------------------------------------------ forward

@functools.partial(jax.jit, static_argnames=("num_graphs", "v_pad"))
def _forward_impl(params, x, edge_index, batch, v_counts, rng_key, *, num_graphs, v_pad):
    N, Din = x.shape
    H = params["w_emb"].shape[1]
    Dout = params["w_m2"].shape[1]
    g_pad = v_counts.shape[0]

    # node-row / k tiling for the GCN aggregation; node-chunk size for the per-graph kernel
    tm = 512 if N > 512 else _round_up(N, 8)
    nc = 2048 if N > 4096 else None
    pad_unit = tm if nc is None else max(tm, nc)
    n_pad = _round_up(N, pad_unit)
    nc = n_pad if nc is None else nc
    tk = tm

    # dense normalized adjacency D^-1/2 (A + I) D^-1/2, zero-padded to n_pad
    # TODO(synk): replace the dense N x N adjacency with a block-sparse / segment-sum
    # aggregation (or int8/fp8 adjacency) for realistic graph sizes.
    A = jnp.zeros((N, N), jnp.float32).at[edge_index[0], edge_index[1]].set(1.0)
    A = A + jnp.eye(N, dtype=jnp.float32)
    dinv = jax.lax.rsqrt(jnp.sum(A, axis=1))
    a_hat = (A * dinv[:, None] * dinv[None, :])
    a_hat = jnp.pad(a_hat, ((0, n_pad - N), (0, n_pad - N))).astype(jnp.bfloat16)
    x_p = jnp.pad(x, ((0, n_pad - N), (0, 0))).astype(jnp.bfloat16)
    batch_p = jnp.pad(batch.astype(jnp.int32), (0, n_pad - N),
                      constant_values=-1).reshape(1, n_pad)

    # fold node_embedding into conv1's weight half: z = x @ (W_emb @ W_g) + b_emb @ W_g
    w_comb = (params["w_emb"] @ params["w_g"]).astype(jnp.bfloat16)
    b_comb = params["b_emb"] @ params["w_g"]                               # (1, H) f32

    # bf16 matmul operands, f32 biases / accumulation
    wb = {k: v.astype(jnp.bfloat16) for k, v in params.items() if k.startswith("w_")}

    # ---------------- K1: tiled (A_hat @ (x W_comb + b_comb)) + ReLU + affinity MLP
    x1, aff = pl.pallas_call(
        _gcn_affinity_kernel,
        grid=(n_pad // tm, n_pad // tk),
        in_specs=[pl.BlockSpec((tm, tk), lambda i, k: (i, k)),
                  pl.BlockSpec((tk, Din), lambda i, k: (k, 0)),
                  pl.BlockSpec((Din, H), lambda i, k: (0, 0)),
                  pl.BlockSpec((1, H), lambda i, k: (0, 0)),
                  pl.BlockSpec((1, H), lambda i, k: (0, 0)),
                  pl.BlockSpec((H, H), lambda i, k: (0, 0)),
                  pl.BlockSpec((1, H), lambda i, k: (0, 0)),
                  pl.BlockSpec((H, H), lambda i, k: (0, 0)),
                  pl.BlockSpec((1, H), lambda i, k: (0, 0))],
        out_specs=[pl.BlockSpec((tm, H), lambda i, k: (i, 0)),
                   pl.BlockSpec((tm, H), lambda i, k: (i, 0))],
        out_shape=[jax.ShapeDtypeStruct((n_pad, H), jnp.bfloat16),
                   jax.ShapeDtypeStruct((n_pad, H), jnp.bfloat16)],
        scratch_shapes=[pltpu.VMEM((tm, H), jnp.float32)],
        compiler_params=pltpu.CompilerParams(
            dimension_semantics=("parallel", "arbitrary"),
            vmem_limit_bytes=32 * 1024 * 1024),
    )(a_hat, x_p, w_comb, b_comb, params["b_g"],
      wb["w_a1"], params["b_a1"], wb["w_a2"], params["b_a2"])

    # pre-transposed affinity slab so K2's attention dot is in standard MXU orientation
    aff_t = aff.T                                                          # (H, n_pad) bf16

    # ---------------- per-graph setup (tiny arrays; vectorized, no host loops)
    vmask2 = jnp.arange(v_pad)[None, :] < v_counts[:, None]                # (g_pad, v_pad) bool
    row_gid = jnp.where(vmask2, jnp.arange(g_pad, dtype=jnp.int32)[:, None],
                        jnp.int32(-2)).reshape(g_pad * v_pad, 1)
    vmask = vmask2.astype(jnp.float32).reshape(g_pad, v_pad, 1)
    vne = _make_vne(rng_key, g_pad, v_pad, H).reshape(g_pad * v_pad, H).astype(jnp.bfloat16)

    # ---------------- K2: batched per-graph virtual-node block + fused readout MLP
    graph_kernel = functools.partial(_graph_kernel, gb=GB, v_pad=v_pad)
    out = pl.pallas_call(
        graph_kernel,
        grid=(g_pad // GB, n_pad // nc),
        in_specs=[pl.BlockSpec((nc, H), lambda g, c: (c, 0)),              # x1
                  pl.BlockSpec((H, nc), lambda g, c: (0, c)),              # aff_T
                  pl.BlockSpec((1, nc), lambda g, c: (0, c)),              # node graph ids
                  pl.BlockSpec((GB * v_pad, 1), lambda g, c: (g, 0)),      # vnode graph ids
                  pl.BlockSpec((GB * v_pad, H), lambda g, c: (g, 0)),      # vnode embeddings
                  pl.BlockSpec((GB, v_pad, 1), lambda g, c: (g, 0, 0)),    # vnode mask
                  pl.BlockSpec((H, H), lambda g, c: (0, 0)),
                  pl.BlockSpec((1, H), lambda g, c: (0, 0)),
                  pl.BlockSpec((H, H), lambda g, c: (0, 0)),
                  pl.BlockSpec((1, H), lambda g, c: (0, 0)),
                  pl.BlockSpec((H, H), lambda g, c: (0, 0)),
                  pl.BlockSpec((1, H), lambda g, c: (0, 0)),
                  pl.BlockSpec((H, Dout), lambda g, c: (0, 0)),
                  pl.BlockSpec((1, Dout), lambda g, c: (0, 0))],
        out_specs=pl.BlockSpec((GB, Dout), lambda g, c: (g, 0)),
        out_shape=jax.ShapeDtypeStruct((g_pad, Dout), jnp.float32),
        scratch_shapes=[pltpu.VMEM((GB * v_pad, H), jnp.float32)],
        compiler_params=pltpu.CompilerParams(
            dimension_semantics=("parallel", "arbitrary"),
            vmem_limit_bytes=32 * 1024 * 1024),
    )(x1, aff_t, batch_p, row_gid, vne, vmask,
      wb["w_v1"], params["b_v1"], wb["w_v2"], params["b_v2"],
      wb["w_m1"], params["b_m1"], wb["w_m2"], params["b_m2"])

    return out[:num_graphs]


def iprmpnn_forward(params, x, edge_index, batch, num_graphs, rng_key):
    # single device->host sync for the (static) per-graph virtual-node counts
    counts = jax.device_get(jnp.bincount(batch, length=num_graphs))
    v_counts = [calculate_optimal_virtual_nodes(int(c))[0] for c in counts]
    v_pad = _round_up(max(v_counts), 8)
    g_pad = _round_up(num_graphs, GB)
    v_counts_arr = jnp.asarray(list(v_counts) + [0] * (g_pad - num_graphs), jnp.int32)
    return _forward_impl(params, x, edge_index, batch, v_counts_arr, rng_key,
                         num_graphs=num_graphs, v_pad=v_pad)


# ------------------------------------------------------------------ pure-JAX reference (f32)

def iprmpnn_reference(params, x, edge_index, batch, num_graphs, rng_key):
    N = x.shape[0]
    H = params["w_emb"].shape[1]
    A = jnp.zeros((N, N), jnp.float32).at[edge_index[0], edge_index[1]].set(1.0)
    A = A + jnp.eye(N, dtype=jnp.float32)
    dinv = 1.0 / jnp.sqrt(jnp.sum(A, axis=1))
    a_hat = A * dinv[:, None] * dinv[None, :]

    h = x @ params["w_emb"] + params["b_emb"]
    x1 = jax.nn.relu(a_hat @ (h @ params["w_g"]) + params["b_g"])

    counts = jax.device_get(jnp.bincount(batch, length=num_graphs))
    v_counts = [calculate_optimal_virtual_nodes(int(c))[0] for c in counts]
    v_pad = _round_up(max(v_counts), 8)
    vne_all = _make_vne(rng_key, num_graphs, v_pad, H)

    feats = []
    for g in range(num_graphs):
        mask = batch == g
        gx = x1[mask]
        Vg = v_counts[g]
        aff = jax.nn.relu(gx @ params["w_a1"] + params["b_a1"]) @ params["w_a2"] + params["b_a2"]
        e = vne_all[g, :Vg]
        att = (aff @ e.T) / jnp.sqrt(jnp.float32(H))
        ew = (1.0 / Vg) * (1.0 + jax.nn.sigmoid(att))
        rs = jnp.sum(ew, axis=1, keepdims=True)
        rs = jnp.where(rs == 0.0, 1.0, rs)
        ew = ew / rs
        vn = ew.T @ gx
        vn = jax.nn.relu(vn @ params["w_v1"] + params["b_v1"]) @ params["w_v2"] + params["b_v2"]
        feats.append(jnp.mean(vn, axis=0))
    gf = jnp.stack(feats, axis=0)
    return jax.nn.relu(gf @ params["w_m1"] + params["b_m1"]) @ params["w_m2"] + params["b_m2"]


# ------------------------------------------------------------------ params

def init_params(key, input_dim, hidden_dim, output_dim):
    ks = jax.random.split(key, 8)

    def lin(k, fan_in, fan_out):
        kw, kb = jax.random.split(k)
        w = jax.random.normal(kw, (fan_in, fan_out), jnp.float32) * (1.0 / jnp.sqrt(fan_in))
        b = jax.random.normal(kb, (1, fan_out), jnp.float32) * 0.01
        return w, b

    w_emb, b_emb = lin(ks[0], input_dim, hidden_dim)
    w_g, b_g = lin(ks[1], hidden_dim, hidden_dim)          # conv1 (conv2 unused in forward)
    w_a1, b_a1 = lin(ks[2], hidden_dim, hidden_dim)
    w_a2, b_a2 = lin(ks[3], hidden_dim, hidden_dim)
    w_v1, b_v1 = lin(ks[4], hidden_dim, hidden_dim)
    w_v2, b_v2 = lin(ks[5], hidden_dim, hidden_dim)
    w_m1, b_m1 = lin(ks[6], hidden_dim, hidden_dim)
    w_m2, b_m2 = lin(ks[7], hidden_dim, output_dim)
    return dict(w_emb=w_emb, b_emb=b_emb, w_g=w_g, b_g=b_g,
                w_a1=w_a1, b_a1=b_a1, w_a2=w_a2, b_a2=b_a2,
                w_v1=w_v1, b_v1=b_v1, w_v2=w_v2, b_v2=b_v2,
                w_m1=w_m1, b_m1=b_m1, w_m2=w_m2, b_m2=b_m2)


# ------------------------------------------------------------------ main

if __name__ == "__main__":
    key = jax.random.PRNGKey(0)
    kp, kx, kr = jax.random.split(key, 3)

    input_dim, hidden_dim, output_dim = 6, 32, 4
    graph_sizes = [8, 7]                      # two undirected ring graphs of different size
    num_graphs = len(graph_sizes)
    N = sum(graph_sizes)

    params = init_params(kp, input_dim, hidden_dim, output_dim)
    x = jax.random.normal(kx, (N, input_dim), jnp.float32)

    src, dst, batch_list = [], [], []
    off = 0
    for g, sz in enumerate(graph_sizes):
        for i in range(sz):
            j = (i + 1) % sz
            src += [off + i, off + j]
            dst += [off + j, off + i]
        batch_list += [g] * sz
        off += sz
    edge_index = jnp.array([src, dst], dtype=jnp.int32)
    batch = jnp.array(batch_list, dtype=jnp.int32)

    out = iprmpnn_forward(params, x, edge_index, batch, num_graphs, kr)
    out = jax.block_until_ready(out)

    ref = iprmpnn_reference(params, x, edge_index, batch, num_graphs, kr)
    assert out.shape == (num_graphs, output_dim)
    # bf16 matmul operands with f32 accumulation -> compare with a bf16-appropriate tolerance
    assert bool(jnp.allclose(out, ref, atol=5e-2, rtol=5e-2)), (out, ref)

    print("KERNEL_OK")
</pallas_src>

<mosaic_0001>
module attributes {stable_mosaic.version = 11 : i64} {
  func.func @_gcn_affinity_kernel(%arg0: i32, %arg1: i32, %arg2: memref<16x16xbf16, #tpu.memory_space<vmem>>, %arg3: memref<16x6xbf16, #tpu.memory_space<vmem>>, %arg4: memref<6x32xbf16, #tpu.memory_space<vmem>>, %arg5: memref<1x32xf32, #tpu.memory_space<vmem>>, %arg6: memref<1x32xf32, #tpu.memory_space<vmem>>, %arg7: memref<32x32xbf16, #tpu.memory_space<vmem>>, %arg8: memref<1x32xf32, #tpu.memory_space<vmem>>, %arg9: memref<32x32xbf16, #tpu.memory_space<vmem>>, %arg10: memref<1x32xf32, #tpu.memory_space<vmem>>, %arg11: memref<16x32xbf16, #tpu.memory_space<vmem>>, %arg12: memref<16x32xbf16, #tpu.memory_space<vmem>>, %arg13: memref<16x32xf32, #tpu.memory_space<vmem>>) attributes {dimension_semantics = [#tpu.dimension_semantics<parallel>, #tpu.dimension_semantics<arbitrary>], iteration_bounds = array<i64: 1, 1>, scalar_prefetch = 0 : i64, scratch_operands = 1 : i64, tpu.core_type = #tpu.core_type<tc>, window_params = [{transform_indices = @transform_0, window_bounds = array<i64: 16, 16>}, {transform_indices = @transform_1, window_bounds = array<i64: 16, 6>}, {pipeline_mode = #tpu.pipeline_mode<synchronous>, transform_indices = @transform_2, window_bounds = array<i64: 6, 32>}, {pipeline_mode = #tpu.pipeline_mode<synchronous>, transform_indices = @transform_3, window_bounds = array<i64: 1, 32>}, {pipeline_mode = #tpu.pipeline_mode<synchronous>, transform_indices = @transform_4, window_bounds = array<i64: 1, 32>}, {pipeline_mode = #tpu.pipeline_mode<synchronous>, transform_indices = @transform_5, window_bounds = array<i64: 32, 32>}, {pipeline_mode = #tpu.pipeline_mode<synchronous>, transform_indices = @transform_6, window_bounds = array<i64: 1, 32>}, {pipeline_mode = #tpu.pipeline_mode<synchronous>, transform_indices = @transform_7, window_bounds = array<i64: 32, 32>}, {pipeline_mode = #tpu.pipeline_mode<synchronous>, transform_indices = @transform_8, window_bounds = array<i64: 1, 32>}, {transform_indices = @transform_9, window_bounds = array<i64: 16, 32>}, {transform_indices = @transform_10, window_bounds = array<i64: 16, 32>}]} {
    %c0_i32 = arith.constant 0 : i32
    %0 = arith.cmpi eq, %arg1, %c0_i32 : i32
    %1 = arith.extui %0 : i1 to i32
    %c0_i32_0 = arith.constant 0 : i32
    %2 = arith.cmpi ne, %1, %c0_i32_0 : i32
    scf.if %2 {
      %cst_15 = arith.constant 0.000000e+00 : f32
      %18 = vector.broadcast %cst_15 : f32 to vector<16x32xf32>
      %c0_16 = arith.constant 0 : index
      %c0_17 = arith.constant 0 : index
      %19 = vector.load %arg13[%c0_16, %c0_17] : memref<16x32xf32, #tpu.memory_space<vmem>>, vector<16x32xf32>
      tpu.vector_store %arg13[%c0_16, %c0_17], %18 {strides = array<i32>} : memref<16x32xf32, #tpu.memory_space<vmem>>, vector<16x32xf32>,
    } else {
    }
    %c0 = arith.constant 0 : index
    %c0_1 = arith.constant 0 : index
    %3 = vector.load %arg3[%c0, %c0_1] : memref<16x6xbf16, #tpu.memory_space<vmem>>, vector<16x6xbf16>
    %c0_2 = arith.constant 0 : index
    %c0_3 = arith.constant 0 : index
    %4 = vector.load %arg4[%c0_2, %c0_3] : memref<6x32xbf16, #tpu.memory_space<vmem>>, vector<6x32xbf16>
    %cst = arith.constant dense<0.000000e+00> : vector<16x32xf32>
    %5 = tpu.matmul %3, %4, %cst {dimension_numbers = #tpu.dot_dimension_numbers<[1], [0], [0], [1], [0, 0, 1, 1], [], []>} : vector<16x6xbf16>, vector<6x32xbf16>, vector<16x32xf32> -> vector<16x32xf32>
    %c0_4 = arith.constant 0 : index
    %c0_5 = arith.constant 0 : index
    %6 = vector.load %arg5[%c0_4, %c0_5] : memref<1x32xf32, #tpu.memory_space<vmem>>, vector<1x32xf32>
    %7 = vector.broadcast %6 : vector<1x32xf32> to vector<16x32xf32>
    %8 = arith.addf %5, %7 : vector<16x32xf32>
    %9 = arith.truncf %8 : vector<16x32xf32> to vector<16x32xbf16>
    %c0_6 = arith.constant 0 : index
    %c0_7 = arith.constant 0 : index
    %10 = vector.load %arg13[%c0_6, %c0_7] : memref<16x32xf32, #tpu.memory_space<vmem>>, vector<16x32xf32>
    %c0_8 = arith.constant 0 : index
    %c0_9 = arith.constant 0 : index
    %11 = vector.load %arg2[%c0_8, %c0_9] : memref<16x16xbf16, #tpu.memory_space<vmem>>, vector<16x16xbf16>
    %cst_10 = arith.constant dense<0.000000e+00> : vector<16x32xf32>
    %12 = tpu.matmul %11, %9, %cst_10 {dimension_numbers = #tpu.dot_dimension_numbers<[1], [0], [0], [1], [0, 0, 1, 1], [], []>} : vector<16x16xbf16>, vector<16x32xbf16>, vector<16x32xf32> -> vector<16x32xf32>
    %13 = arith.addf %10, %12 : vector<16x32xf32>
    %c0_11 = arith.constant 0 : index
    %c0_12 = arith.constant 0 : index
    %14 = vector.load %arg13[%c0_11, %c0_12] : memref<16x32xf32, #tpu.memory_space<vmem>>, vector<16x32xf32>
    tpu.vector_store %arg13[%c0_11, %c0_12], %13 {strides = array<i32>} : memref<16x32xf32, #tpu.memory_space<vmem>>, vector<16x32xf32>,
    %c0_i32_13 = arith.constant 0 : i32
    %15 = arith.cmpi eq, %arg1, %c0_i32_13 : i32
    %16 = arith.extui %15 : i1 to i32
    %c0_i32_14 = arith.constant 0 : i32
    %17 = arith.cmpi ne, %16, %c0_i32_14 : i32
    scf.if %17 {
      %c0_15 = arith.constant 0 : index
      %c0_16 = arith.constant 0 : index
      %18 = vector.load %arg13[%c0_15, %c0_16] : memref<16x32xf32, #tpu.memory_space<vmem>>, vector<16x32xf32>
      %c0_17 = arith.constant 0 : index
      %c0_18 = arith.constant 0 : index
      %19 = vector.load %arg6[%c0_17, %c0_18] : memref<1x32xf32, #tpu.memory_space<vmem>>, vector<1x32xf32>
      %20 = vector.broadcast %19 : vector<1x32xf32> to vector<16x32xf32>
      %21 = arith.addf %18, %20 : vector<16x32xf32>
      %cst_19 = arith.constant 0.000000e+00 : f32
      %22 = vector.broadcast %cst_19 : f32 to vector<16x32xf32>
      %23 = arith.maximumf %21, %22 : vector<16x32xf32>
      %24 = arith.truncf %23 : vector<16x32xf32> to vector<16x32xbf16>
      %c0_20 = arith.constant 0 : index
      %c0_21 = arith.constant 0 : index
      %25 = vector.load %arg11[%c0_20, %c0_21] : memref<16x32xbf16, #tpu.memory_space<vmem>>, vector<16x32xbf16>
      tpu.vector_store %arg11[%c0_20, %c0_21], %24 {strides = array<i32>} : memref<16x32xbf16, #tpu.memory_space<vmem>>, vector<16x32xbf16>,
      %26 = arith.truncf %23 : vector<16x32xf32> to vector<16x32xbf16>
      %c0_22 = arith.constant 0 : index
      %c0_23 = arith.constant 0 : index
      %27 = vector.load %arg7[%c0_22, %c0_23] : memref<32x32xbf16, #tpu.memory_space<vmem>>, vector<32x32xbf16>
      %cst_24 = arith.constant dense<0.000000e+00> : vector<16x32xf32>
      %28 = tpu.matmul %26, %27, %cst_24 {dimension_numbers = #tpu.dot_dimension_numbers<[1], [0], [0], [1], [0, 0, 1, 1], [], []>} : vector<16x32xbf16>, vector<32x32xbf16>, vector<16x32xf32> -> vector<16x32xf32>
      %c0_25 = arith.constant 0 : index
      %c0_26 = arith.constant 0 : index
      %29 = vector.load %arg8[%c0_25, %c0_26] : memref<1x32xf32, #tpu.memory_space<vmem>>, vector<1x32xf32>
      %30 = vector.broadcast %29 : vector<1x32xf32> to vector<16x32xf32>
      %31 = arith.addf %28, %30 : vector<16x32xf32>
      %cst_27 = arith.constant 0.000000e+00 : f32
      %32 = vector.broadcast %cst_27 : f32 to vector<16x32xf32>
      %33 = arith.maximumf %31, %32 : vector<16x32xf32>
      %34 = arith.truncf %33 : vector<16x32xf32> to vector<16x32xbf16>
      %c0_28 = arith.constant 0 : index
      %c0_29 = arith.constant 0 : index
      %35 = vector.load %arg9[%c0_28, %c0_29] : memref<32x32xbf16, #tpu.memory_space<vmem>>, vector<32x32xbf16>
      %cst_30 = arith.constant dense<0.000000e+00> : vector<16x32xf32>
      %36 = tpu.matmul %34, %35, %cst_30 {dimension_numbers = #tpu.dot_dimension_numbers<[1], [0], [0], [1], [0, 0, 1, 1], [], []>} : vector<16x32xbf16>, vector<32x32xbf16>, vector<16x32xf32> -> vector<16x32xf32>
      %c0_31 = arith.constant 0 : index
      %c0_32 = arith.constant 0 : index
      %37 = vector.load %arg10[%c0_31, %c0_32] : memref<1x32xf32, #tpu.memory_space<vmem>>, vector<1x32xf32>
      %38 = vector.broadcast %37 : vector<1x32xf32> to vector<16x32xf32>
      %39 = arith.addf %36, %38 : vector<16x32xf32>
      %40 = arith.truncf %39 : vector<16x32xf32> to vector<16x32xbf16>
      %c0_33 = arith.constant 0 : index
      %c0_34 = arith.constant 0 : index
      %41 = vector.load %arg12[%c0_33, %c0_34] : memref<16x32xbf16, #tpu.memory_space<vmem>>, vector<16x32xbf16>
      tpu.vector_store %arg12[%c0_33, %c0_34], %40 {strides = array<i32>} : memref<16x32xbf16, #tpu.memory_space<vmem>>, vector<16x32xbf16>,
    } else {
    }
    return
  }
  func.func @transform_0(%arg0: i32, %arg1: i32) -> (i32, i32) {
    %c0_i32 = arith.constant 0 : i32
    return %arg0, %arg1 : i32, i32
  }
  func.func @transform_1(%arg0: i32, %arg1: i32) -> (i32, i32) {
    %c0_i32 = arith.constant 0 : i32
    %c0_i32_0 = arith.constant 0 : i32
    return %arg1, %c0_i32 : i32, i32
  }
  func.func @transform_2(%arg0: i32, %arg1: i32) -> (i32, i32) {
    %c0_i32 = arith.constant 0 : i32
    %c0_i32_0 = arith.constant 0 : i32
    %c0_i32_1 = arith.constant 0 : i32
    return %c0_i32, %c0_i32_0 : i32, i32
  }
  func.func @transform_3(%arg0: i32, %arg1: i32) -> (i32, i32) {
    %c0_i32 = arith.constant 0 : i32
    %c0_i32_0 = arith.constant 0 : i32
    %c0_i32_1 = arith.constant 0 : i32
    return %c0_i32, %c0_i32_0 : i32, i32
  }
  func.func @transform_4(%arg0: i32, %arg1: i32) -> (i32, i32) {
    %c0_i32 = arith.constant 0 : i32
    %c0_i32_0 = arith.constant 0 : i32
    %c0_i32_1 = arith.constant 0 : i32
    return %c0_i32, %c0_i32_0 : i32, i32
  }
  func.func @transform_5(%arg0: i32, %arg1: i32) -> (i32, i32) {
    %c0_i32 = arith.constant 0 : i32
    %c0_i32_0 = arith.constant 0 : i32
    %c0_i32_1 = arith.constant 0 : i32
    return %c0_i32, %c0_i32_0 : i32, i32
  }
  func.func @transform_6(%arg0: i32, %arg1: i32) -> (i32, i32) {
    %c0_i32 = arith.constant 0 : i32
    %c0_i32_0 = arith.constant 0 : i32
    %c0_i32_1 = arith.constant 0 : i32
    return %c0_i32, %c0_i32_0 : i32, i32
  }
  func.func @transform_7(%arg0: i32, %arg1: i32) -> (i32, i32) {
    %c0_i32 = arith.constant 0 : i32
    %c0_i32_0 = arith.constant 0 : i32
    %c0_i32_1 = arith.constant 0 : i32
    return %c0_i32, %c0_i32_0 : i32, i32
  }
  func.func @transform_8(%arg0: i32, %arg1: i32) -> (i32, i32) {
    %c0_i32 = arith.constant 0 : i32
    %c0_i32_0 = arith.constant 0 : i32
    %c0_i32_1 = arith.constant 0 : i32
    return %c0_i32, %c0_i32_0 : i32, i32
  }
  func.func @transform_9(%arg0: i32, %arg1: i32) -> (i32, i32) {
    %c0_i32 = arith.constant 0 : i32
    %c0_i32_0 = arith.constant 0 : i32
    return %arg0, %c0_i32 : i32, i32
  }
  func.func @transform_10(%arg0: i32, %arg1: i32) -> (i32, i32) {
    %c0_i32 = arith.constant 0 : i32
    %c0_i32_0 = arith.constant 0 : i32
    return %arg0, %c0_i32 : i32, i32
  }
}

module attributes {stable_mosaic.version = 11 : i64} {
  func.func @_graph_kernel(%arg0: i32, %arg1: i32, %arg2: memref<16x32xbf16, #tpu.memory_space<vmem>>, %arg3: memref<32x16xbf16, #tpu.memory_space<vmem>>, %arg4: memref<1x16xi32, #tpu.memory_space<vmem>>, %arg5: memref<384x1xi32, #tpu.memory_space<vmem>>, %arg6: memref<384x32xbf16, #tpu.memory_space<vmem>>, %arg7: memref<16x24x1xf32, #tpu.memory_space<vmem>>, %arg8: memref<32x32xbf16, #tpu.memory_space<vmem>>, %arg9: memref<1x32xf32, #tpu.memory_space<vmem>>, %arg10: memref<32x32xbf16, #tpu.memory_space<vmem>>, %arg11: memref<1x32xf32, #tpu.memory_space<vmem>>, %arg12: memref<32x32xbf16, #tpu.memory_space<vmem>>, %arg13: memref<1x32xf32, #tpu.memory_space<vmem>>, %arg14: memref<32x4xbf16, #tpu.memory_space<vmem>>, %arg15: memref<1x4xf32, #tpu.memory_space<vmem>>, %arg16: memref<16x4xf32, #tpu.memory_space<vmem>>, %arg17: memref<384x32xf32, #tpu.memory_space<vmem>>) attributes {dimension_semantics = [#tpu.dimension_semantics<parallel>, #tpu.dimension_semantics<arbitrary>], iteration_bounds = array<i64: 1, 1>, scalar_prefetch = 0 : i64, scratch_operands = 1 : i64, tpu.core_type = #tpu.core_type<tc>, window_params = [{transform_indices = @transform_0, window_bounds = array<i64: 16, 32>}, {transform_indices = @transform_1, window_bounds = array<i64: 32, 16>}, {transform_indices = @transform_2, window_bounds = array<i64: 1, 16>}, {transform_indices = @transform_3, window_bounds = array<i64: 384, 1>}, {transform_indices = @transform_4, window_bounds = array<i64: 384, 32>}, {transform_indices = @transform_5, window_bounds = array<i64: 16, 24, 1>}, {pipeline_mode = #tpu.pipeline_mode<synchronous>, transform_indices = @transform_6, window_bounds = array<i64: 32, 32>}, {pipeline_mode = #tpu.pipeline_mode<synchronous>, transform_indices = @transform_7, window_bounds = array<i64: 1, 32>}, {pipeline_mode = #tpu.pipeline_mode<synchronous>, transform_indices = @transform_8, window_bounds = array<i64: 32, 32>}, {pipeline_mode = #tpu.pipeline_mode<synchronous>, transform_indices = @transform_9, window_bounds = array<i64: 1, 32>}, {pipeline_mode = #tpu.pipeline_mode<synchronous>, transform_indices = @transform_10, window_bounds = array<i64: 32, 32>}, {pipeline_mode = #tpu.pipeline_mode<synchronous>, transform_indices = @transform_11, window_bounds = array<i64: 1, 32>}, {pipeline_mode = #tpu.pipeline_mode<synchronous>, transform_indices = @transform_12, window_bounds = array<i64: 32, 4>}, {pipeline_mode = #tpu.pipeline_mode<synchronous>, transform_indices = @transform_13, window_bounds = array<i64: 1, 4>}, {transform_indices = @transform_14, window_bounds = array<i64: 16, 4>}]} {
    %c0_i32 = arith.constant 0 : i32
    %0 = arith.cmpi eq, %arg1, %c0_i32 : i32
    %1 = arith.extui %0 : i1 to i32
    %c0_i32_0 = arith.constant 0 : i32
    %2 = arith.cmpi ne, %1, %c0_i32_0 : i32
    scf.if %2 {
      %cst_24 = arith.constant 0.000000e+00 : f32
      %39 = vector.broadcast %cst_24 : f32 to vector<384x32xf32>
      %c0_25 = arith.constant 0 : index
      %c0_26 = arith.constant 0 : index
      %40 = vector.load %arg17[%c0_25, %c0_26] : memref<384x32xf32, #tpu.memory_space<vmem>>, vector<384x32xf32>
      tpu.vector_store %arg17[%c0_25, %c0_26], %39 {strides = array<i32>} : memref<384x32xf32, #tpu.memory_space<vmem>>, vector<384x32xf32>,
    } else {
    }
    %c0 = arith.constant 0 : index
    %c0_1 = arith.constant 0 : index
    %3 = vector.load %arg6[%c0, %c0_1] : memref<384x32xbf16, #tpu.memory_space<vmem>>, vector<384x32xbf16>
    %c0_2 = arith.constant 0 : index
    %c0_3 = arith.constant 0 : index
    %4 = vector.load %arg3[%c0_2, %c0_3] : memref<32x16xbf16, #tpu.memory_space<vmem>>, vector<32x16xbf16>
    %cst = arith.constant dense<0.000000e+00> : vector<384x16xf32>
    %5 = tpu.matmul %3, %4, %cst {dimension_numbers = #tpu.dot_dimension_numbers<[1], [0], [0], [1], [0, 0, 1, 1], [], []>} : vector<384x32xbf16>, vector<32x16xbf16>, vector<384x16xf32> -> vector<384x16xf32>
    %cst_4 = arith.constant 0.176776692 : f32
    %6 = vector.broadcast %cst_4 : f32 to vector<384x16xf32>
    %7 = arith.mulf %5, %6 : vector<384x16xf32>
    %c0_5 = arith.constant 0 : index
    %c0_6 = arith.constant 0 : index
    %8 = vector.load %arg5[%c0_5, %c0_6] : memref<384x1xi32, #tpu.memory_space<vmem>>, vector<384x1xi32>
    %c0_7 = arith.constant 0 : index
    %c0_8 = arith.constant 0 : index
    %9 = vector.load %arg4[%c0_7, %c0_8] : memref<1x16xi32, #tpu.memory_space<vmem>>, vector<1x16xi32>
    %10 = vector.broadcast %8 : vector<384x1xi32> to vector<384x16xi32>
    %11 = vector.broadcast %9 : vector<1x16xi32> to vector<384x16xi32>
    %12 = arith.cmpi eq, %10, %11 : vector<384x16xi32>
    %13 = arith.negf %7 : vector<384x16xf32>
    %14 = math.exp %13 : vector<384x16xf32>
    %cst_9 = arith.constant 1.000000e+00 : f32
    %15 = vector.broadcast %cst_9 : f32 to vector<384x16xf32>
    %16 = arith.addf %15, %14 : vector<384x16xf32>
    %17 = arith.divf %15, %16 : vector<384x16xf32>
    %cst_10 = arith.constant 1.000000e+00 : f32
    %18 = vector.broadcast %cst_10 : f32 to vector<384x16xf32>
    %19 = arith.addf %18, %17 : vector<384x16xf32>
    %cst_11 = arith.constant 0.000000e+00 : f32
    %20 = vector.broadcast %cst_11 : f32 to vector<384x16xf32>
    %21 = arith.select %12, %19, %20 : vector<384x16xi1>, vector<384x16xf32>
    %cst_12 = arith.constant dense<0.000000e+00> : vector<16xf32>
    %22 = vector.multi_reduction <add>, %21, %cst_12 [0] : vector<384x16xf32> to vector<16xf32>
    %23 = vector.shape_cast %22 : vector<16xf32> to vector<1x16xf32>
    %cst_13 = arith.constant 0.000000e+00 : f32
    %24 = vector.broadcast %cst_13 : f32 to vector<1x16xf32>
    %25 = arith.cmpf oeq, %23, %24 : vector<1x16xf32>
    %cst_14 = arith.constant 1.000000e+00 : f32
    %26 = vector.broadcast %cst_14 : f32 to vector<1x16xf32>
    %27 = arith.select %25, %26, %23 : vector<1x16xi1>, vector<1x16xf32>
    %28 = vector.broadcast %27 : vector<1x16xf32> to vector<384x16xf32>
    %29 = arith.divf %21, %28 : vector<384x16xf32>
    %c0_15 = arith.constant 0 : index
    %c0_16 = arith.constant 0 : index
    %30 = vector.load %arg17[%c0_15, %c0_16] : memref<384x32xf32, #tpu.memory_space<vmem>>, vector<384x32xf32>
    %31 = arith.truncf %29 : vector<384x16xf32> to vector<384x16xbf16>
    %c0_17 = arith.constant 0 : index
    %c0_18 = arith.constant 0 : index
    %32 = vector.load %arg2[%c0_17, %c0_18] : memref<16x32xbf16, #tpu.memory_space<vmem>>, vector<16x32xbf16>
    %cst_19 = arith.constant dense<0.000000e+00> : vector<384x32xf32>
    %33 = tpu.matmul %31, %32, %cst_19 {dimension_numbers = #tpu.dot_dimension_numbers<[1], [0], [0], [1], [0, 0, 1, 1], [], []>} : vector<384x16xbf16>, vector<16x32xbf16>, vector<384x32xf32> -> vector<384x32xf32>
    %34 = arith.addf %30, %33 : vector<384x32xf32>
    %c0_20 = arith.constant 0 : index
    %c0_21 = arith.constant 0 : index
    %35 = vector.load %arg17[%c0_20, %c0_21] : memref<384x32xf32, #tpu.memory_space<vmem>>, vector<384x32xf32>
    tpu.vector_store %arg17[%c0_20, %c0_21], %34 {strides = array<i32>} : memref<384x32xf32, #tpu.memory_space<vmem>>, vector<384x32xf32>,
    %c0_i32_22 = arith.constant 0 : i32
    %36 = arith.cmpi eq, %arg1, %c0_i32_22 : i32
    %37 = arith.extui %36 : i1 to i32
    %c0_i32_23 = arith.constant 0 : i32
    %38 = arith.cmpi ne, %37, %c0_i32_23 : i32
    scf.if %38 {
      %c0_24 = arith.constant 0 : index
      %c0_25 = arith.constant 0 : index
      %39 = vector.load %arg17[%c0_24, %c0_25] : memref<384x32xf32, #tpu.memory_space<vmem>>, vector<384x32xf32>
      %40 = arith.truncf %39 : vector<384x32xf32> to vector<384x32xbf16>
      %c0_26 = arith.constant 0 : index
      %c0_27 = arith.constant 0 : index
      %41 = vector.load %arg8[%c0_26, %c0_27] : memref<32x32xbf16, #tpu.memory_space<vmem>>, vector<32x32xbf16>
      %cst_28 = arith.constant dense<0.000000e+00> : vector<384x32xf32>
      %42 = tpu.matmul %40, %41, %cst_28 {dimension_numbers = #tpu.dot_dimension_numbers<[1], [0], [0], [1], [0, 0, 1, 1], [], []>} : vector<384x32xbf16>, vector<32x32xbf16>, vector<384x32xf32> -> vector<384x32xf32>
      %c0_29 = arith.constant 0 : index
      %c0_30 = arith.constant 0 : index
      %43 = vector.load %arg9[%c0_29, %c0_30] : memref<1x32xf32, #tpu.memory_space<vmem>>, vector<1x32xf32>
      %44 = vector.broadcast %43 : vector<1x32xf32> to vector<384x32xf32>
      %45 = arith.addf %42, %44 : vector<384x32xf32>
      %cst_31 = arith.constant 0.000000e+00 : f32
      %46 = vector.broadcast %cst_31 : f32 to vector<384x32xf32>
      %47 = arith.maximumf %45, %46 : vector<384x32xf32>
      %48 = arith.truncf %47 : vector<384x32xf32> to vector<384x32xbf16>
      %c0_32 = arith.constant 0 : index
      %c0_33 = arith.constant 0 : index
      %49 = vector.load %arg10[%c0_32, %c0_33] : memref<32x32xbf16, #tpu.memory_space<vmem>>, vector<32x32xbf16>
      %cst_34 = arith.constant dense<0.000000e+00> : vector<384x32xf32>
      %50 = tpu.matmul %48, %49, %cst_34 {dimension_numbers = #tpu.dot_dimension_numbers<[1], [0], [0], [1], [0, 0, 1, 1], [], []>} : vector<384x32xbf16>, vector<32x32xbf16>, vector<384x32xf32> -> vector<384x32xf32>
      %c0_35 = arith.constant 0 : index
      %c0_36 = arith.constant 0 : index
      %51 = vector.load %arg11[%c0_35, %c0_36] : memref<1x32xf32, #tpu.memory_space<vmem>>, vector<1x32xf32>
      %52 = vector.broadcast %51 : vector<1x32xf32> to vector<384x32xf32>
      %53 = arith.addf %50, %52 : vector<384x32xf32>
      %c0_37 = arith.constant 0 : index
      %c0_38 = arith.constant 0 : index
      %c0_39 = arith.constant 0 : index
      %54 = vector.load %arg7[%c0_37, %c0_38, %c0_39] : memref<16x24x1xf32, #tpu.memory_space<vmem>>, vector<16x24x1xf32>
      %55 = vector.shape_cast %53 : vector<384x32xf32> to vector<16x24x32xf32>
      %cst_40 = arith.constant dense<0.000000e+00> : vector<16x1xf32>
      %56 = vector.multi_reduction <add>, %54, %cst_40 [1] : vector<16x24x1xf32> to vector<16x1xf32>
      %cst_41 = arith.constant 1.000000e+00 : f32
      %57 = vector.broadcast %cst_41 : f32 to vector<16x1xf32>
      %58 = arith.maximumf %56, %57 : vector<16x1xf32>
      %59 = vector.broadcast %54 : vector<16x24x1xf32> to vector<16x24x32xf32>
      %60 = arith.mulf %55, %59 : vector<16x24x32xf32>
      %cst_42 = arith.constant dense<0.000000e+00> : vector<16x32xf32>
      %61 = vector.multi_reduction <add>, %60, %cst_42 [1] : vector<16x24x32xf32> to vector<16x32xf32>
      %62 = vector.broadcast %58 : vector<16x1xf32> to vector<16x32xf32>
      %63 = arith.divf %61, %62 : vector<16x32xf32>
      %64 = arith.truncf %63 : vector<16x32xf32> to vector<16x32xbf16>
      %c0_43 = arith.constant 0 : index
      %c0_44 = arith.constant 0 : index
      %65 = vector.load %arg12[%c0_43, %c0_44] : memref<32x32xbf16, #tpu.memory_space<vmem>>, vector<32x32xbf16>
      %cst_45 = arith.constant dense<0.000000e+00> : vector<16x32xf32>
      %66 = tpu.matmul %64, %65, %cst_45 {dimension_numbers = #tpu.dot_dimension_numbers<[1], [0], [0], [1], [0, 0, 1, 1], [], []>} : vector<16x32xbf16>, vector<32x32xbf16>, vector<16x32xf32> -> vector<16x32xf32>
      %c0_46 = arith.constant 0 : index
      %c0_47 = arith.constant 0 : index
      %67 = vector.load %arg13[%c0_46, %c0_47] : memref<1x32xf32, #tpu.memory_space<vmem>>, vector<1x32xf32>
      %68 = vector.broadcast %67 : vector<1x32xf32> to vector<16x32xf32>
      %69 = arith.addf %66, %68 : vector<16x32xf32>
      %cst_48 = arith.constant 0.000000e+00 : f32
      %70 = vector.broadcast %cst_48 : f32 to vector<16x32xf32>
      %71 = arith.maximumf %69, %70 : vector<16x32xf32>
      %72 = arith.truncf %71 : vector<16x32xf32> to vector<16x32xbf16>
      %c0_49 = arith.constant 0 : index
      %c0_50 = arith.constant 0 : index
      %73 = vector.load %arg14[%c0_49, %c0_50] : memref<32x4xbf16, #tpu.memory_space<vmem>>, vector<32x4xbf16>
      %cst_51 = arith.constant dense<0.000000e+00> : vector<16x4xf32>
      %74 = tpu.matmul %72, %73, %cst_51 {dimension_numbers = #tpu.dot_dimension_numbers<[1], [0], [0], [1], [0, 0, 1, 1], [], []>} : vector<16x32xbf16>, vector<32x4xbf16>, vector<16x4xf32> -> vector<16x4xf32>
      %c0_52 = arith.constant 0 : index
      %c0_53 = arith.constant 0 : index
      %75 = vector.load %arg15[%c0_52, %c0_53] : memref<1x4xf32, #tpu.memory_space<vmem>>, vector<1x4xf32>
      %76 = vector.broadcast %75 : vector<1x4xf32> to vector<16x4xf32>
      %77 = arith.addf %74, %76 : vector<16x4xf32>
      %c0_54 = arith.constant 0 : index
      %c0_55 = arith.constant 0 : index
      %78 = vector.load %arg16[%c0_54, %c0_55] : memref<16x4xf32, #tpu.memory_space<vmem>>, vector<16x4xf32>
      tpu.vector_store %arg16[%c0_54, %c0_55], %77 {strides = array<i32>} : memref<16x4xf32, #tpu.memory_space<vmem>>, vector<16x4xf32>,
    } else {
    }
    return
  }
  func.func @transform_0(%arg0: i32, %arg1: i32) -> (i32, i32) {
    %c0_i32 = arith.constant 0 : i32
    %c0_i32_0 = arith.constant 0 : i32
    return %arg1, %c0_i32 : i32, i32
  }
  func.func @transform_1(%arg0: i32, %arg1: i32) -> (i32, i32) {
    %c0_i32 = arith.constant 0 : i32
    %c0_i32_0 = arith.constant 0 : i32
    return %c0_i32, %arg1 : i32, i32
  }
  func.func @transform_2(%arg0: i32, %arg1: i32) -> (i32, i32) {
    %c0_i32 = arith.constant 0 : i32
    %c0_i32_0 = arith.constant 0 : i32
    return %c0_i32, %arg1 : i32, i32
  }
  func.func @transform_3(%arg0: i32, %arg1: i32) -> (i32, i32) {
    %c0_i32 = arith.constant 0 : i32
    %c0_i32_0 = arith.constant 0 : i32
    return %arg0, %c0_i32 : i32, i32
  }
  func.func @transform_4(%arg0: i32, %arg1: i32) -> (i32, i32) {
    %c0_i32 = arith.constant 0 : i32
    %c0_i32_0 = arith.constant 0 : i32
    return %arg0, %c0_i32 : i32, i32
  }
  func.func @transform_5(%arg0: i32, %arg1: i32) -> (i32, i32, i32) {
    %c0_i32 = arith.constant 0 : i32
    %c0_i32_0 = arith.constant 0 : i32
    %c0_i32_1 = arith.constant 0 : i32
    return %arg0, %c0_i32, %c0_i32_0 : i32, i32, i32
  }
  func.func @transform_6(%arg0: i32, %arg1: i32) -> (i32, i32) {
    %c0_i32 = arith.constant 0 : i32
    %c0_i32_0 = arith.constant 0 : i32
    %c0_i32_1 = arith.constant 0 : i32
    return %c0_i32, %c0_i32_0 : i32, i32
  }
  func.func @transform_7(%arg0: i32, %arg1: i32) -> (i32, i32) {
    %c0_i32 = arith.constant 0 : i32
    %c0_i32_0 = arith.constant 0 : i32
    %c0_i32_1 = arith.constant 0 : i32
    return %c0_i32, %c0_i32_0 : i32, i32
  }
  func.func @transform_8(%arg0: i32, %arg1: i32) -> (i32, i32) {
    %c0_i32 = arith.constant 0 : i32
    %c0_i32_0 = arith.constant 0 : i32
    %c0_i32_1 = arith.constant 0 : i32
    return %c0_i32, %c0_i32_0 : i32, i32
  }
  func.func @transform_9(%arg0: i32, %arg1: i32) -> (i32, i32) {
    %c0_i32 = arith.constant 0 : i32
    %c0_i32_0 = arith.constant 0 : i32
    %c0_i32_1 = arith.constant 0 : i32
    return %c0_i32, %c0_i32_0 : i32, i32
  }
  func.func @transform_10(%arg0: i32, %arg1: i32) -> (i32, i32) {
    %c0_i32 = arith.constant 0 : i32
    %c0_i32_0 = arith.constant 0 : i32
    %c0_i32_1 = arith.constant 0 : i32
    return %c0_i32, %c0_i32_0 : i32, i32
  }
  func.func @transform_11(%arg0: i32, %arg1: i32) -> (i32, i32) {
    %c0_i32 = arith.constant 0 : i32
    %c0_i32_0 = arith.constant 0 : i32
    %c0_i32_1 = arith.constant 0 : i32
    return %c0_i32, %c0_i32_0 : i32, i32
  }
  func.func @transform_12(%arg0: i32, %arg1: i32) -> (i32, i32) {
    %c0_i32 = arith.constant 0 : i32
    %c0_i32_0 = arith.constant 0 : i32
    %c0_i32_1 = arith.constant 0 : i32
    return %c0_i32, %c0_i32_0 : i32, i32
  }
  func.func @transform_13(%arg0: i32, %arg1: i32) -> (i32, i32) {
    %c0_i32 = arith.constant 0 : i32
    %c0_i32_0 = arith.constant 0 : i32
    %c0_i32_1 = arith.constant 0 : i32
    return %c0_i32, %c0_i32_0 : i32, i32
  }
  func.func @transform_14(%arg0: i32, %arg1: i32) -> (i32, i32) {
    %c0_i32 = arith.constant 0 : i32
    %c0_i32_0 = arith.constant 0 : i32
    return %arg0, %c0_i32 : i32, i32
  }
}

</mosaic_0001>

<bundles_post_ra>
// kernel: _forward_impl.2
= control target key start
LH: loop header
LB: loop body
LE: loop exit
PB: predicated region body
PF: predicated region fallthrough
CT: control target
= control target key end

     0   :  { %vm61_vm0 = vcmask 1042432   ;;  %v416_v0 = vmov 0.0   ;;  %vm417_vm1 = vmmov 0   ;;  %vm57_vm2 = vcmask 48128   ;;  %s544_s2 = inlined_call_operand.vmem [shape: bf16[6,32], index: 2, kind: input, shape index: {}]   ;;  %s545_s1 = inlined_call_operand.vmem [shape: bf16[16,6], index: 1, kind: input, shape index: {}]   ;;  %s546_s0 = inlined_call_operand.vmem [shape: bf16[16,16], index: 0, kind: input, shape index: {}]   ;;  %s547_s3 = inlined_call_operand.vmem [shape: f32[1,32], index: 3, kind: input, shape index: {}]   ;;  %s548_s5 = inlined_call_operand.vmem [shape: bf16[32,32], index: 5, kind: input, shape index: {}]   ;;  %s549_s4 = inlined_call_operand.vmem [shape: f32[1,32], index: 4, kind: input, shape index: {}]   ;;  %s550_s9 = inlined_call_operand.vmem [shape: bf16[16,32], index: 9, kind: output, shape index: {0}]   ;;  %s551_s7 = inlined_call_operand.vmem [shape: bf16[32,32], index: 7, kind: input, shape index: {}]   ;;  %s552_s6 = inlined_call_operand.vmem [shape: f32[1,32], index: 6, kind: input, shape index: {}]   ;;  %s553_s8 = inlined_call_operand.vmem [shape: f32[1,32], index: 8, kind: input, shape index: {}]   ;;  %s554_s10 = inlined_call_operand.vmem [shape: bf16[16,32], index: 10, kind: output, shape index: {1}]  }
   0x1   :  { %380 = vmatprep.subr.bf16.mxu0 %v416_v0  ;;  %v44_v1 = vld [vmem:[%s544_s2] sm:$0x7]  ;;  %382 = vmatprep.mubr.msk.bf16.mxu0 %vm417_vm1, %v416_v0  ;;  %vm39_vm3 = vcmask 261120   ;;  %vm116_vm4 = vcmask 130048   ;;  %v413_v14 = vld [vmem:[%s548_s5 + $0x8] sm:$0xff]   ;;  %vm190_vm5 = vcmask 257024  }
   0x2   :  { %v63_v2 = vsel %vm61_vm0, %v44_v1, 0  ;;  %v410_v3 = vld [vmem:[%s545_s1] sm:$0xff]   ;;  %386 = vmatprep.subr.bf16.mxu1 %v416_v0  ;;  %388 = vmatprep.mubr.msk.bf16.mxu1 %vm417_vm1, %v416_v0  ;;  %40 = vst.msk [vmem:[#allocation2] sm:$0xff] %vm39_vm3, %v416_v0  ;;  %41 = vst.msk [vmem:[#allocation2 + $0x8] sm:$0xff] %vm39_vm3, %v416_v0  ;;  %v415_v34 = vld [vmem:[%s551_s7 + $0x8] sm:$0xff]  }
   0x3   :  { %381 = vmatpush3.bf16.msra.mxu0 %v63_v2  ;;  %v348_v4 = vld [vmem:[%s547_s3] ss:$0 sm:$0xff] }
   0x4   :  { %392 = vmatprep.subr.bf16.mxu0 %v416_v0  ;;  %v411_v12 = vld [vmem:[%s546_s0] sm:$0xff]  }
   0x5   :  { %v412_v13 = vld [vmem:[%s548_s5] sm:$0xff]  }
   0x6   :  { %383 = vmatmul.mubr.msk.bf16.vlgmr.msra.gmra.mrb[0].mxu0 %vm57_vm2, %v410_v3  ;;  %v353_v23 = vld [vmem:[%s549_s4] ss:$0 sm:$0xff] }
   0x7   :  { %396 = vmatprep.mubr.msk.bf16.mxu0 %vm417_vm1, %v416_v0  ;;  %393 = vmatpush3.bf16.msra.mxu0 %v412_v13  ;;  %v414_v33 = vld [vmem:[%s551_s7] sm:$0xff]  }
   0x8   :  { %394 = vmatprep.subr.bf16.mxu0 %v416_v0  ;;  %v356_v35 = vld [vmem:[%s552_s6] ss:$0 sm:$0xff] }
   0x9   :  { %v107_v15 = vld [vmem:[#allocation2] sm:$0xff]  ;;  %v108_v17 = vld [vmem:[#allocation2 + $0x8] sm:$0xff] }
   0xa   :  { %v360_v45 = vld [vmem:[%s553_s8] ss:$0 sm:$0xff] }
   0xb   :  { %395 = vmatpush3.bf16.msra.mxu0 %v413_v14 }
  0xd9   :  { %v99_v5 = vpop.f32.mrb[0].mxu0 }
  0xda   :  { %v384_v6 = vpop.f32.mrb[1].mxu0  ;;  %v100_v8 = vadd.f32 %v348_v4, %v99_v5 }
  0xdb   :  { %v102_v7 = vpop.f32.mrb[2].mxu0 }
  0xdc   :  { %v103_v9 = vadd.f32 %v348_v4, %v102_v7  ;;  %v385_v10 = vpop.f32.mrb[3].mxu0 }
  0xde   :  { %v106_v11 = vpack.c.bf16 %v103_v9, %v100_v8 }
  0xe0   :  { %387 = vmatpush3.bf16.msra.mxu1 %v106_v11 }
  0xe1   :  { %400 = vmatprep.subr.bf16.mxu1 %v416_v0 }
  0xe3   :  { %389 = vmatmul.mubr.msk.bf16.vlgmr.msra.gmra.mrb[0].mxu1 %vm116_vm4, %v411_v12 }
  0xe4   :  { %404 = vmatprep.mubr.msk.bf16.mxu1 %vm417_vm1, %v416_v0  ;;  %401 = vmatpush3.bf16.msra.mxu1 %v414_v33 }
  0xe5   :  { %402 = vmatprep.subr.bf16.mxu1 %v416_v0 }
  0xe8   :  { %403 = vmatpush3.bf16.msra.mxu1 %v415_v34 }
 0x1b6   :  { %v154_v16 = vpop.f32.mrb[0].mxu1 }
 0x1b7   :  { %v161_v18 = vadd.f32 %v154_v16, %v107_v15  ;;  %v390_v19 = vpop.f32.mrb[1].mxu1 }
 0x1b8   :  { %v157_v20 = vpop.f32.mrb[2].mxu1 }
 0x1b9   :  { %164 = vst.msk [vmem:[#allocation2] sm:$0xff] %vm39_vm3, %v161_v18  ;;  %v162_v21 = vadd.f32 %v157_v20, %v108_v17  ;;  %v391_v22 = vpop.f32.mrb[3].mxu1 }
 0x1bb   :  { %165 = vst.msk [vmem:[#allocation2 + $0x8] sm:$0xff] %vm39_vm3, %v162_v21 }
 0x1c0   :  { %v169_v24 = vld [vmem:[#allocation2] sm:$0xff] }
 0x1c1   :  { %v178_v25 = vadd.f32 %v353_v23, %v169_v24 }
 0x1c2   :  { %v170_v26 = vld [vmem:[#allocation2 + $0x8] sm:$0xff] }
 0x1c3   :  { %v179_v27 = vadd.f32 %v353_v23, %v170_v26  ;;  %v180_v28 = vmax.f32 %v178_v25, 0.0 }
 0x1c5   :  { %v181_v29 = vmax.f32 %v179_v27, 0.0  ;;  %v366_v30 = vpack.c.bf16 %v180_v28, %v180_v28 }
 0x1c7   :  { %v182_v31 = vpack.c.bf16 %v181_v29, %v180_v28  ;;  %v367_v32 = vpack.c.bf16 %v181_v29, %v181_v29  ;;  %191 = vst.msk [vmem:[%s550_s9] sm:$0xf] %vm190_vm5, %v366_v30 }
 0x1c9   :  { %397 = vmatmul.mubr.msk.bf16.vlgmr.msra.gmra.mrb[4].mxu0 %vm39_vm3, %v182_v31  ;;  %192 = vst.msk [vmem:[%s550_s9 + $0x4] sm:$0xf] %vm190_vm5, %v367_v32 }
 0x29c   :  { %v253_v36 = vpop.f32.mrb[4].mxu0 }
 0x29d   :  { %v254_v37 = vadd.f32 %v356_v35, %v253_v36  ;;  %v398_v38 = vpop.f32.mrb[5].mxu0 }
 0x29e   :  { %v256_v39 = vpop.f32.mrb[6].mxu0 }
 0x29f   :  { %v257_v40 = vadd.f32 %v356_v35, %v256_v39  ;;  %v399_v41 = vpop.f32.mrb[7].mxu0  ;;  %v260_v42 = vmax.f32 %v254_v37, 0.0 }
 0x2a1   :  { %v261_v43 = vmax.f32 %v257_v40, 0.0 }
 0x2a3   :  { %v262_v44 = vpack.c.bf16 %v261_v43, %v260_v42 }
 0x2a5   :  { %405 = vmatmul.mubr.msk.bf16.vlgmr.msra.gmra.mrb[4].mxu1 %vm39_vm3, %v262_v44 }
 0x378   :  { %v323_v46 = vpop.f32.mrb[4].mxu1 }
 0x379   :  { %v324_v47 = vadd.f32 %v360_v45, %v323_v46  ;;  %v406_v48 = vpop.f32.mrb[5].mxu1 }
 0x37a   :  { %v326_v49 = vpop.f32.mrb[6].mxu1 }
 0x37b   :  { %v368_v50 = vpack.c.bf16 %v324_v47, %v324_v47  ;;  %v327_v51 = vadd.f32 %v360_v45, %v326_v49  ;;  %v407_v52 = vpop.f32.mrb[7].mxu1 }
 0x37d   :  { %338 = vst.msk [vmem:[%s554_s10] sm:$0xf] %vm190_vm5, %v368_v50  ;;  %v369_v53 = vpack.c.bf16 %v327_v51, %v327_v51 }
 0x37f   :  { %339 = vst.msk [vmem:[%s554_s10 + $0x4] sm:$0xf] %vm190_vm5, %v369_v53 }

// kernel: _forward_impl.3
= control target key start
LH: loop header
LB: loop body
LE: loop exit
PB: predicated region body
PF: predicated region fallthrough
CT: control target
= control target key end

     0   :  { %v4488_v0 = vmov 0   ;;  %vm52_vm0 = vcmask 261120   ;;  %vm2721_vm1 = vcmask 7168   ;;  %vm1260_vm5 = vcmask 130048   ;;  %s6334_s3 = inlined_call_operand.vmem [shape: s32[384,1], index: 3, kind: input, shape index: {}]   ;;  %s6335_s1 = inlined_call_operand.vmem [shape: bf16[32,16], index: 1, kind: input, shape index: {}]   ;;  %s6336_s4 = inlined_call_operand.vmem [shape: bf16[384,32], index: 4, kind: input, shape index: {}]   ;;  %s6337_s5 = inlined_call_operand.vmem [shape: f32[16,24,1], index: 5, kind: input, shape index: {}]   ;;  %s6338_s0 = inlined_call_operand.vmem [shape: bf16[16,32], index: 0, kind: input, shape index: {}]   ;;  %s6339_s2 = inlined_call_operand.vmem [shape: s32[1,16], index: 2, kind: input, shape index: {}]   ;;  %s6340_s6 = inlined_call_operand.vmem [shape: bf16[32,32], index: 6, kind: input, shape index: {}]   ;;  %s6341_s8 = inlined_call_operand.vmem [shape: bf16[32,32], index: 8, kind: input, shape index: {}]   ;;  %s6342_s7 = inlined_call_operand.vmem [shape: f32[1,32], index: 7, kind: input, shape index: {}]   ;;  %s6343_s10 = inlined_call_operand.vmem [shape: bf16[32,32], index: 10, kind: input, shape index: {}]   ;;  %s6344_s12 = inlined_call_operand.vmem [shape: bf16[32,4], index: 12, kind: input, shape index: {}]   ;;  %s6345_s9 = inlined_call_operand.vmem [shape: f32[1,32], index: 9, kind: input, shape index: {}]   ;;  %s6346_s11 = inlined_call_operand.vmem [shape: f32[1,32], index: 11, kind: input, shape index: {}]   ;;  %s6347_s13 = inlined_call_operand.vmem [shape: f32[1,4], index: 13, kind: input, shape index: {}]   ;;  %s6348_s14 = inlined_call_operand.vmem [shape: f32[16,4], index: 14, kind: output, shape index: {}]  }
   0x1   :  { %4225 = vset.pattern.permute.xlu1 %v4488_v0  ;;  %4224 = vset.pattern.permute.xlu0 %v4488_v0  ;;  %v633_v1 = vld [vmem:[%s6334_s3 + $0x10] sm:$0xff]  ;;  %v631_v2 = vld [vmem:[%s6334_s3] sm:$0xff]  ;;  %v634_v4 = vld [vmem:[%s6334_s3 + $0x18] sm:$0xff] }
   0x2   :  { %687 = vperm.xlu1 %4225, %v633_v1   ;;  %681 = vperm.xlu0 %4224, %v631_v2   ;;  %v4226_v3 = vld [vmem:[%s6335_s1] sm:$0xff]   ;;  %v632_v5 = vld [vmem:[%s6334_s3 + $0x8] sm:$0xff]  ;;  %v4230_v11 = vld [vmem:[%s6336_s4 + $0x10] sm:$0xff]  }
   0x3   :  { %3999 = vmatprep.subr.bf16.mxu0 %v4226_v3  ;;  %v4227_v6 = vld [vmem:[%s6335_s1 + $0x8] sm:$0xff]   ;;  %v4228_v7 = vld [vmem:[%s6336_s4] sm:$0xff]   ;;  %v638_v12 = vld [vmem:[%s6334_s3 + $0x38] sm:$0xff] }
   0x4   :  { %4000 = vmatpush3.bf16.msra.mxu0 %v4226_v3  ;;  %v636_v8 = vld [vmem:[%s6334_s3 + $0x28] sm:$0xff]  ;;  %v635_v9 = vld [vmem:[%s6334_s3 + $0x20] sm:$0xff]  ;;  %4003 = vmatprep.mubr.msk.bf16.mxu0 %vm52_vm0, %v4228_v7  ;;  %v637_v13 = vld [vmem:[%s6334_s3 + $0x30] sm:$0xff] }
   0x5   :  { %4001 = vmatprep.subr.bf16.mxu0 %v4227_v6  ;;  %v4229_v10 = vld [vmem:[%s6336_s4 + $0x8] sm:$0xff]   ;;  %v639_v15 = vld [vmem:[%s6334_s3 + $0x40] sm:$0xff]  ;;  %v4231_v16 = vld [vmem:[%s6336_s4 + $0x18] sm:$0xff]  }
   0x6   :  { %690 = vperm.xlu1 %4225, %v634_v4   ;;  %684 = vperm.xlu0 %4224, %v632_v5   ;;  %v640_v14 = vld [vmem:[%s6334_s3 + $0x48] sm:$0xff]  ;;  %v4232_v17 = vld [vmem:[%s6336_s4 + $0x20] sm:$0xff]   ;;  %v642_v18 = vld [vmem:[%s6334_s3 + $0x58] sm:$0xff] }
   0x7   :  { %v641_v19 = vld [vmem:[%s6334_s3 + $0x50] sm:$0xff]  ;;  %v644_v20 = vld [vmem:[%s6334_s3 + $0x68] sm:$0xff]  ;;  %v643_v21 = vld [vmem:[%s6334_s3 + $0x60] sm:$0xff] }
   0x8   :  { %4002 = vmatpush3.bf16.msra.mxu0 %v4227_v6  ;;  %v4233_v22 = vld [vmem:[%s6336_s4 + $0x28] sm:$0xff]   ;;  %v4234_v23 = vld [vmem:[%s6336_s4 + $0x30] sm:$0xff]   ;;  %v646_v24 = vld [vmem:[%s6334_s3 + $0x78] sm:$0xff] }
   0x9   :  { %v645_v25 = vld [vmem:[%s6334_s3 + $0x70] sm:$0xff]  ;;  %v648_v26 = vld [vmem:[%s6334_s3 + $0x88] sm:$0xff]  ;;  %v647_v27 = vld [vmem:[%s6334_s3 + $0x80] sm:$0xff] }
   0xa   :  { %696 = vperm.xlu1 %4225, %v636_v8   ;;  %693 = vperm.xlu0 %4224, %v635_v9   ;;  %v4235_v28 = vld [vmem:[%s6336_s4 + $0x38] sm:$0xff]   ;;  %v4236_v29 = vld [vmem:[%s6336_s4 + $0x40] sm:$0xff]   ;;  %v649_v31 = vld [vmem:[%s6334_s3 + $0x90] sm:$0xff] }
   0xb   :  { %4004 = vmatmul.mubr.msk.bf16.vlgmr.msra.gmra.mrb[0].mxu0 %vm52_vm0, %v4229_v10  ;;  %v650_v30 = vld [vmem:[%s6334_s3 + $0x98] sm:$0xff]  ;;  %v652_v32 = vld [vmem:[%s6334_s3 + $0xa8] sm:$0xff]  ;;  %v651_v33 = vld [vmem:[%s6334_s3 + $0xa0] sm:$0xff] }
   0xc   :  { %4007 = vmatprep.mubr.msk.bf16.mxu0 %vm52_vm0, %v4230_v11  ;;  %v4237_v34 = vld [vmem:[%s6336_s4 + $0x48] sm:$0xff]   ;;  %v4238_v35 = vld [vmem:[%s6336_s4 + $0x50] sm:$0xff]   ;;  %v4688_v37 = vld [vmem:[%s6337_s5] sm:$0xff] }
   0xd   :  { %v4683_v36 = vld [vmem:[%s6337_s5 + $0x8] sm:$0xff]  ;;  %v654_v38 = vld [vmem:[%s6334_s3 + $0xb8] sm:$0xff]  ;;  %v653_v39 = vld [vmem:[%s6334_s3 + $0xb0] sm:$0xff]  ;;  %v2722_v41 = vsel %vm2721_vm1, %v4688_v37, 0.0 }
   0xe   :  { %702 = vperm.xlu1 %4225, %v638_v12   ;;  %699 = vperm.xlu0 %4224, %v637_v13   ;;  %v2723_v40 = vsel %vm2721_vm1, %v4683_v36, 0.0  ;;  %v4705_v43 = vld [vmem:[%s6337_s5 + $0x20] sm:$0xff]  ;;  %v4713_v45 = vld [vmem:[%s6337_s5 + $0x18] sm:$0xff]  ;;  %v4718_v46 = vld [vmem:[%s6337_s5 + $0xc8] sm:$0xff] }
   0xf   :  { %v4700_v42 = vadd.f32 %v2723_v40, %v2722_v41  ;;  %v2734_v44 = vsel %vm2721_vm1, %v4705_v43, 0.0  ;;  %v4723_v47 = vld [vmem:[%s6337_s5 + $0xc0] sm:$0xff]  ;;  %v2733_v48 = vsel %vm2721_vm1, %v4713_v45, 0.0  ;;  %v2811_v49 = vsel %vm2721_vm1, %v4718_v46, 0.0  ;;  %v4740_v52 = vld [vmem:[%s6337_s5 + $0xd8] sm:$0xff]  ;;  %v656_v57 = vld [vmem:[%s6334_s3 + $0xc8] sm:$0xff] }
  0x10   :  { %v2810_v50 = vsel %vm2721_vm1, %v4723_v47, 0.0  ;;  %v4735_v51 = vld [vmem:[%s6337_s5 + $0xe0] sm:$0xff]  ;;  %v4742_v53 = vadd.f32 %v2734_v44, %v2733_v48  ;;  %v2821_v56 = vsel %vm2721_vm1, %v4740_v52, 0.0  ;;  %v4239_v60 = vld [vmem:[%s6336_s4 + $0x58] sm:$0xff]   ;;  %v657_v63 = vld [vmem:[%s6334_s3 + $0xd0] sm:$0xff] }
  0x11   :  { %v4744_v54 = vadd.f32 %v2811_v49, %v2810_v50  ;;  %v2822_v55 = vsel %vm2721_vm1, %v4735_v51, 0.0  ;;  %v655_v58 = vld [vmem:[%s6334_s3 + $0xc0] sm:$0xff]  ;;  %v658_v62 = vld [vmem:[%s6334_s3 + $0xd8] sm:$0xff]  ;;  %v660_v0 = vld [vmem:[%s6334_s3 + $0xe8] sm:$0xff] }
  0x12   :  { %708 = vperm.xlu1 %4225, %v640_v14   ;;  %705 = vperm.xlu0 %4224, %v639_v15   ;;  %v4756_v59 = vadd.f32 %v2822_v55, %v2821_v56  ;;  %v4240_v61 = vld [vmem:[%s6336_s4 + $0x60] sm:$0xff]   ;;  %v4241_v2 = vld [vmem:[%s6336_s4 + $0x68] sm:$0xff]   ;;  %v4242_v3 = vld [vmem:[%s6336_s4 + $0x70] sm:$0xff]  }
  0x13   :  { %4008 = vmatmul.mubr.msk.bf16.gmra.mrb[4].mxu0 %vm52_vm0, %v4231_v16  ;;  %v659_v1 = vld [vmem:[%s6334_s3 + $0xe0] sm:$0xff]  ;;  %v662_v4 = vld [vmem:[%s6334_s3 + $0xf8] sm:$0xff]  ;;  %v661_v5 = vld [vmem:[%s6334_s3 + $0xf0] sm:$0xff] }
  0x14   :  { %4011 = vmatprep.mubr.msk.bf16.mxu0 %vm52_vm0, %v4232_v17  ;;  %v664_v6 = vld [vmem:[%s6334_s3 + $0x108] sm:$0xff]  ;;  %v663_v7 = vld [vmem:[%s6334_s3 + $0x100] sm:$0xff]  ;;  %v4243_v8 = vld [vmem:[%s6336_s4 + $0x78] sm:$0xff]  }
  0x15   :  { %v4244_v9 = vld [vmem:[%s6336_s4 + $0x80] sm:$0xff]   ;;  %v666_v10 = vld [vmem:[%s6334_s3 + $0x118] sm:$0xff]  ;;  %v665_v11 = vld [vmem:[%s6334_s3 + $0x110] sm:$0xff] }
  0x16   :  { %714 = vperm.xlu1 %4225, %v642_v18   ;;  %711 = vperm.xlu0 %4224, %v641_v19   ;;  %v668_v12 = vld [vmem:[%s6334_s3 + $0x128] sm:$0xff]  ;;  %v667_v13 = vld [vmem:[%s6334_s3 + $0x120] sm:$0xff]  ;;  %v4246_v15 = vld [vmem:[%s6336_s4 + $0x90] sm:$0xff]  }
  0x17   :  { %v4245_v14 = vld [vmem:[%s6336_s4 + $0x88] sm:$0xff]   ;;  %v670_v16 = vld [vmem:[%s6334_s3 + $0x138] sm:$0xff]  ;;  %v669_v17 = vld [vmem:[%s6334_s3 + $0x130] sm:$0xff] }
  0x18   :  { %v672_v18 = vld [vmem:[%s6334_s3 + $0x148] sm:$0xff]  ;;  %v671_v19 = vld [vmem:[%s6334_s3 + $0x140] sm:$0xff]  ;;  %v2699_v40 = vld [vmem:[%s6337_s5 + $0xd0] sm:$0xff] }
  0x19   :  { %v2707_v41 = vld [vmem:[%s6337_s5 + $0x110] sm:$0xff]  ;;  %v4929_v44 = vld [vmem:[%s6337_s5 + $0x60] sm:$0xff]  ;;  %v4947_v48 = vld [vmem:[%s6337_s5 + $0x128] sm:$0xff] }
  0x1a   :  { %720 = vperm.xlu1 %4225, %v644_v20   ;;  %717 = vperm.xlu0 %4224, %v643_v21   ;;  %v4247_v20 = vld [vmem:[%s6336_s4 + $0x98] sm:$0xff]   ;;  %v4248_v21 = vld [vmem:[%s6336_s4 + $0xa0] sm:$0xff]  }
  0x1b   :  { %4012 = vmatmul.mubr.msk.bf16.gmra.mrb[8].mxu0 %vm52_vm0, %v4233_v22  ;;  %v674_v22 = vld [vmem:[%s6334_s3 + $0x158] sm:$0xff]  ;;  %v4952_v49 = vld [vmem:[%s6337_s5 + $0x120] sm:$0xff] }
  0x1c   :  { %4015 = vmatprep.mubr.msk.bf16.mxu0 %vm52_vm0, %v4234_v23  ;;  %v673_v23 = vld [vmem:[%s6334_s3 + $0x150] sm:$0xff]  ;;  %v4959_v50 = vld [vmem:[%s6337_s5 + $0x78] sm:$0xff]  ;;  %v4972_v56 = vld [vmem:[%s6337_s5 + $0x80] sm:$0xff] }
  0x1d   :  { %v2708_v55 = vld [vmem:[%s6337_s5 + $0x118] sm:$0xff] }
  0x1e   :  { %726 = vperm.xlu1 %4225, %v646_v24   ;;  %723 = vperm.xlu0 %4224, %v645_v25   ;;  %v676_v24 = vld [vmem:[%s6334_s3 + $0x168] sm:$0xff]  ;;  %v675_v25 = vld [vmem:[%s6334_s3 + $0x160] sm:$0xff] }
  0x22   :  { %732 = vperm.xlu1 %4225, %v648_v26   ;;  %729 = vperm.xlu0 %4224, %v647_v27   ;;  %v4249_v26 = vld [vmem:[%s6336_s4 + $0xa8] sm:$0xff]   ;;  %v4250_v27 = vld [vmem:[%s6336_s4 + $0xb0] sm:$0xff]  }
  0x23   :  { %4016 = vmatmul.mubr.msk.bf16.gmra.mrb[12].mxu0 %vm52_vm0, %v4235_v28  ;;  %v678_v28 = vld [vmem:[%s6334_s3 + $0x178] sm:$0xff] }
  0x24   :  { %4019 = vmatprep.mubr.msk.bf16.mxu0 %vm52_vm0, %v4236_v29  ;;  %v677_v29 = vld [vmem:[%s6334_s3 + $0x170] sm:$0xff] }
  0x26   :  { %738 = vperm.xlu1 %4225, %v650_v30   ;;  %735 = vperm.xlu0 %4224, %v649_v31   ;;  %v4251_v30 = vld [vmem:[%s6336_s4 + $0xb8] sm:$0xff]  }
  0x27   :  { %v2680_v31 = vld [vmem:[%s6337_s5 + $0x38] sm:$0xff] }
  0x2a   :  { %744 = vperm.xlu1 %4225, %v652_v32   ;;  %741 = vperm.xlu0 %4224, %v651_v33   ;;  %v2679_v32 = vld [vmem:[%s6337_s5 + $0x30] sm:$0xff]  ;;  %v2704_v33 = vld [vmem:[%s6337_s5 + $0xf8] sm:$0xff] }
  0x2b   :  { %4020 = vmatmul.mubr.msk.bf16.gmra.mrb[16].mxu0 %vm52_vm0, %v4237_v34  ;;  %v2703_v34 = vld [vmem:[%s6337_s5 + $0xf0] sm:$0xff] }
  0x2c   :  { %4023 = vmatprep.mubr.msk.bf16.mxu0 %vm52_vm0, %v4238_v35  ;;  %v2678_v35 = vld [vmem:[%s6337_s5 + $0x28] sm:$0xff] }
  0x2e   :  { %750 = vperm.xlu1 %4225, %v654_v38   ;;  %747 = vperm.xlu0 %4224, %v653_v39   ;;  %v4910_v38 = vld [vmem:[%s6337_s5 + $0x48] sm:$0xff] }
  0x2f   :  { %v2702_v39 = vld [vmem:[%s6337_s5 + $0xe8] sm:$0xff] }
  0x32   :  { %756 = vperm.xlu1 %4225, %v656_v57   ;;  %753 = vperm.xlu0 %4224, %v655_v58   ;;  %v2745_v58 = vsel %vm2721_vm1, %v2680_v31, 0.0 }
  0x33   :  { %4024 = vmatmul.mubr.msk.bf16.gmra.mrb[20].mxu0 %vm52_vm0, %v4239_v60  ;;  %v2744_v60 = vsel %vm2721_vm1, %v2679_v32, 0.0 }
  0x34   :  { %4027 = vmatprep.mubr.msk.bf16.mxu0 %vm52_vm0, %v4240_v61  ;;  %v2813_v61 = vsel %vm2721_vm1, %v2699_v40, 0.0 }
  0x36   :  { %762 = vperm.xlu1 %4225, %v658_v62   ;;  %759 = vperm.xlu0 %4224, %v657_v63   ;;  %v4982_v62 = vld [vmem:[%s6337_s5 + $0x140] sm:$0xff]  ;;  %v4987_v63 = vld [vmem:[%s6337_s5 + $0x138] sm:$0xff] }
  0x3a   :  { %768 = vperm.xlu1 %4225, %v660_v0   ;;  %765 = vperm.xlu0 %4224, %v659_v1   ;;  %v2746_v0 = vadd.f32 %v2745_v58, %v2744_v60  ;;  %v2865_v58 = vsel %vm2721_vm1, %v4987_v63, 0.0 }
  0x3b   :  { %4028 = vmatmul.mubr.msk.bf16.gmra.mrb[24].mxu0 %vm52_vm0, %v4241_v2 }
  0x3c   :  { %4031 = vmatprep.mubr.msk.bf16.mxu0 %vm52_vm0, %v4242_v3  ;;  %v2814_v3 = vadd.f32 %v2813_v61, %v4744_v54  ;;  %v2687_v54 = vld [vmem:[%s6337_s5 + $0x70] sm:$0xff] }
  0x3e   :  { %774 = vperm.xlu1 %4225, %v662_v4   ;;  %771 = vperm.xlu0 %4224, %v661_v5   ;;  %v2833_v4 = vsel %vm2721_vm1, %v2704_v33, 0.0  ;;  %v2832_v5 = vsel %vm2721_vm1, %v2703_v34, 0.0 }
  0x42   :  { %780 = vperm.xlu1 %4225, %v664_v6   ;;  %777 = vperm.xlu0 %4224, %v663_v7  }
  0x43   :  { %4032 = vmatmul.mubr.msk.bf16.gmra.mrb[28].mxu0 %vm52_vm0, %v4243_v8  ;;  %v5001_v8 = vld [vmem:[%s6337_s5 + $0x90] sm:$0xff] }
  0x44   :  { %4035 = vmatprep.mubr.msk.bf16.mxu0 %vm52_vm0, %v4244_v9 }
  0x46   :  { %786 = vperm.xlu1 %4225, %v666_v10   ;;  %783 = vperm.xlu0 %4224, %v665_v11   ;;  %v2834_v10 = vadd.f32 %v2833_v4, %v2832_v5  ;;  %v2788_v5 = vsel %vm2721_vm1, %v5001_v8, 0.0 }
  0x4a   :  { %792 = vperm.xlu1 %4225, %v668_v12   ;;  %789 = vperm.xlu0 %4224, %v667_v13   ;;  %v2815_v12 = vrot.slane %v2814_v3, 4 }
  0x4b   :  { %4036 = vmatmul.mubr.msk.bf16.gmra.mrb[32].mxu0 %vm52_vm0, %v4245_v14 }
  0x4c   :  { %4039 = vmatprep.mubr.msk.bf16.mxu0 %vm52_vm0, %v4246_v15  ;;  %v2711_v15 = vld [vmem:[%s6337_s5 + $0x130] sm:$0xff] }
  0x4d   :  { %v2857_v60 = vsel %vm2721_vm1, %v2711_v15, 0.0 }
  0x4e   :  { %798 = vperm.xlu1 %4225, %v670_v16   ;;  %795 = vperm.xlu0 %4224, %v669_v17   ;;  %v2692_v16 = vld [vmem:[%s6337_s5 + $0x98] sm:$0xff]  ;;  %v2755_v17 = vsel %vm2721_vm1, %v4910_v38, 0.0 }
  0x52   :  { %804 = vperm.xlu1 %4225, %v672_v18   ;;  %801 = vperm.xlu0 %4224, %v671_v19   ;;  %v2844_v18 = vsel %vm2721_vm1, %v2707_v41, 0.0 }
  0x53   :  { %4040 = vmatmul.mubr.msk.bf16.gmra.mrb[36].mxu0 %vm52_vm0, %v4247_v20 }
  0x54   :  { %4043 = vmatprep.mubr.msk.bf16.mxu0 %vm52_vm0, %v4248_v21 }
  0x56   :  { %810 = vperm.xlu1 %4225, %v674_v22   ;;  %807 = vperm.xlu0 %4224, %v673_v23   ;;  %v2816_v22 = vadd.f32 %v2815_v12, %v2814_v3 }
  0x5a   :  { %816 = vperm.xlu1 %4225, %v676_v24   ;;  %813 = vperm.xlu0 %4224, %v675_v25  }
  0x5b   :  { %4044 = vmatmul.mubr.msk.bf16.gmra.mrb[40].mxu0 %vm52_vm0, %v4249_v26 }
  0x5c   :  { %4047 = vmatprep.mubr.msk.bf16.mxu0 %vm52_vm0, %v4250_v27 }
  0x5e   :  { %822 = vperm.xlu1 %4225, %v678_v28   ;;  %819 = vperm.xlu0 %4224, %v677_v29   ;;  %v2716_v28 = vld [vmem:[%s6337_s5 + $0x158] sm:$0xff]  ;;  %v2715_v29 = vld [vmem:[%s6337_s5 + $0x150] sm:$0xff] }
  0x62   :  { %2921 = vperm.xlu1 %4225, %v4683_v36   ;;  %2916 = vperm.xlu0 %4224, %v4688_v37   ;;  %v2675_v36 = vld [vmem:[%s6337_s5 + $0x10] sm:$0xff] }
  0x63   :  { %4048 = vmatmul.mubr.msk.bf16.gmra.mrb[44].mxu0 %vm52_vm0, %v4251_v30  ;;  %v4905_v37 = vld [vmem:[%s6337_s5 + $0x50] sm:$0xff]  ;;  %v2725_v1 = vsel %vm2721_vm1, %v2675_v36, 0.0  ;;  %v2766_v30 = vsel %vm2721_vm1, %v4929_v44, 0.0 }
  0x64   :  { %v2726_v9 = vadd.f32 %v2725_v1, %v4700_v42  ;;  %v2756_v42 = vsel %vm2721_vm1, %v4905_v37, 0.0 }
  0x65   :  { %v2757_v26 = vadd.f32 %v2756_v42, %v2755_v17 }
  0x66   :  { %2936 = vperm.xlu1 %4225, %v4705_v43   ;;  %2931 = vperm.xlu0 %4224, %v4713_v45   ;;  %v2706_v43 = vld [vmem:[%s6337_s5 + $0x108] sm:$0xff]  ;;  %v2681_v45 = vld [vmem:[%s6337_s5 + $0x40] sm:$0xff]  ;;  %v2727_v20 = vrot.slane %v2726_v9, 4 }
  0x67   :  { %v2747_v7 = vsel %vm2721_vm1, %v2681_v45, 0.0  ;;  %v2843_v19 = vsel %vm2721_vm1, %v2706_v43, 0.0 }
  0x68   :  { %v2748_v13 = vadd.f32 %v2747_v7, %v2746_v0  ;;  %v2845_v27 = vadd.f32 %v2844_v18, %v2843_v19  ;;  %v2789_v7 = vsel %vm2721_vm1, %v2692_v16, 0.0  ;;  %v2718_v18 = vld [vmem:[%s6337_s5 + $0x168] sm:$0xff] }
  0x69   :  { %v2790_v17 = vadd.f32 %v2789_v7, %v2788_v5 }
  0x6a   :  { %3041 = vperm.xlu1 %4225, %v4718_v46   ;;  %3036 = vperm.xlu0 %4224, %v4723_v47   ;;  %v2705_v46 = vld [vmem:[%s6337_s5 + $0x100] sm:$0xff]  ;;  %v4941_v47 = vld [vmem:[%s6337_s5 + $0x68] sm:$0xff]  ;;  %v2749_v23 = vrot.slane %v2748_v13, 4 }
  0x6b   :  { %v2835_v14 = vsel %vm2721_vm1, %v2705_v46, 0.0 }
  0x6c   :  { %v2836_v24 = vadd.f32 %v2835_v14, %v2834_v10 }
  0x6e   :  { %3056 = vperm.xlu1 %4225, %v4735_v51   ;;  %3051 = vperm.xlu0 %4224, %v4740_v52   ;;  %v2684_v51 = vld [vmem:[%s6337_s5 + $0x58] sm:$0xff]  ;;  %v2824_v52 = vsel %vm2721_vm1, %v2702_v39, 0.0 }
  0x6f   :  { %v2825_v57 = vadd.f32 %v2824_v52, %v4756_v59  ;;  %v2736_v59 = vsel %vm2721_vm1, %v2678_v35, 0.0  ;;  %v2769_v52 = vsel %vm2721_vm1, %v2687_v54, 0.0 }
  0x70   :  { %v2737_v6 = vadd.f32 %v2736_v59, %v4742_v53 }
  0x71   :  { %v2826_v2 = vrot.slane %v2825_v57, 4 }
  0x72   :  { %2951 = vperm.xlu1 %4225, %v2680_v31   ;;  %2946 = vperm.xlu0 %4224, %v2679_v32   ;;  %v2738_v53 = vrot.slane %v2737_v6, 4  ;;  %v2767_v31 = vsel %vm2721_vm1, %v4941_v47, 0.0  ;;  %v2758_v32 = vsel %vm2721_vm1, %v2684_v51, 0.0 }
  0x73   :  { %v2827_v11 = vadd.f32 %v2826_v2, %v2825_v57  ;;  %v2866_v57 = vsel %vm2721_vm1, %v4982_v62, 0.0 }
  0x74   :  { %v2739_v25 = vadd.f32 %v2738_v53, %v2737_v6  ;;  %v2867_v4 = vadd.f32 %v2866_v57, %v2865_v58 }
  0x75   :  { %v2828_v21 = vrot.slane %v2827_v11, 2 }
  0x76   :  { %3071 = vperm.xlu1 %4225, %v2704_v33   ;;  %3066 = vperm.xlu0 %4224, %v2703_v34   ;;  %v2846_v33 = vsel %vm2721_vm1, %v2708_v55, 0.0  ;;  %v2728_v34 = vadd.f32 %v2727_v20, %v2726_v9  ;;  %v2876_v9 = vsel %vm2721_vm1, %v2715_v29, 0.0 }
  0x7a   :  { %2941 = vperm.xlu1 %4225, %v2678_v35   ;;  %2926 = vperm.xlu0 %4224, %v2675_v36   ;;  %v2855_v35 = vsel %vm2721_vm1, %v4947_v48, 0.0  ;;  %v2854_v36 = vsel %vm2721_vm1, %v4952_v49, 0.0 }
  0x7e   :  { %2966 = vperm.xlu1 %4225, %v4905_v37   ;;  %2961 = vperm.xlu0 %4224, %v4910_v38   ;;  %v5037_v37 = vadd.f32 %v2828_v21, %v2827_v11  ;;  %v2817_v38 = vrot.slane %v2816_v22, 2 }
  0x80   :  { %v2830_v61 = vrot.slane %v5037_v37, 1  ;;  %v5058_v59 = vadd.f32 %v2817_v38, %v2816_v22 }
  0x82   :  { %3061 = vperm.xlu1 %4225, %v2702_v39   ;;  %3046 = vperm.xlu0 %4224, %v2699_v40   ;;  %v5039_v39 = vadd.f32 %v2749_v23, %v2748_v13  ;;  %v2837_v40 = vrot.slane %v2836_v24, 4  ;;  %v2819_v12 = vrot.slane %v5058_v59, 1 }
  0x84   :  { %v2838_v0 = vadd.f32 %v2837_v40, %v2836_v24 }
  0x86   :  { %3086 = vperm.xlu1 %4225, %v2707_v41   ;;  %3081 = vperm.xlu0 %4224, %v2706_v43   ;;  %v2740_v41 = vrot.slane %v2739_v25, 2  ;;  %v2768_v43 = vadd.f32 %v2767_v31, %v2766_v30  ;;  %v2839_v13 = vrot.slane %v2838_v0, 2 }
  0x88   :  { %v2770_v3 = vadd.f32 %v2769_v52, %v2768_v43  ;;  %v2741_v53 = vadd.f32 %v2740_v41, %v2739_v25 }
  0x8a   :  { %2976 = vperm.xlu1 %4225, %v4929_v44   ;;  %2956 = vperm.xlu0 %4224, %v2681_v45   ;;  %v2759_v44 = vadd.f32 %v2758_v32, %v2757_v26  ;;  %v2847_v45 = vadd.f32 %v2846_v33, %v2845_v27  ;;  %v2771_v42 = vrot.slane %v2770_v3, 4  ;;  %v2887_v26 = vsel %vm2721_vm1, %v2718_v18, 0.0  ;;  %v2717_v27 = vld [vmem:[%s6337_s5 + $0x160] sm:$0xff] }
  0x8b   :  { %v2742_v31 = vrot.slane %v2741_v53, 1 }
  0x8c   :  { %v2848_v1 = vrot.slane %v2847_v45, 4  ;;  %v2772_v38 = vadd.f32 %v2771_v42, %v2770_v3 }
  0x8d   :  { %v2743_v57 = vadd.f32 %v2742_v31, %v2741_v53 }
  0x8e   :  { %3076 = vperm.xlu1 %4225, %v2705_v46   ;;  %2981 = vperm.xlu0 %4224, %v4941_v47   ;;  %v2694_v46 = vld [vmem:[%s6337_s5 + $0xa8] sm:$0xff] }
  0x8f   :  { %v2690_v47 = vld [vmem:[%s6337_s5 + $0x88] sm:$0xff]  ;;  %v2799_v23 = vsel %vm2721_vm1, %v2694_v46, 0.0  ;;  %v2899_v7 = vmax.f32 %v2743_v57, 1.0 }
  0x90   :  { %v2780_v10 = vsel %vm2721_vm1, %v2690_v47, 0.0 }
  0x92   :  { %3101 = vperm.xlu1 %4225, %v4947_v48   ;;  %3096 = vperm.xlu0 %4224, %v4952_v49   ;;  %v2856_v48 = vadd.f32 %v2855_v35, %v2854_v36  ;;  %v2777_v49 = vsel %vm2721_vm1, %v4959_v50, 0.0 }
  0x94   :  { %v2858_v6 = vadd.f32 %v2857_v60, %v2856_v48  ;;  %v2720_v48 = vld [vmem:[%s6337_s5 + $0x178] sm:$0xff] }
  0x95   :  { %v2890_v52 = vsel %vm2721_vm1, %v2720_v48, 0.0 }
  0x96   :  { %2991 = vperm.xlu1 %4225, %v4959_v50   ;;  %2971 = vperm.xlu0 %4224, %v2684_v51   ;;  %v2778_v51 = vsel %vm2721_vm1, %v4972_v56, 0.0  ;;  %v2751_v50 = vrot.slane %v5039_v39, 2  ;;  %v2859_v19 = vrot.slane %v2858_v6, 4 }
  0x97   :  { %v2779_v2 = vadd.f32 %v2778_v51, %v2777_v49  ;;  %v2696_v49 = vld [vmem:[%s6337_s5 + $0xb8] sm:$0xff]  ;;  %v5102_v51 = vpop.permute.xlu0 %681 }
  0x98   :  { %v2752_v33 = vadd.f32 %v2751_v50, %v5039_v39  ;;  %v2860_v40 = vadd.f32 %v2859_v19, %v2858_v6  ;;  %v5100_v39 = vpop.permute.xlu1 %687 }
  0x99   :  { %v2781_v21 = vadd.f32 %v2780_v10, %v2779_v2  ;;  %v2820_v10 = vadd.f32 %v2819_v12, %v5058_v59 }
  0x9a   :  { %3091 = vperm.xlu1 %4225, %v2708_v55   ;;  %2996 = vperm.xlu0 %4224, %v4972_v56   ;;  %v2729_v55 = vrot.slane %v2728_v34, 2  ;;  %v2760_v56 = vrot.slane %v2759_v44, 4  ;;  %v2753_v60 = vrot.slane %v2752_v33, 1  ;;  %v2861_v2 = vrot.slane %v2860_v40, 2 }
  0x9b   :  { %v2782_v41 = vrot.slane %v2781_v21, 4 }
  0x9c   :  { %v2730_v14 = vadd.f32 %v2729_v55, %v2728_v34  ;;  %v2840_v34 = vadd.f32 %v2839_v13, %v2838_v0  ;;  %v2802_v55 = vsel %vm2721_vm1, %v2696_v49, 0.0  ;;  %v5112_v53 = vpop.permute.xlu1 %690  ;;  %v2754_v59 = vadd.f32 %v2753_v60, %v2752_v33 }
  0x9d   :  { %v2783_v3 = vadd.f32 %v2782_v41, %v2781_v21 }
  0x9e   :  { %3116 = vperm.xlu1 %4225, %v4982_v62   ;;  %3111 = vperm.xlu0 %4224, %v4987_v63   ;;  %v2714_v62 = vld [vmem:[%s6337_s5 + $0x148] sm:$0xff]  ;;  %v2695_v63 = vld [vmem:[%s6337_s5 + $0xb0] sm:$0xff]  ;;  %v2731_v32 = vrot.slane %v2730_v14, 1  ;;  %v2841_v50 = vrot.slane %v2840_v34, 1 }
  0x9f   :  { %v2868_v11 = vsel %vm2721_vm1, %v2714_v62, 0.0  ;;  %v2800_v24 = vsel %vm2721_vm1, %v2695_v63, 0.0  ;;  %v2784_v42 = vrot.slane %v2783_v3, 2 }
  0xa0   :  { %v2869_v22 = vadd.f32 %v2868_v11, %v2867_v4  ;;  %v2732_v58 = vadd.f32 %v2731_v32, %v2730_v14  ;;  %v5114_v14 = vpop.permute.xlu0 %684  ;;  %v2842_v21 = vadd.f32 %v2841_v50, %v2840_v34  ;;  %v2900_v32 = vmax.f32 %v2754_v59, 1.0 }
  0xa2   :  { %3006 = vperm.xlu1 %4225, %v5001_v8   ;;  %2986 = vperm.xlu0 %4224, %v2687_v54   ;;  %v2877_v54 = vsel %vm2721_vm1, %v2716_v28, 0.0  ;;  %v2849_v8 = vadd.f32 %v2848_v1, %v2847_v45  ;;  %v2870_v43 = vrot.slane %v2869_v22, 4  ;;  %v2773_v1 = vrot.slane %v2772_v38, 2 }
  0xa3   :  { %v2878_v20 = vadd.f32 %v2877_v54, %v2876_v9  ;;  %v2898_v54 = vmax.f32 %v2732_v58, 1.0  ;;  %v2831_v9 = vadd.f32 %v2830_v61, %v5037_v37  ;;  %v2906_v61 = vmax.f32 %v2820_v10, 1.0 }
  0xa4   :  { %v2850_v36 = vrot.slane %v2849_v8, 2  ;;  %v2908_v31 = vmax.f32 %v2842_v21, 1.0 }
  0xa5   :  { %v2907_v37 = vmax.f32 %v2831_v9, 1.0 }
  0xa6   :  { %3106 = vperm.xlu1 %4225, %v2711_v15   ;;  %3011 = vperm.xlu0 %4224, %v2692_v16   ;;  %v2761_v15 = vadd.f32 %v2760_v56, %v2759_v44  ;;  %v2719_v16 = vld [vmem:[%s6337_s5 + $0x170] sm:$0xff]  ;;  %v2801_v44 = vadd.f32 %v2800_v24, %v2799_v23  ;;  %v2851_v56 = vadd.f32 %v2850_v36, %v2849_v8 }
  0xa7   :  { %v2888_v25 = vsel %vm2721_vm1, %v2719_v16, 0.0  ;;  %v2862_v8 = vadd.f32 %v2861_v2, %v2860_v40  ;;  %v2785_v23 = vadd.f32 %v2784_v42, %v2783_v3 }
  0xa8   :  { %v2762_v35 = vrot.slane %v2761_v15, 2  ;;  %v2889_v45 = vadd.f32 %v2888_v25, %v2887_v26  ;;  %v2803_v6 = vadd.f32 %v2802_v55, %v2801_v44  ;;  %v2852_v13 = vrot.slane %v2851_v56, 1 }
  0xa9   :  { %v2786_v34 = vrot.slane %v2785_v23, 1 }
  0xaa   :  { %3131 = vperm.xlu1 %4225, %v2716_v28   ;;  %3126 = vperm.xlu0 %4224, %v2715_v29   ;;  %v2693_v28 = vld [vmem:[%s6337_s5 + $0xa0] sm:$0xff]  ;;  %v2879_v29 = vsel %vm2721_vm1, %v2717_v27, 0.0  ;;  %v2763_v0 = vadd.f32 %v2762_v35, %v2761_v15  ;;  %v2891_v5 = vadd.f32 %v2890_v52, %v2889_v45  ;;  %v2774_v15 = vadd.f32 %v2773_v1, %v2772_v38 }
  0xab   :  { %v2791_v30 = vsel %vm2721_vm1, %v2693_v28, 0.0  ;;  %v2853_v35 = vadd.f32 %v2852_v13, %v2851_v56  ;;  %v2787_v56 = vadd.f32 %v2786_v34, %v2785_v23 }
  0xac   :  { %v2764_v11 = vrot.slane %v2763_v0, 1  ;;  %v2892_v19 = vrot.slane %v2891_v5, 4  ;;  %v2775_v12 = vrot.slane %v2774_v15, 1 }
  0xad   :  { %v2909_v44 = vmax.f32 %v2853_v35, 1.0 }
  0xae   :  { %3021 = vperm.xlu1 %4225, %v2694_v46   ;;  %3001 = vperm.xlu0 %4224, %v2690_v47   ;;  %v2880_v46 = vadd.f32 %v2879_v29, %v2878_v20  ;;  %v2792_v47 = vadd.f32 %v2791_v30, %v2790_v17  ;;  %v2804_v20 = vrot.slane %v2803_v6, 4  ;;  %v5116_v29 = vpop.permute.xlu1 %696  ;;  %v5118_v30 = vpop.permute.xlu0 %693  ;;  %v2765_v36 = vadd.f32 %v2764_v11, %v2763_v0 }
  0xb0   :  { %v2793_v4 = vrot.slane %v2792_v47, 4  ;;  %v2901_v45 = vmax.f32 %v2765_v36, 1.0 }
  0xb2   :  { %3121 = vperm.xlu1 %4225, %v2714_v62   ;;  %3026 = vperm.xlu0 %4224, %v2695_v63   ;;  %v2871_v62 = vadd.f32 %v2870_v43, %v2869_v22  ;;  %v2881_v63 = vrot.slane %v2880_v46, 4  ;;  %v2863_v22 = vrot.slane %v2862_v8, 1 }
  0xb4   :  { %v2872_v17 = vrot.slane %v2871_v62, 2 }
  0xb6   :  { %3146 = vperm.xlu1 %4225, %v2719_v16   ;;  %3141 = vperm.xlu0 %4224, %v2718_v18   ;;  %v2882_v16 = vadd.f32 %v2881_v63, %v2880_v46  ;;  %v2794_v18 = vadd.f32 %v2793_v4, %v2792_v47  ;;  %v2873_v24 = vadd.f32 %v2872_v17, %v2871_v62  ;;  %v2903_v4 = vmax.f32 %v2787_v56, 1.0 }
  0xb7   :  { %v2864_v46 = vadd.f32 %v2863_v22, %v2862_v8  ;;  %v2776_v47 = vadd.f32 %v2775_v12, %v2774_v15 }
  0xb8   :  { %v2883_v25 = vrot.slane %v2882_v16, 2  ;;  %v2795_v26 = vrot.slane %v2794_v18, 2  ;;  %v2874_v33 = vrot.slane %v2873_v24, 1 }
  0xb9   :  { %v2910_v60 = vmax.f32 %v2864_v46, 1.0  ;;  %v2902_v50 = vmax.f32 %v2776_v47, 1.0 }
  0xba   :  { %3136 = vperm.xlu1 %4225, %v2717_v27   ;;  %3016 = vperm.xlu0 %4224, %v2693_v28   ;;  %v2893_v27 = vadd.f32 %v2892_v19, %v2891_v5  ;;  %v2805_v28 = vadd.f32 %v2804_v20, %v2803_v6  ;;  %v2884_v38 = vadd.f32 %v2883_v25, %v2882_v16  ;;  %v4252_v19 = vld [vmem:[%s6338_s0] sm:$0xff]  }
  0xbb   :  { %v2796_v40 = vadd.f32 %v2795_v26, %v2794_v18  ;;  %v2875_v0 = vadd.f32 %v2874_v33, %v2873_v24  ;;  %4051 = vmatprep.subr.bf16.mxu1 %v4252_v19 }
  0xbc   :  { %v2894_v41 = vrot.slane %v2893_v27, 2  ;;  %v2806_v43 = vrot.slane %v2805_v28, 2  ;;  %v2885_v52 = vrot.slane %v2884_v38, 1  ;;  %4052 = vmatpush3.bf16.msra.mxu1 %v4252_v19 }
  0xbd   :  { %v2797_v55 = vrot.slane %v2796_v40, 1  ;;  %v2911_v63 = vmax.f32 %v2875_v0, 1.0 }
  0xbe   :  { %3151 = vperm.xlu1 %4225, %v2720_v48   ;;  %3031 = vperm.xlu0 %4224, %v2696_v49   ;;  %v5120_v48 = vpop.permute.xlu1 %702  ;;  %v5122_v49 = vpop.permute.xlu0 %699  ;;  %v2895_v57 = vadd.f32 %v2894_v41, %v2893_v27  ;;  %v2807_v58 = vadd.f32 %v2806_v43, %v2805_v28  ;;  %v2886_v5 = vadd.f32 %v2885_v52, %v2884_v38 }
  0xbf   :  { %v2798_v6 = vadd.f32 %v2797_v55, %v2796_v40 }
  0xc0   :  { %v2896_v1 = vrot.slane %v2895_v57, 1  ;;  %v2808_v2 = vrot.slane %v2807_v58, 1 }
  0xc2   :  { %3385 = vperm.xlu1 %4225, %v2899_v7   ;;  %3380 = vperm.xlu0 %4224, %v2898_v54   ;;  %v5124_v3 = vpop.permute.xlu1 %708  ;;  %v5126_v62 = vpop.permute.xlu0 %705  ;;  %v2912_v7 = vmax.f32 %v2886_v5, 1.0  ;;  %v2904_v54 = vmax.f32 %v2798_v6, 1.0  ;;  %v2897_v9 = vadd.f32 %v2896_v1, %v2895_v57  ;;  %v2809_v10 = vadd.f32 %v2808_v2, %v2807_v58 }
  0xc4   :  { %v2913_v15 = vmax.f32 %v2897_v9, 1.0  ;;  %v2905_v8 = vmax.f32 %v2809_v10, 1.0 }
  0xc6   :  { %3425 = vperm.xlu1 %4225, %v2907_v37   ;;  %3420 = vperm.xlu0 %4224, %v2906_v61   ;;  %v5128_v11 = vpop.permute.xlu1 %714  ;;  %v5130_v13 = vpop.permute.xlu0 %711 }
  0xca   :  { %3430 = vperm.xlu1 %4225, %v2908_v31   ;;  %3390 = vperm.xlu0 %4224, %v2900_v32   ;;  %v5132_v42 = vpop.permute.xlu1 %720  ;;  %v5134_v17 = vpop.permute.xlu0 %717 }
  0xce   :  { %3435 = vperm.xlu1 %4225, %v2909_v44   ;;  %3395 = vperm.xlu0 %4224, %v2901_v45  }
  0xd2   :  { %3440 = vperm.xlu1 %4225, %v2910_v60   ;;  %3400 = vperm.xlu0 %4224, %v2902_v50  }
  0xd6   :  { %3445 = vperm.xlu1 %4225, %v2911_v63   ;;  %3405 = vperm.xlu0 %4224, %v2903_v4  }
  0xda   :  { %3450 = vperm.xlu1 %4225, %v2912_v7   ;;  %3410 = vperm.xlu0 %4224, %v2904_v54  }
  0xde   :  { %3455 = vperm.xlu1 %4225, %v2913_v15   ;;  %3415 = vperm.xlu0 %4224, %v2905_v8   ;;  %v4005_v16 = vpop.f32.mrb[0].mxu0 }
  0xdf   :  { %v392_v18 = vpop.f32.mrb[1].mxu0  ;;  %v3757_v36 = vmul.f32 -0.17677669, %v4005_v16 }
  0xe0   :  { %v4006_v20 = vpop.f32.mrb[2].mxu0  ;;  %v3755_v35 = vmul.f32 -0.17677669, %v392_v18 }
  0xe1   :  { %v395_v37 = vpop.f32.mrb[3].mxu0  ;;  %v3758_v40 = vmul.f32 -0.17677669, %v4006_v20  ;;  %v928_v43 = vmul.f32 1.442695, %v3757_v36 }
  0xe2   :  { %v3756_v28 = vmul.f32 -0.17677669, %v395_v37  ;;  %v924_v38 = vmul.f32 1.442695, %v3755_v35 }
  0xe3   :  { %v930_v46 = vmul.f32 1.442695, %v3758_v40 }
  0xe4   :  { %v926_v34 = vmul.f32 1.442695, %v3756_v28 }
  0xe6   :  { %v4009_v61 = vpop.f32.mrb[4].mxu0  ;;  %4261 = vpow2.f32 %v926_v34 }
  0xe7   :  { %v408_v21 = vpop.f32.mrb[5].mxu0  ;;  %4263 = vpow2.f32 %v924_v38  ;;  %v3761_v58 = vmul.f32 -0.17677669, %v4009_v61 }
  0xe8   :  { %v4010_v59 = vpop.f32.mrb[6].mxu0  ;;  %v3759_v47 = vmul.f32 -0.17677669, %v408_v21  ;;  %4265 = vpow2.f32 %v928_v43 }
  0xe9   :  { %v411_v12 = vpop.f32.mrb[7].mxu0  ;;  %4267 = vpow2.f32 %v930_v46  ;;  %v3762_v1 = vmul.f32 -0.17677669, %v4010_v59  ;;  %v936_v2 = vmul.f32 1.442695, %v3761_v58 }
  0xea   :  { %v932_v55 = vmul.f32 1.442695, %v3759_v47  ;;  %v3760_v60 = vmul.f32 -0.17677669, %v411_v12 }
  0xeb   :  { %v938_v54 = vmul.f32 1.442695, %v3762_v1 }
  0xec   :  { %4269 = vpow2.f32 %v932_v55  ;;  %v934_v4 = vmul.f32 1.442695, %v3760_v60 }
  0xed   :  { %4271 = vpow2.f32 %v936_v2 }
  0xee   :  { %v4013_v22 = vpop.f32.mrb[8].mxu0  ;;  %4273 = vpow2.f32 %v934_v4 }
  0xef   :  { %v424_v23 = vpop.f32.mrb[9].mxu0  ;;  %v3765_v16 = vmul.f32 -0.17677669, %v4013_v22 }
  0xf0   :  { %v4014_v24 = vpop.f32.mrb[10].mxu0  ;;  %v4262_v56 = vpop.eup %4261  ;;  %v3763_v19 = vmul.f32 -0.17677669, %v424_v23 }
  0xf1   :  { %v427_v25 = vpop.f32.mrb[11].mxu0  ;;  %v4264_v63 = vpop.eup %4263  ;;  %v1021_v6 = vadd.f32 1.0, %v4262_v56  ;;  %v3766_v37 = vmul.f32 -0.17677669, %v4014_v24  ;;  %v944_v59 = vmul.f32 1.442695, %v3765_v16 }
  0xf2   :  { %v4266_v5 = vpop.eup %4265  ;;  %v1020_v10 = vadd.f32 1.0, %v4264_v63  ;;  %v3764_v12 = vmul.f32 -0.17677669, %v427_v25  ;;  %v940_v28 = vmul.f32 1.442695, %v3763_v19 }
  0xf3   :  { %v4268_v15 = vpop.eup %4267  ;;  %v1022_v8 = vadd.f32 1.0, %v4266_v5  ;;  %4275 = vrcp.f32 %v1021_v6  ;;  %v946_v36 = vmul.f32 1.442695, %v3766_v37 }
  0xf4   :  { %4277 = vpow2.f32 %v938_v54  ;;  %v1023_v61 = vadd.f32 1.0, %v4268_v15  ;;  %v942_v23 = vmul.f32 1.442695, %v3764_v12 }
  0xf5   :  { %4279 = vrcp.f32 %v1020_v10 }
  0xf6   :  { %v4017_v26 = vpop.f32.mrb[12].mxu0  ;;  %v4270_v21 = vpop.eup %4269  ;;  %4281 = vrcp.f32 %v1022_v8 }
  0xf7   :  { %v5139_v27 = vpop.f32.mrb[13].mxu0  ;;  %4283 = vrcp.f32 %v1023_v61  ;;  %v1024_v22 = vadd.f32 1.0, %v4270_v21  ;;  %v3769_v38 = vmul.f32 -0.17677669, %v4017_v26  ;;  %v4272_v43 = vpop.eup %4271 }
  0xf8   :  { %v5141_v31 = vpop.f32.mrb[14].mxu0  ;;  %4285 = vpow2.f32 %v944_v59  ;;  %v3767_v40 = vmul.f32 -0.17677669, %v5139_v27  ;;  %v4274_v25 = vpop.eup %4273  ;;  %v5183_v27 = vld [vmem:[%s6339_s2] ss:$0 sm:$0xff]  ;;  %v1026_v54 = vadd.f32 1.0, %v4272_v43 }
  0xf9   :  { %v5143_v32 = vpop.f32.mrb[15].mxu0  ;;  %4287 = vpow2.f32 %v940_v28  ;;  %v952_v55 = vmul.f32 1.442695, %v3769_v38  ;;  %v1025_v26 = vadd.f32 1.0, %v4274_v25  ;;  %v3770_v63 = vmul.f32 -0.17677669, %v5141_v31 }
  0xfa   :  { %4289 = vpow2.f32 %v946_v36  ;;  %v948_v60 = vmul.f32 1.442695, %v3767_v40  ;;  %v3768_v6 = vmul.f32 -0.17677669, %v5143_v32  ;;  %vm829_vm2 = vcmp.eq.s32.totalorder %v5114_v14, %v5183_v27 }
  0xfb   :  { %4291 = vrcp.f32 %v1024_v22  ;;  %vm830_vm3 = vcmp.eq.s32.totalorder %v5100_v39, %v5183_v27  ;;  %v954_v32 = vmul.f32 1.442695, %v3770_v63  ;;  %vm828_vm4 = vcmp.eq.s32.totalorder %v5102_v51, %v5183_v27 }
  0xfc   :  { %4293 = vpow2.f32 %v942_v23  ;;  %v950_v59 = vmul.f32 1.442695, %v3768_v6  ;;  %vm831_vm6 = vcmp.eq.s32.totalorder %v5112_v53, %v5183_v27  ;;  %vm832_vm7 = vcmp.eq.s32.totalorder %v5118_v30, %v5183_v27 }
  0xfd   :  { %v4276_v47 = vpop.eup %4275  ;;  %4295 = vpow2.f32 %v952_v55  ;;  %vm833_vm8 = vcmp.eq.s32.totalorder %v5116_v29, %v5183_v27  ;;  %vm835_vm9 = vcmp.eq.s32.totalorder %v5120_v48, %v5183_v27  ;;  %vm834_vm10 = vcmp.eq.s32.totalorder %v5122_v49, %v5183_v27 }
  0xfe   :  { %v5145_v33 = vpop.f32.mrb[16].mxu0  ;;  %v4278_v58 = vpop.eup %4277  ;;  %v1165_v5 = vadd.f32 1.0, %v4276_v47  ;;  %4297 = vpow2.f32 %v948_v60  ;;  %vm836_vm11 = vcmp.eq.s32.totalorder %v5126_v62, %v5183_v27  ;;  %vm839_vm12 = vcmp.eq.s32.totalorder %v5128_v11, %v5183_v27 }
  0xff   :  { %v5147_v41 = vpop.f32.mrb[17].mxu0  ;;  %v4280_v56 = vpop.eup %4279  ;;  %v3773_v10 = vmul.f32 -0.17677669, %v5145_v33  ;;  %v1027_v37 = vadd.f32 1.0, %v4278_v58  ;;  %4299 = vrcp.f32 %v1025_v26  ;;  %vm837_vm13 = vcmp.eq.s32.totalorder %v5124_v3, %v5183_v27 }
 0x100   :  { %v5149_v44 = vpop.f32.mrb[18].mxu0  ;;  %v4282_v2 = vpop.eup %4281  ;;  %v1164_v8 = vadd.f32 1.0, %v4280_v56  ;;  %v5198_v21 = vsel %vm829_vm2, %v1165_v5, 0.0  ;;  %4301 = vrcp.f32 %v1026_v54  ;;  %v3771_v28 = vmul.f32 -0.17677669, %v5147_v41 }
 0x101   :  { %v5151_v45 = vpop.f32.mrb[19].mxu0  ;;  %v4284_v16 = vpop.eup %4283  ;;  %v1166_v19 = vadd.f32 1.0, %v4282_v2  ;;  %v960_v14 = vmul.f32 1.442695, %v3773_v10  ;;  %4303 = vrcp.f32 %v1027_v37  ;;  %v1262_v40 = vsel %vm1260_vm5, %v5198_v21, 0.0 }
 0x102   :  { %v4286_v61 = vpop.eup %4285  ;;  %v5203_v36 = vsel %vm828_vm4, %v1164_v8, 0.0  ;;  %v1167_v43 = vadd.f32 1.0, %v4284_v16  ;;  %4305 = vpow2.f32 %v954_v32  ;;  %v3772_v47 = vmul.f32 -0.17677669, %v5151_v45  ;;  %v5234_v32 = vpop.permute.xlu0 %723 }
 0x103   :  { %v4288_v33 = vpop.eup %4287  ;;  %v5205_v38 = vsel %vm830_vm3, %v1166_v19, 0.0  ;;  %v1030_v39 = vadd.f32 1.0, %v4286_v61  ;;  %4307 = vpow2.f32 %v950_v59  ;;  %v3774_v58 = vmul.f32 -0.17677669, %v5149_v44 }
 0x104   :  { %v4290_v12 = vpop.eup %4289  ;;  %v1028_v25 = vadd.f32 1.0, %v4288_v33  ;;  %v1261_v60 = vsel %vm1260_vm5, %v5203_v36, 0.0  ;;  %4309 = vpow2.f32 %v960_v14  ;;  %v956_v56 = vmul.f32 1.442695, %v3771_v28 }
 0x105   :  { %v4292_v22 = vpop.eup %4291  ;;  %v1031_v41 = vadd.f32 1.0, %v4290_v12  ;;  %v1263_v2 = vadd.f32 %v1262_v40, %v1261_v60  ;;  %4311 = vrcp.f32 %v1030_v39  ;;  %v958_v54 = vmul.f32 1.442695, %v3772_v47 }
 0x106   :  { %v5153_v52 = vpop.f32.mrb[20].mxu0  ;;  %v4294_v51 = vpop.eup %4293  ;;  %v1168_v45 = vadd.f32 1.0, %v4292_v22  ;;  %4313 = vrcp.f32 %v1028_v25  ;;  %v1264_v8 = vsel %vm1260_vm5, %v5205_v38, 0.0  ;;  %v5231_v19 = vsel %vm831_vm6, %v1167_v43, 0.0 }
 0x107   :  { %v5155_v57 = vpop.f32.mrb[21].mxu0  ;;  %v4296_v63 = vpop.eup %4295  ;;  %v1029_v5 = vadd.f32 1.0, %v4294_v51  ;;  %v3777_v10 = vmul.f32 -0.17677669, %v5153_v52  ;;  %4315 = vrcp.f32 %v1031_v41  ;;  %v962_v37 = vmul.f32 1.442695, %v3774_v58 }
 0x108   :  { %v5157_v50 = vpop.f32.mrb[22].mxu0  ;;  %v4298_v44 = vpop.eup %4297  ;;  %v3775_v61 = vmul.f32 -0.17677669, %v5155_v57  ;;  %v1034_v33 = vadd.f32 1.0, %v4296_v63  ;;  %4317 = vpow2.f32 %v956_v56  ;;  %v1265_v52 = vadd.f32 %v1264_v8, %v1263_v2 }
 0x109   :  { %v5159_v0 = vpop.f32.mrb[23].mxu0  ;;  %v4300_v16 = vpop.eup %4299  ;;  %v5240_v12 = vsel %vm832_vm7, %v1168_v45, 0.0  ;;  %4319 = vrcp.f32 %v1029_v5  ;;  %v1032_v53 = vadd.f32 1.0, %v4298_v44  ;;  %v968_v39 = vmul.f32 1.442695, %v3777_v10 }
 0x10a   :  { %v3776_v59 = vmul.f32 -0.17677669, %v5159_v0  ;;  %v4302_v28 = vpop.eup %4301  ;;  %v5244_v22 = vpop.permute.xlu1 %726  ;;  %v1169_v57 = vadd.f32 1.0, %v4300_v16  ;;  %4321 = vpow2.f32 %v958_v54  ;;  %v3778_v40 = vmul.f32 -0.17677669, %v5157_v50 }
 0x10b   :  { %v4304_v0 = vpop.eup %4303  ;;  %v1266_v30 = vsel %vm1260_vm5, %v5231_v19, 0.0  ;;  %4323 = vpow2.f32 %v962_v37  ;;  %v964_v43 = vmul.f32 1.442695, %v3775_v61  ;;  %v1268_v50 = vsel %vm1260_vm5, %v5240_v12, 0.0  ;;  %v5261_v63 = vpop.permute.xlu0 %729 }
 0x10c   :  { %v4306_v25 = vpop.eup %4305  ;;  %4325 = vrcp.f32 %v1034_v33  ;;  %v966_v47 = vmul.f32 1.442695, %v3776_v59  ;;  %v1267_v58 = vadd.f32 %v1266_v30, %v1265_v52  ;;  %v5263_v45 = vsel %vm833_vm8, %v1169_v57, 0.0 }
 0x10d   :  { %v4308_v60 = vpop.eup %4307  ;;  %4327 = vrcp.f32 %v1032_v53  ;;  %v970_v5 = vmul.f32 1.442695, %v3778_v40  ;;  %v1170_v29 = vadd.f32 1.0, %v4302_v28  ;;  %v1171_v10 = vadd.f32 1.0, %v4304_v0 }
 0x10e   :  { %v5161_v7 = vpop.f32.mrb[24].mxu0  ;;  %v4310_v2 = vpop.eup %4309  ;;  %4329 = vpow2.f32 %v968_v39  ;;  %v1035_v8 = vadd.f32 1.0, %v4306_v25  ;;  %v1033_v61 = vadd.f32 1.0, %v4308_v60  ;;  %v1269_v59 = vadd.f32 %v1268_v50, %v1267_v58 }
 0x10f   :  { %v5163_v9 = vpop.f32.mrb[25].mxu0  ;;  %v3781_v44 = vmul.f32 -0.17677669, %v5161_v7  ;;  %v4312_v54 = vpop.eup %4311  ;;  %4331 = vpow2.f32 %v964_v43  ;;  %v1270_v7 = vsel %vm1260_vm5, %v5263_v45, 0.0  ;;  %v1038_v53 = vadd.f32 1.0, %v4310_v2 }
 0x110   :  { %v5165_v18 = vpop.f32.mrb[26].mxu0  ;;  %v4314_v16 = vpop.eup %4313  ;;  %4333 = vpow2.f32 %v966_v47  ;;  %v3779_v33 = vmul.f32 -0.17677669, %v5163_v9  ;;  %vm838_vm14 = vcmp.eq.s32.totalorder %v5130_v13, %v5183_v27  ;;  %v5286_v0 = vsel %vm834_vm10, %v1170_v29, 0.0 }
 0x111   :  { %v5167_v20 = vpop.f32.mrb[27].mxu0  ;;  %v5266_v37 = vpop.permute.xlu1 %732  ;;  %4335 = vpow2.f32 %v970_v5  ;;  %v976_v9 = vmul.f32 1.442695, %v3781_v44  ;;  %v5291_v30 = vsel %vm835_vm9, %v1171_v10, 0.0  ;;  %v1271_v60 = vadd.f32 %v1270_v7, %v1269_v59 }
 0x112   :  { %v4316_v52 = vpop.eup %4315  ;;  %v3780_v39 = vmul.f32 -0.17677669, %v5167_v20  ;;  %6351 = vst [vmem:[#allocation3_spill] sm:$0xff] %v5291_v30  ;;  %4337 = vrcp.f32 %v1035_v8  ;;  %v5293_v25 = vpop.permute.xlu0 %735  ;;  %v1174_v20 = vadd.f32 1.0, %v4312_v54  ;;  %v972_v47 = vmul.f32 1.442695, %v3779_v33 }
 0x113   :  { %v4318_v57 = vpop.eup %4317  ;;  %4339 = vrcp.f32 %v1033_v61  ;;  %v1172_v2 = vadd.f32 1.0, %v4314_v16  ;;  %v1175_v5 = vadd.f32 1.0, %v4316_v52  ;;  %vm840_vm15 = vcmp.eq.s32.totalorder %v5134_v17, %v5183_v27 }
 0x114   :  { %v4320_v49 = vpop.eup %4319  ;;  %4341 = vrcp.f32 %v1038_v53  ;;  %v1036_v44 = vadd.f32 1.0, %v4318_v57  ;;  %v3782_v54 = vmul.f32 -0.17677669, %v5165_v18  ;;  %v974_v8 = vmul.f32 1.442695, %v3780_v39 }
 0x115   :  { %v4322_v43 = vpop.eup %4321  ;;  %v5301_v10 = vpop.permute.xlu1 %738  ;;  %4343 = vpow2.f32 %v976_v9  ;;  %vm842_vm1 = vcmp.eq.s32.totalorder %v5234_v32, %v5183_v27  ;;  %v1272_v16 = vsel %vm1260_vm5, %v5286_v0, 0.0  ;;  %v1274_v33 = vsel %vm1260_vm5, %v5291_v30, 0.0 }
 0x116   :  { %v5169_v35 = vpop.f32.mrb[28].mxu0  ;;  %v4324_v50 = vpop.eup %4323  ;;  %v1037_v59 = vadd.f32 1.0, %v4322_v43  ;;  %v5313_v7 = vsel %vm838_vm14, %v1174_v20, 0.0  ;;  %v1173_v53 = vadd.f32 1.0, %v4320_v49  ;;  %4345 = vpow2.f32 %v972_v47 }
 0x117   :  { %v5171_v34 = vpop.f32.mrb[29].mxu0  ;;  %v4326_v48 = vpop.eup %4325  ;;  %v1273_v18 = vadd.f32 %v1272_v16, %v1271_v60  ;;  %v5318_v9 = vsel %vm836_vm11, %v1172_v2, 0.0  ;;  %v5323_v39 = vsel %vm839_vm12, %v1175_v5, 0.0  ;;  %4347 = vrcp.f32 %v1036_v44 }
 0x118   :  { %v5174_v24 = vpop.f32.mrb[30].mxu0  ;;  %v4328_v61 = vpop.eup %4327  ;;  %6352 = vst [vmem:[#allocation4_spill] sm:$0xff] %v5323_v39  ;;  %v1039_v43 = vadd.f32 1.0, %v4324_v50  ;;  %v1178_v20 = vadd.f32 1.0, %v4326_v48  ;;  %v978_v49 = vmul.f32 1.442695, %v3782_v54  ;;  %4349 = vpow2.f32 %v974_v8 }
 0x119   :  { %v5176_v46 = vpop.f32.mrb[31].mxu0  ;;  %v4330_v52 = vpop.eup %4329  ;;  %v3783_v47 = vmul.f32 -0.17677669, %v5171_v34  ;;  %v1280_v62 = vsel %vm1260_vm5, %v5313_v7, 0.0  ;;  %v1176_v60 = vadd.f32 1.0, %v4328_v61  ;;  %4351 = vrcp.f32 %v1037_v59 }
 0x11a   :  { %v4332_v57 = vpop.eup %4331  ;;  %v5325_v13 = vpop.permute.xlu0 %741  ;;  %v1042_v2 = vadd.f32 1.0, %v4330_v52  ;;  %vm841_vm2 = vcmp.eq.s32.totalorder %v5132_v42, %v5183_v27  ;;  %vm843_vm3 = vcmp.eq.s32.totalorder %v5244_v22, %v5183_v27  ;;  %v5339_v50 = vsel %vm837_vm13, %v1173_v53, 0.0 }
 0x11b   :  { %v4334_v30 = vpop.eup %4333  ;;  %v5334_v11 = vpop.permute.xlu1 %744  ;;  %v1040_v34 = vadd.f32 1.0, %v4332_v57  ;;  %v3784_v5 = vmul.f32 -0.17677669, %v5176_v46  ;;  %v1275_v44 = vadd.f32 %v1274_v33, %v1273_v18  ;;  %v1276_v54 = vsel %vm1260_vm5, %v5318_v9, 0.0 }
 0x11c   :  { %v4336_v16 = vpop.eup %4335  ;;  %v1282_v8 = vsel %vm1260_vm5, %v5323_v39, 0.0  ;;  %4353 = vrcp.f32 %v1039_v43  ;;  %v1041_v61 = vadd.f32 1.0, %v4334_v30  ;;  %vm846_vm4 = vcmp.eq.s32.totalorder %v5293_v25, %v5183_v27 }
 0x11d   :  { %v4338_v48 = vpop.eup %4337  ;;  %v5351_v3 = vsel %vm842_vm1, %v1178_v20, 0.0  ;;  %4355 = vpow2.f32 %v978_v49  ;;  %v3785_v46 = vmul.f32 -0.17677669, %v5169_v35  ;;  %v980_v33 = vmul.f32 1.442695, %v3783_v47 }
 0x11e   :  { %v5178_v1 = vpop.f32.mrb[32].mxu0  ;;  %v4340_v59 = vpop.eup %4339  ;;  %v1278_v53 = vsel %vm1260_vm5, %v5339_v50, 0.0  ;;  %v5359_v30 = vsel %vm840_vm15, %v1176_v60, 0.0  ;;  %4357 = vrcp.f32 %v1042_v2  ;;  %v1043_v18 = vadd.f32 1.0, %v4336_v16 }
 0x11f   :  { %v5186_v4 = vpop.f32.mrb[33].mxu0  ;;  %v4342_v52 = vpop.eup %4341  ;;  %4359 = vrcp.f32 %v1040_v34  ;;  %v3786_v32 = vmul.f32 -0.17677669, %v5174_v24  ;;  %v982_v20 = vmul.f32 1.442695, %v3784_v5  ;;  %v1277_v35 = vadd.f32 %v1276_v54, %v1275_v44 }
 0x120   :  { %v5190_v15 = vpop.f32.mrb[34].mxu0  ;;  %v4344_v57 = vpop.eup %4343  ;;  %v5366_v49 = vsel %vm1260_vm5, %v5351_v3, 0.0  ;;  %v1179_v47 = vadd.f32 1.0, %v4338_v48  ;;  %v1177_v39 = vadd.f32 1.0, %v4340_v59  ;;  %4361 = vrcp.f32 %v1041_v61 }
 0x121   :  { %v5194_v31 = vpop.f32.mrb[35].mxu0  ;;  %v5361_v43 = vpop.permute.xlu0 %747  ;;  %vm844_vm6 = vcmp.eq.s32.totalorder %v5261_v63, %v5183_v27  ;;  %v984_v2 = vmul.f32 1.442695, %v3785_v46  ;;  %4363 = vpow2.f32 %v980_v33  ;;  %v3787_v16 = vmul.f32 -0.17677669, %v5186_v4 }
 0x122   :  { %v4346_v17 = vpop.eup %4345  ;;  %v5370_v60 = vpop.permute.xlu1 %750  ;;  %v1279_v24 = vadd.f32 %v1278_v53, %v1277_v35  ;;  %vm845_vm7 = vcmp.eq.s32.totalorder %v5266_v37, %v5183_v27  ;;  %v1284_v5 = vsel %vm1260_vm5, %v5359_v30, 0.0  ;;  %v1182_v44 = vadd.f32 1.0, %v4342_v52 }
 0x123   :  { %v4348_v34 = vpop.eup %4347  ;;  %4365 = vrcp.f32 %v1043_v18  ;;  %v1046_v48 = vadd.f32 1.0, %v4344_v57  ;;  %v986_v61 = vmul.f32 1.442695, %v3786_v32  ;;  %v3788_v59 = vmul.f32 -0.17677669, %v5194_v31 }
 0x124   :  { %v4350_v54 = vpop.eup %4349  ;;  %4367 = vpow2.f32 %v982_v20  ;;  %v1281_v46 = vadd.f32 %v1280_v62, %v1279_v24  ;;  %v5381_v4 = vsel %vm843_vm3, %v1179_v47, 0.0  ;;  %v5386_v53 = vsel %vm841_vm2, %v1177_v39, 0.0 }
 0x125   :  { %v4352_v33 = vpop.eup %4351  ;;  %v1044_v52 = vadd.f32 1.0, %v4346_v17  ;;  %v3789_v18 = vmul.f32 -0.17677669, %v5178_v1  ;;  %vm847_vm8 = vcmp.eq.s32.totalorder %v5301_v10, %v5183_v27  ;;  %v5391_v57 = vpop.permute.xlu0 %753  ;;  %4369 = vpow2.f32 %v984_v2 }
 0x126   :  { %v5207_v23 = vpop.f32.mrb[36].mxu0  ;;  %v988_v31 = vmul.f32 1.442695, %v3787_v16  ;;  %v3790_v62 = vmul.f32 -0.17677669, %v5190_v15  ;;  %v1283_v22 = vadd.f32 %v1282_v8, %v1281_v46  ;;  %v4354_v32 = vpop.eup %4353  ;;  %v5397_v42 = vsel %vm846_vm4, %v1182_v44, 0.0 }
 0x127   :  { %v5212_v55 = vpop.f32.mrb[37].mxu0  ;;  %v1180_v39 = vadd.f32 1.0, %v4348_v34  ;;  %4371 = vrcp.f32 %v1046_v48  ;;  %v1045_v20 = vadd.f32 1.0, %v4350_v54  ;;  %v4356_v1 = vpop.eup %4355  ;;  %vm848_vm9 = vcmp.eq.s32.totalorder %v5325_v13, %v5183_v27 }
 0x128   :  { %v5219_v26 = vpop.f32.mrb[38].mxu0  ;;  %vm850_vm10 = vcmp.eq.s32.totalorder %v5361_v43, %v5183_v27  ;;  %v5403_v35 = vpop.permute.xlu1 %756  ;;  %v1286_v15 = vsel %vm1260_vm5, %v5386_v53, 0.0  ;;  %v1181_v8 = vadd.f32 1.0, %v4352_v33  ;;  %4373 = vpow2.f32 %v986_v61 }
 0x129   :  { %v5223_v6 = vpop.f32.mrb[39].mxu0  ;;  %v990_v25 = vmul.f32 1.442695, %v3788_v59  ;;  %v4358_v47 = vpop.eup %4357  ;;  %v1290_v17 = vsel %vm1260_vm5, %v5381_v4, 0.0  ;;  %4375 = vrcp.f32 %v1044_v52  ;;  %v992_v2 = vmul.f32 1.442695, %v3789_v18 }
 0x12a   :  { %v1285_v16 = vadd.f32 %v1284_v5, %v1283_v22  ;;  %v4360_v24 = vpop.eup %4359  ;;  %vm849_vm11 = vcmp.eq.s32.totalorder %v5334_v11, %v5183_v27  ;;  %v5413_v34 = vsel %vm1260_vm5, %v5397_v42, 0.0  ;;  %4377 = vpow2.f32 %v988_v31  ;;  %v5421_v33 = vpop.permute.xlu0 %759 }
 0x12b   :  { %v994_v44 = vmul.f32 1.442695, %v3790_v62  ;;  %v3791_v48 = vmul.f32 -0.17677669, %v5212_v55  ;;  %v4362_v54 = vpop.eup %4361  ;;  %v5419_v61 = vsel %vm844_vm6, %v1180_v39, 0.0  ;;  %v1183_v59 = vadd.f32 1.0, %v4354_v32 }
 0x12c   :  { %4379 = vrcp.f32 %v1045_v20  ;;  %v1287_v5 = vadd.f32 %v1286_v15, %v1285_v16  ;;  %v4364_v46 = vpop.eup %4363  ;;  %v5426_v52 = vsel %vm845_vm7, %v1181_v8, 0.0  ;;  %v1047_v18 = vadd.f32 1.0, %v4356_v1  ;;  %v5432_v39 = vpop.permute.xlu1 %762 }
 0x12d   :  { %4381 = vpow2.f32 %v990_v25  ;;  %v3792_v55 = vmul.f32 -0.17677669, %v5223_v6  ;;  %v4366_v31 = vpop.eup %4365  ;;  %vm851_vm12 = vcmp.eq.s32.totalorder %v5370_v60, %v5183_v27  ;;  %v1186_v63 = vadd.f32 1.0, %v4358_v47 }
 0x12e   :  { %v5242_v14 = vpop.f32.mrb[40].mxu0  ;;  %v1184_v62 = vadd.f32 1.0, %v4360_v24  ;;  %4383 = vpow2.f32 %v992_v2  ;;  %v1289_v22 = vadd.f32 %v5366_v49, %v1287_v5  ;;  %v4368_v32 = vpop.eup %4367  ;;  %v1292_v37 = vsel %vm1260_vm5, %v5419_v61, 0.0 }
 0x12f   :  { %v5247_v51 = vpop.f32.mrb[41].mxu0  ;;  %4385 = vpow2.f32 %v994_v44  ;;  %v3793_v20 = vmul.f32 -0.17677669, %v5207_v23  ;;  %v996_v1 = vmul.f32 1.442695, %v3791_v48  ;;  %v5440_v6 = vsel %vm847_vm8, %v1183_v59, 0.0  ;;  %v4370_v25 = vpop.eup %4369 }
 0x130   :  { %v5251_v41 = vpop.f32.mrb[42].mxu0  ;;  %v1294_v15 = vsel %vm1260_vm5, %v5426_v52, 0.0  ;;  %v1185_v8 = vadd.f32 1.0, %v4362_v54  ;;  %v1048_v49 = vadd.f32 1.0, %v4364_v46  ;;  %4387 = vrcp.f32 %v1047_v18 }
 0x131   :  { %v5259_v56 = vpop.f32.mrb[43].mxu0  ;;  %v3794_v47 = vmul.f32 -0.17677669, %v5219_v26  ;;  %v998_v2 = vmul.f32 1.442695, %v3792_v55  ;;  %v1291_v16 = vadd.f32 %v1290_v17, %v1289_v22  ;;  %v5445_v24 = vpop.eup %4371  ;;  %v5450_v23 = vsel %vm850_vm10, %v1186_v63, 0.0 }
 0x132   :  { %v5455_v10 = vsel %vm848_vm9, %v1184_v62, 0.0  ;;  %v1187_v44 = vadd.f32 1.0, %v4366_v31  ;;  %v1049_v48 = vadd.f32 1.0, %v4368_v32  ;;  %v4374_v54 = vpop.eup %4373  ;;  %vm852_vm13 = vcmp.eq.s32.totalorder %v5391_v57, %v5183_v27  ;;  %v5459_v26 = vpop.permute.xlu0 %765 }
 0x133   :  { %v1000_v17 = vmul.f32 1.442695, %v3793_v20  ;;  %4389 = vpow2.f32 %v996_v1  ;;  %v3795_v59 = vmul.f32 -0.17677669, %v5247_v51  ;;  %v1293_v43 = vadd.f32 %v1292_v37, %v1291_v16  ;;  %v4376_v5 = vpop.eup %4375  ;;  %v5469_v31 = vpop.permute.xlu1 %768 }
 0x134   :  { %v1298_v46 = vsel %vm1260_vm5, %v5440_v6, 0.0  ;;  %v5467_v13 = vsel %vm849_vm11, %v1185_v8, 0.0  ;;  %v1050_v18 = vadd.f32 1.0, %v4370_v25  ;;  %4391 = vrcp.f32 %v1048_v49  ;;  %v4378_v55 = vpop.eup %4377 }
 0x135   :  { %v1002_v63 = vmul.f32 1.442695, %v3794_v47  ;;  %4393 = vpow2.f32 %v998_v2  ;;  %v3796_v62 = vmul.f32 -0.17677669, %v5259_v56  ;;  %v1295_v51 = vadd.f32 %v1294_v15, %v1293_v43 }
 0x136   :  { %v5275_v28 = vpop.f32.mrb[44].mxu0  ;;  %v4380_v22 = vpop.eup %4379  ;;  %vm853_vm14 = vcmp.eq.s32.totalorder %v5403_v35, %v5183_v27  ;;  %v1304_v32 = vsel %vm1260_vm5, %v5450_v23, 0.0  ;;  %v1300_v11 = vsel %vm1260_vm5, %v5455_v10, 0.0  ;;  %v1051_v37 = vadd.f32 1.0, %v4374_v54 }
 0x137   :  { %v5280_v40 = vpop.f32.mrb[45].mxu0  ;;  %4395 = vrcp.f32 %v1049_v48  ;;  %v4382_v20 = vpop.eup %4381  ;;  %v5481_v1 = vsel %vm851_vm12, %v1187_v44, 0.0  ;;  %v1004_v56 = vmul.f32 1.442695, %v3795_v59  ;;  %v1297_v15 = vadd.f32 %v5413_v34, %v1295_v51 }
 0x138   :  { %v5295_v58 = vpop.f32.mrb[46].mxu0  ;;  %4397 = vpow2.f32 %v1000_v17  ;;  %v4384_v8 = vpop.eup %4383  ;;  %v1302_v49 = vsel %vm1260_vm5, %v5467_v13, 0.0  ;;  %v1188_v25 = vadd.f32 1.0, %v4376_v5  ;;  %v1052_v47 = vadd.f32 1.0, %v4378_v55 }
 0x139   :  { %v5297_v29 = vpop.f32.mrb[47].mxu0  ;;  %4399 = vrcp.f32 %v1050_v18  ;;  %v4386_v2 = vpop.eup %4385  ;;  %vm854_vm15 = vcmp.eq.s32.totalorder %v5421_v33, %v5183_v27  ;;  %v3797_v60 = vmul.f32 -0.17677669, %v5242_v14  ;;  %v1006_v44 = vmul.f32 1.442695, %v3796_v62 }
 0x13a   :  { %v5488_v16 = vpop.permute.xlu0 %771  ;;  %4401 = vpow2.f32 %v1002_v63  ;;  %v1299_v48 = vadd.f32 %v1298_v46, %v1297_v15  ;;  %v1189_v54 = vadd.f32 1.0, %v4380_v22  ;;  %v1053_v34 = vadd.f32 1.0, %v4382_v20  ;;  %v4388_v59 = vpop.eup %4387 }
 0x13b   :  { %4403 = vrcp.f32 %v1051_v37  ;;  %v3798_v17 = vmul.f32 -0.17677669, %v5251_v41  ;;  %vm855_vm1 = vcmp.eq.s32.totalorder %v5432_v39, %v5183_v27  ;;  %v5494_v43 = vpop.permute.xlu1 %774  ;;  %v1054_v5 = vadd.f32 1.0, %v4384_v8 }
 0x13c   :  { %4405 = vpow2.f32 %v1004_v56  ;;  %v3799_v18 = vmul.f32 -0.17677669, %v5280_v40  ;;  %v1301_v55 = vadd.f32 %v1300_v11, %v1299_v48  ;;  %v1306_v14 = vsel %vm1260_vm5, %v5481_v1, 0.0 }
 0x13d   :  { %v5502_v46 = vsel %vm852_vm13, %v1188_v25, 0.0  ;;  %4407 = vrcp.f32 %v1052_v47  ;;  %v1055_v41 = vadd.f32 1.0, %v4386_v2  ;;  %v4390_v63 = vpop.eup %4389  ;;  %v1008_v62 = vmul.f32 1.442695, %v3797_v60 }
 0x13e   :  { %4409 = vpow2.f32 %v1006_v44  ;;  %v3800_v51 = vmul.f32 -0.17677669, %v5297_v29  ;;  %v1303_v22 = vadd.f32 %v1302_v49, %v1301_v55  ;;  %v4392_v37 = vpop.eup %4391  ;;  %v1190_v40 = vadd.f32 1.0, %v5445_v24  ;;  %v5506_v15 = vpop.permute.xlu0 %777 }
 0x13f   :  { %v1191_v11 = vadd.f32 1.0, %v4388_v59  ;;  %4411 = vrcp.f32 %v1053_v34  ;;  %v1010_v20 = vmul.f32 1.442695, %v3798_v17  ;;  %v4394_v56 = vpop.eup %4393  ;;  %v5511_v57 = vsel %vm853_vm14, %v1189_v54, 0.0  ;;  %v5516_v60 = vpop.permute.xlu1 %780 }
 0x140   :  { %4413 = vrcp.f32 %v1054_v5  ;;  %v1012_v8 = vmul.f32 1.442695, %v3799_v18  ;;  %v1305_v25 = vadd.f32 %v1304_v32, %v1303_v22  ;;  %v1308_v29 = vsel %vm1260_vm5, %v5502_v46, 0.0 }
 0x141   :  { %v4396_v47 = vpop.eup %4395  ;;  %4415 = vrcp.f32 %v1055_v41  ;;  %v1056_v24 = vadd.f32 1.0, %v4390_v63  ;;  %v3801_v49 = vmul.f32 -0.17677669, %v5275_v28  ;;  %v1192_v44 = vadd.f32 1.0, %v4392_v37 }
 0x142   :  { %v4398_v2 = vpop.eup %4397  ;;  %4417 = vpow2.f32 %v1008_v62  ;;  %v1014_v48 = vmul.f32 1.442695, %v3800_v51  ;;  %v1307_v35 = vadd.f32 %v1306_v14, %v1305_v25  ;;  %v5521_v32 = vsel %vm854_vm15, %v1190_v40, 0.0  ;;  %v5533_v63 = vpop.permute.xlu0 %783 }
 0x143   :  { %v4400_v54 = vpop.eup %4399  ;;  %v1310_v34 = vsel %vm1260_vm5, %v5511_v57, 0.0  ;;  %v1057_v17 = vadd.f32 1.0, %v4394_v56  ;;  %4419 = vpow2.f32 %v1010_v20  ;;  %v1193_v28 = vadd.f32 1.0, %v4396_v47  ;;  %v5541_v40 = vpop.permute.xlu1 %786 }
 0x144   :  { %v4402_v59 = vpop.eup %4401  ;;  %4421 = vpow2.f32 %v1012_v8  ;;  %v3802_v5 = vmul.f32 -0.17677669, %v5295_v58  ;;  %v1309_v18 = vadd.f32 %v1308_v29, %v1307_v35  ;;  %vm856_vm2 = vcmp.eq.s32.totalorder %v5459_v26, %v5183_v27 }
 0x145   :  { %v4404_v55 = vpop.eup %4403  ;;  %v5531_v33 = vsel %vm855_vm1, %v1191_v11, 0.0  ;;  %v1058_v14 = vadd.f32 1.0, %v4398_v2  ;;  %4423 = vrcp.f32 %v1056_v24  ;;  %v5535_v62 = vsel %vm856_vm2, %v1192_v44, 0.0 }
 0x146   :  { %v4406_v41 = vpop.eup %4405  ;;  %v1016_v51 = vmul.f32 1.442695, %v3801_v49  ;;  %4425 = vpow2.f32 %v1014_v48  ;;  %v1311_v58 = vadd.f32 %v1310_v34, %v1309_v18  ;;  %vm857_vm3 = vcmp.eq.s32.totalorder %v5469_v31, %v5183_v27 }
 0x147   :  { %v4408_v22 = vpop.eup %4407  ;;  %v1312_v26 = vsel %vm1260_vm5, %v5521_v32, 0.0  ;;  %v1059_v39 = vadd.f32 1.0, %v4402_v59  ;;  %4427 = vrcp.f32 %v1057_v17  ;;  %v1194_v11 = vadd.f32 1.0, %v4400_v54  ;;  %v790_v17 = vpop.permute.xlu0 %789 }
 0x148   :  { %v4410_v37 = vpop.eup %4409  ;;  %v5543_v20 = vsel %vm857_vm3, %v1193_v28, 0.0  ;;  %v1018_v56 = vmul.f32 1.442695, %v3802_v5  ;;  %v1313_v8 = vadd.f32 %v1312_v26, %v1311_v58  ;;  %v1314_v47 = vsel %vm1260_vm5, %v5531_v33, 0.0 }
 0x149   :  { %v4412_v25 = vpop.eup %4411  ;;  %v1316_v31 = vsel %vm1260_vm5, %v5535_v62, 0.0  ;;  %4429 = vrcp.f32 %v1058_v14  ;;  %v1060_v29 = vadd.f32 1.0, %v4406_v41  ;;  %v1195_v49 = vadd.f32 1.0, %v4404_v55  ;;  %v793_v55 = vpop.permute.xlu1 %792 }
 0x14a   :  { %v4414_v24 = vpop.eup %4413  ;;  %v1196_v2 = vadd.f32 1.0, %v4408_v22  ;;  %4431 = vpow2.f32 %v1016_v51  ;;  %v1315_v44 = vadd.f32 %v1314_v47, %v1313_v8  ;;  %vm858_vm4 = vcmp.eq.s32.totalorder %v5488_v16, %v5183_v27 }
 0x14b   :  { %v4416_v48 = vpop.eup %4415  ;;  %v1318_v35 = vsel %vm1260_vm5, %v5543_v20, 0.0  ;;  %4433 = vrcp.f32 %v1059_v39  ;;  %v1061_v54 = vadd.f32 1.0, %v4410_v37  ;;  %v5553_v59 = vsel %vm858_vm4, %v1194_v11, 0.0 }
 0x14c   :  { %v4418_v34 = vpop.eup %4417  ;;  %v1197_v28 = vadd.f32 1.0, %v4412_v25  ;;  %4435 = vpow2.f32 %v1018_v56  ;;  %v1317_v5 = vadd.f32 %v1316_v31, %v1315_v44  ;;  %vm859_vm6 = vcmp.eq.s32.totalorder %v5494_v43, %v5183_v27 }
 0x14d   :  { %v4420_v18 = vpop.eup %4419  ;;  %vm860_vm7 = vcmp.eq.s32.totalorder %v5506_v15, %v5183_v27  ;;  %4437 = vrcp.f32 %v1060_v29  ;;  %v5559_v14 = vsel %vm859_vm6, %v1195_v49, 0.0  ;;  %vm861_vm8 = vcmp.eq.s32.totalorder %v5516_v60, %v5183_v27  ;;  %v796_v60 = vpop.permute.xlu0 %795 }
 0x14e   :  { %v4422_v16 = vpop.eup %4421  ;;  %v5561_v41 = vsel %vm860_vm7, %v1196_v2, 0.0  ;;  %v1319_v51 = vadd.f32 %v1318_v35, %v1317_v5  ;;  %v1320_v22 = vsel %vm1260_vm5, %v5553_v59, 0.0  ;;  %v1062_v26 = vadd.f32 1.0, %v4418_v34 }
 0x14f   :  { %v4424_v58 = vpop.eup %4423  ;;  %4439 = vrcp.f32 %v1061_v54  ;;  %v1198_v39 = vadd.f32 1.0, %v4414_v24  ;;  %v5567_v15 = vsel %vm861_vm8, %v1197_v28, 0.0  ;;  %v1063_v37 = vadd.f32 1.0, %v4420_v18  ;;  %v799_v54 = vpop.permute.xlu1 %798 }
 0x150   :  { %v4426_v43 = vpop.eup %4425  ;;  %v1321_v11 = vadd.f32 %v1320_v22, %v1319_v51  ;;  %v1322_v8 = vsel %vm1260_vm5, %v5559_v14, 0.0  ;;  %v1324_v25 = vsel %vm1260_vm5, %v5561_v41, 0.0  ;;  %v1064_v47 = vadd.f32 1.0, %v4422_v16 }
 0x151   :  { %v4428_v56 = vpop.eup %4427  ;;  %v1199_v31 = vadd.f32 1.0, %v4416_v48  ;;  %v1200_v29 = vadd.f32 1.0, %v4424_v58  ;;  %vm862_vm9 = vcmp.eq.s32.totalorder %v5533_v63, %v5183_v27  ;;  %v1326_v24 = vsel %vm1260_vm5, %v5567_v15, 0.0 }
 0x152   :  { %v1323_v49 = vadd.f32 %v1322_v8, %v1321_v11  ;;  %4441 = vrcp.f32 %v1062_v26  ;;  %v1065_v44 = vadd.f32 1.0, %v4426_v43  ;;  %v5577_v34 = vsel %vm862_vm9, %v1198_v39, 0.0  ;;  %v802_v43 = vpop.permute.xlu0 %801 }
 0x153   :  { %v4430_v2 = vpop.eup %4429  ;;  %v1201_v28 = vadd.f32 1.0, %v4428_v56  ;;  %4443 = vrcp.f32 %v1063_v37  ;;  %vm863_vm10 = vcmp.eq.s32.totalorder %v5541_v40, %v5183_v27  ;;  %vm864_vm11 = vcmp.eq.s32.totalorder %v790_v17, %v5183_v27 }
 0x154   :  { %v4432_v35 = vpop.eup %4431  ;;  %v1325_v5 = vadd.f32 %v1324_v25, %v1323_v49  ;;  %4445 = vrcp.f32 %v1064_v47  ;;  %v5582_v48 = vsel %vm863_vm10, %v1199_v31, 0.0  ;;  %v5584_v16 = vsel %vm864_vm11, %v1200_v29, 0.0  ;;  %v805_v25 = vpop.permute.xlu1 %804 }
 0x155   :  { %v4434_v18 = vpop.eup %4433  ;;  %vm865_vm12 = vcmp.eq.s32.totalorder %v793_v55, %v5183_v27  ;;  %v1328_v22 = vsel %vm1260_vm5, %v5577_v34, 0.0  ;;  %v1066_v26 = vadd.f32 1.0, %v4432_v35  ;;  %4447 = vrcp.f32 %v1065_v44 }
 0x156   :  { %v4436_v63 = vpop.eup %4435  ;;  %v1327_v51 = vadd.f32 %v1326_v24, %v1325_v5  ;;  %v1202_v39 = vadd.f32 1.0, %v4430_v2  ;;  %v5589_v40 = vsel %vm865_vm12, %v1201_v28, 0.0  ;;  %v1330_v11 = vsel %vm1260_vm5, %v5582_v48, 0.0  ;;  %v808_v28 = vpop.permute.xlu0 %807 }
 0x157   :  { %v4438_v58 = vpop.eup %4437  ;;  %v1332_v56 = vsel %vm1260_vm5, %v5584_v16, 0.0  ;;  %v1067_v8 = vadd.f32 1.0, %v4436_v63  ;;  %v1203_v55 = vadd.f32 1.0, %v4434_v18  ;;  %vm866_vm13 = vcmp.eq.s32.totalorder %v796_v60, %v5183_v27 }
 0x158   :  { %v1329_v17 = vadd.f32 %v1328_v22, %v1327_v51  ;;  %v1204_v47 = vadd.f32 1.0, %v4438_v58  ;;  %v1334_v29 = vsel %vm1260_vm5, %v5589_v40, 0.0  ;;  %4449 = vrcp.f32 %v1066_v26  ;;  %v5609_v51 = vld [vmem:[%s6339_s2] ss:$0 sm:$0xff] }
 0x159   :  { %v4440_v37 = vpop.eup %4439  ;;  %v5598_v49 = vsel %vm866_vm13, %v1202_v39, 0.0  ;;  %vm867_vm14 = vcmp.eq.s32.totalorder %v799_v54, %v5183_v27  ;;  %vm868_vm15 = vcmp.eq.s32.totalorder %v802_v43, %v5183_v27  ;;  %4451 = vrcp.f32 %v1067_v8  ;;  %v811_v27 = vpop.permute.xlu1 %810 }
 0x15a   :  { %v1331_v31 = vadd.f32 %v1330_v11, %v1329_v17  ;;  %v1205_v2 = vadd.f32 1.0, %v4440_v37  ;;  %v5602_v5 = vsel %vm867_vm14, %v1203_v55, 0.0  ;;  %v5604_v18 = vsel %vm868_vm15, %v1204_v47, 0.0 }
 0x15b   :  { %vm869_vm1 = vcmp.eq.s32.totalorder %v805_v25, %v5609_v51  ;;  %v1336_v54 = vsel %vm1260_vm5, %v5598_v49, 0.0  ;;  %v1338_v39 = vsel %vm1260_vm5, %v5602_v5, 0.0  ;;  %v1340_v17 = vsel %vm1260_vm5, %v5604_v18, 0.0  ;;  %v814_v25 = vpop.permute.xlu0 %813 }
 0x15c   :  { %v1333_v24 = vadd.f32 %v1332_v56, %v1331_v31  ;;  %v4442_v44 = vpop.eup %4441  ;;  %v5614_v22 = vsel %vm869_vm1, %v1205_v2, 0.0  ;;  %vm870_vm2 = vcmp.eq.s32.totalorder %v808_v28, %v5609_v51  ;;  %vm871_vm3 = vcmp.eq.s32.totalorder %v811_v27, %v5609_v51 }
 0x15d   :  { %v4444_v35 = vpop.eup %4443  ;;  %v1206_v58 = vadd.f32 1.0, %v4442_v44  ;;  %v1342_v8 = vsel %vm1260_vm5, %v5614_v22, 0.0  ;;  %vm872_vm4 = vcmp.eq.s32.totalorder %v814_v25, %v5609_v51  ;;  %v817_v2 = vpop.permute.xlu1 %816  ;;  %vm3549_vm10 = vcmask 1041409  }
 0x15e   :  { %v1335_v60 = vadd.f32 %v1334_v29, %v1333_v24  ;;  %v4446_v63 = vpop.eup %4445  ;;  %v1207_v37 = vadd.f32 1.0, %v4444_v35  ;;  %vm873_vm6 = vcmp.eq.s32.totalorder %v817_v2, %v5609_v51  ;;  %vm3551_vm11 = vcmask 1042434  }
 0x15f   :  { %v4448_v43 = vpop.eup %4447  ;;  %v1208_v11 = vadd.f32 1.0, %v4446_v63  ;;  %v5623_v55 = vsel %vm870_vm2, %v1206_v58, 0.0  ;;  %vm3553_vm12 = vcmask 1043459   ;;  %vm3555_vm13 = vcmask 1044484  }
 0x160   :  { %v1337_v26 = vadd.f32 %v1336_v54, %v1335_v60  ;;  %v1209_v47 = vadd.f32 1.0, %v4448_v43  ;;  %v5627_v24 = vsel %vm871_vm3, %v1207_v37, 0.0  ;;  %v1344_v60 = vsel %vm1260_vm5, %v5623_v55, 0.0  ;;  %v820_v43 = vpop.permute.xlu0 %819 }
 0x161   :  { %v5629_v44 = vsel %vm872_vm4, %v1208_v11, 0.0  ;;  %v1346_v27 = vsel %vm1260_vm5, %v5627_v24, 0.0  ;;  %vm874_vm7 = vcmp.eq.s32.totalorder %v820_v43, %v5609_v51  ;;  %v5646_v11 = vld [vmem:[%s6340_s6] sm:$0xff]   ;;  %vm3557_vm14 = vcmask 1045509  }
 0x162   :  { %v1339_v56 = vadd.f32 %v1338_v39, %v1337_v26  ;;  %v4450_v29 = vpop.eup %4449  ;;  %v5634_v54 = vsel %vm873_vm6, %v1209_v47, 0.0  ;;  %v1348_v26 = vsel %vm1260_vm5, %v5629_v44, 0.0  ;;  %4101 = vmatprep.subr.bf16.mxu1 %v5646_v11  ;;  %vm3559_vm15 = vcmask 1046534  }
 0x163   :  { %v4452_v28 = vpop.eup %4451  ;;  %v1210_v63 = vadd.f32 1.0, %v4450_v29  ;;  %v1350_v37 = vsel %vm1260_vm5, %v5634_v54, 0.0  ;;  %vm3561_vm1 = vcmask 1047559   ;;  %vm3697_vm2 = vcmask 31744  }
 0x164   :  { %v1341_v31 = vadd.f32 %v1340_v17, %v1339_v56  ;;  %v1211_v39 = vadd.f32 1.0, %v4452_v28  ;;  %v4489_v56 = vmov 0.0  }
 0x165   :  { %55 = vst.msk [vmem:[#allocation2 + $0x10] sm:$0xff] %vm52_vm0, %v4489_v56  ;;  %53 = vst.msk [vmem:[#allocation2] sm:$0xff] %vm52_vm0, %v4489_v56  ;;  %v5746_v25 = vsel %vm874_vm7, %v1210_v63, 0.0 }
 0x166   :  { %v1343_v35 = vadd.f32 %v1342_v8, %v1341_v31  ;;  %54 = vst.msk [vmem:[#allocation2 + $0x8] sm:$0xff] %vm52_vm0, %v4489_v56  ;;  %56 = vst.msk [vmem:[#allocation2 + $0x18] sm:$0xff] %vm52_vm0, %v4489_v56  ;;  %v823_v8 = vpop.permute.xlu1 %822  ;;  %v1352_v2 = vsel %vm1260_vm5, %v5746_v25, 0.0 }
 0x167   :  { %57 = vst.msk [vmem:[#allocation2 + $0x20] sm:$0xff] %vm52_vm0, %v4489_v56  ;;  %58 = vst.msk [vmem:[#allocation2 + $0x28] sm:$0xff] %vm52_vm0, %v4489_v56  ;;  %vm875_vm8 = vcmp.eq.s32.totalorder %v823_v8, %v5609_v51 }
 0x168   :  { %v1345_v58 = vadd.f32 %v1344_v60, %v1343_v35  ;;  %59 = vst.msk [vmem:[#allocation2 + $0x30] sm:$0xff] %vm52_vm0, %v4489_v56  ;;  %60 = vst.msk [vmem:[#allocation2 + $0x38] sm:$0xff] %vm52_vm0, %v4489_v56  ;;  %v5750_v31 = vsel %vm875_vm8, %v1211_v39, 0.0 }
 0x169   :  { %61 = vst.msk [vmem:[#allocation2 + $0x40] sm:$0xff] %vm52_vm0, %v4489_v56  ;;  %62 = vst.msk [vmem:[#allocation2 + $0x48] sm:$0xff] %vm52_vm0, %v4489_v56  ;;  %v1354_v28 = vsel %vm1260_vm5, %v5750_v31, 0.0 }
 0x16a   :  { %v1347_v17 = vadd.f32 %v1346_v27, %v1345_v58  ;;  %63 = vst.msk [vmem:[#allocation2 + $0x50] sm:$0xff] %vm52_vm0, %v4489_v56  ;;  %64 = vst.msk [vmem:[#allocation2 + $0x58] sm:$0xff] %vm52_vm0, %v4489_v56 }
 0x16b   :  { %65 = vst.msk [vmem:[#allocation2 + $0x60] sm:$0xff] %vm52_vm0, %v4489_v56  ;;  %66 = vst.msk [vmem:[#allocation2 + $0x68] sm:$0xff] %vm52_vm0, %v4489_v56 }
 0x16c   :  { %67 = vst.msk [vmem:[#allocation2 + $0x70] sm:$0xff] %vm52_vm0, %v4489_v56  ;;  %68 = vst.msk [vmem:[#allocation2 + $0x78] sm:$0xff] %vm52_vm0, %v4489_v56  ;;  %v1349_v47 = vadd.f32 %v1348_v26, %v1347_v17 }
 0x16d   :  { %69 = vst.msk [vmem:[#allocation2 + $0x80] sm:$0xff] %vm52_vm0, %v4489_v56  ;;  %70 = vst.msk [vmem:[#allocation2 + $0x88] sm:$0xff] %vm52_vm0, %v4489_v56 }
 0x16e   :  { %71 = vst.msk [vmem:[#allocation2 + $0x90] sm:$0xff] %vm52_vm0, %v4489_v56  ;;  %72 = vst.msk [vmem:[#allocation2 + $0x98] sm:$0xff] %vm52_vm0, %v4489_v56  ;;  %v1351_v29 = vadd.f32 %v1350_v37, %v1349_v47 }
 0x16f   :  { %73 = vst.msk [vmem:[#allocation2 + $0xa0] sm:$0xff] %vm52_vm0, %v4489_v56  ;;  %74 = vst.msk [vmem:[#allocation2 + $0xa8] sm:$0xff] %vm52_vm0, %v4489_v56 }
 0x170   :  { %75 = vst.msk [vmem:[#allocation2 + $0xb0] sm:$0xff] %vm52_vm0, %v4489_v56  ;;  %76 = vst.msk [vmem:[#allocation2 + $0xb8] sm:$0xff] %vm52_vm0, %v4489_v56  ;;  %v1353_v35 = vadd.f32 %v1352_v2, %v1351_v29 }
 0x171   :  { %77 = vst.msk [vmem:[#allocation2 + $0xc0] sm:$0xff] %vm52_vm0, %v4489_v56  ;;  %78 = vst.msk [vmem:[#allocation2 + $0xc8] sm:$0xff] %vm52_vm0, %v4489_v56 }
 0x172   :  { %79 = vst.msk [vmem:[#allocation2 + $0xd0] sm:$0xff] %vm52_vm0, %v4489_v56  ;;  %80 = vst.msk [vmem:[#allocation2 + $0xd8] sm:$0xff] %vm52_vm0, %v4489_v56  ;;  %v1355_v60 = vadd.f32 %v1354_v28, %v1353_v35 }
 0x173   :  { %81 = vst.msk [vmem:[#allocation2 + $0xe0] sm:$0xff] %vm52_vm0, %v4489_v56  ;;  %82 = vst.msk [vmem:[#allocation2 + $0xe8] sm:$0xff] %vm52_vm0, %v4489_v56 }
 0x174   :  { %83 = vst.msk [vmem:[#allocation2 + $0xf0] sm:$0xff] %vm52_vm0, %v4489_v56  ;;  %84 = vst.msk [vmem:[#allocation2 + $0xf8] sm:$0xff] %vm52_vm0, %v4489_v56  ;;  %v1356_v58 = vrot.slane %v1355_v60, 4 }
 0x175   :  { %85 = vst.msk [vmem:[#allocation2 + $0x100] sm:$0xff] %vm52_vm0, %v4489_v56  ;;  %86 = vst.msk [vmem:[#allocation2 + $0x108] sm:$0xff] %vm52_vm0, %v4489_v56 }
 0x176   :  { %87 = vst.msk [vmem:[#allocation2 + $0x110] sm:$0xff] %vm52_vm0, %v4489_v56  ;;  %88 = vst.msk [vmem:[#allocation2 + $0x118] sm:$0xff] %vm52_vm0, %v4489_v56  ;;  %v1357_v27 = vadd.f32 %v1356_v58, %v1355_v60 }
 0x177   :  { %89 = vst.msk [vmem:[#allocation2 + $0x120] sm:$0xff] %vm52_vm0, %v4489_v56  ;;  %90 = vst.msk [vmem:[#allocation2 + $0x128] sm:$0xff] %vm52_vm0, %v4489_v56 }
 0x178   :  { %91 = vst.msk [vmem:[#allocation2 + $0x130] sm:$0xff] %vm52_vm0, %v4489_v56  ;;  %92 = vst.msk [vmem:[#allocation2 + $0x138] sm:$0xff] %vm52_vm0, %v4489_v56  ;;  %v1358_v63 = vrot.slane %v1357_v27, 2 }
 0x179   :  { %93 = vst.msk [vmem:[#allocation2 + $0x140] sm:$0xff] %vm52_vm0, %v4489_v56  ;;  %94 = vst.msk [vmem:[#allocation2 + $0x148] sm:$0xff] %vm52_vm0, %v4489_v56 }
 0x17a   :  { %95 = vst.msk [vmem:[#allocation2 + $0x150] sm:$0xff] %vm52_vm0, %v4489_v56  ;;  %96 = vst.msk [vmem:[#allocation2 + $0x158] sm:$0xff] %vm52_vm0, %v4489_v56  ;;  %v1359_v43 = vadd.f32 %v1358_v63, %v1357_v27 }
 0x17b   :  { %97 = vst.msk [vmem:[#allocation2 + $0x160] sm:$0xff] %vm52_vm0, %v4489_v56  ;;  %98 = vst.msk [vmem:[#allocation2 + $0x168] sm:$0xff] %vm52_vm0, %v4489_v56 }
 0x17c   :  { %99 = vst.msk [vmem:[#allocation2 + $0x170] sm:$0xff] %vm52_vm0, %v4489_v56  ;;  %100 = vst.msk [vmem:[#allocation2 + $0x178] sm:$0xff] %vm52_vm0, %v4489_v56  ;;  %v1360_v26 = vrot.slane %v1359_v43, 1 }
 0x17e   :  { %v1361_v17 = vadd.f32 %v1360_v26, %v1359_v43 }
 0x180   :  { %vm1362_vm9 = vcmp.eq.f32.partialorder %v1361_v17, 0.0 }
 0x181   :  { %v1363_v51 = vsel %vm1362_vm9, 1.0, %v1361_v17 }
 0x182   :  { %4453 = vrcp.f32 %v1363_v51 }
 0x18c   :  { %v5756_v39 = vpop.eup %4453 }
 0x18d   :  { %v1365_v37 = vmul.f32 %v5756_v39, %v5203_v36  ;;  %v1366_v8 = vmul.f32 %v5756_v39, %v5198_v21  ;;  %v1367_v47 = vmul.f32 %v5756_v39, %v5205_v38  ;;  %v1368_v29 = vmul.f32 %v5756_v39, %v5231_v19  ;;  %v4254_v21 = vld [vmem:[%s6340_s6 + $0x8] sm:$0xff]   ;;  %v6353_v19 = vld [vmem:[#allocation3_spill] sm:$0xff] }
 0x18e   :  { %v1369_v2 = vmul.f32 %v5756_v39, %v5240_v12  ;;  %v1370_v35 = vmul.f32 %v5756_v39, %v5263_v45  ;;  %v1371_v38 = vmul.f32 %v5756_v39, %v5286_v0  ;;  %v1372_v12 = vmul.f32 %v5756_v39, %v6353_v19 }
 0x18f   :  { %v1461_v28 = vpack.c.bf16 %v1366_v8, %v1365_v37  ;;  %v1462_v60 = vpack.c.bf16 %v1368_v29, %v1367_v47  ;;  %v1373_v45 = vmul.f32 %v5756_v39, %v5318_v9  ;;  %v1374_v58 = vmul.f32 %v5756_v39, %v5339_v50 }
 0x190   :  { %v1463_v36 = vpack.c.bf16 %v1370_v35, %v1369_v2  ;;  %v1464_v27 = vpack.c.bf16 %v1372_v12, %v1371_v38  ;;  %v1375_v0 = vmul.f32 %v5756_v39, %v5313_v7  ;;  %v1377_v9 = vmul.f32 %v5756_v39, %v5359_v30 }
 0x191   :  { %4053 = vmatprep.mubr.msk.bf16.mxu1 %vm1260_vm5, %v1461_v28  ;;  %v1465_v63 = vpack.c.bf16 %v1374_v58, %v1373_v45  ;;  %v1378_v50 = vmul.f32 %v5756_v39, %v5386_v53  ;;  %v1379_v51 = vmul.f32 %v5756_v39, %v5351_v3  ;;  %v1380_v7 = vmul.f32 %v5756_v39, %v5381_v4 }
 0x192   :  { %4054 = vmatmul.mubr.msk.bf16.vlgmr.msra.gmra.mrb[0].mxu1 %vm1260_vm5, %v1462_v60  ;;  %v1381_v37 = vmul.f32 %v5756_v39, %v5419_v61  ;;  %v1382_v30 = vmul.f32 %v5756_v39, %v5426_v52  ;;  %v1383_v47 = vmul.f32 %v5756_v39, %v5397_v42  ;;  %v1384_v3 = vmul.f32 %v5756_v39, %v5440_v6 }
 0x193   :  { %4057 = vmatprep.mubr.msk.bf16.mxu1 %vm1260_vm5, %v1463_v36  ;;  %4102 = vmatpush3.bf16.msra.mxu1 %v5646_v11  ;;  %v6354_v11 = vld [vmem:[#allocation4_spill] sm:$0xff]  ;;  %v1467_v17 = vpack.c.bf16 %v1378_v50, %v1377_v9  ;;  %v1468_v8 = vpack.c.bf16 %v1380_v7, %v1379_v51  ;;  %v1385_v4 = vmul.f32 %v5756_v39, %v5455_v10 }
 0x194   :  { %4103 = vmatprep.subr.bf16.mxu1 %v4254_v21  ;;  %v1376_v43 = vmul.f32 %v5756_v39, %v6354_v11  ;;  %v1469_v53 = vpack.c.bf16 %v1382_v30, %v1381_v37  ;;  %v1386_v61 = vmul.f32 %v5756_v39, %v5467_v13  ;;  %v1470_v29 = vpack.c.bf16 %v1384_v3, %v1383_v47  ;;  %v1414_v9 = vld [vmem:[#allocation2 + $0x8] sm:$0xff]  ;;  %v1419_v37 = vld [vmem:[#allocation2 + $0x30] sm:$0xff]  ;;  %v1417_v30 = vld [vmem:[#allocation2 + $0x20] sm:$0xff] }
 0x195   :  { %v1387_v2 = vmul.f32 %v5756_v39, %v5450_v23  ;;  %v1388_v42 = vmul.f32 %v5756_v39, %v5481_v1  ;;  %v1389_v6 = vmul.f32 %v5756_v39, %v5502_v46  ;;  %v1390_v10 = vmul.f32 %v5756_v39, %v5511_v57 }
 0x196   :  { %v1466_v26 = vpack.c.bf16 %v1376_v43, %v1375_v0  ;;  %v1471_v52 = vpack.c.bf16 %v1386_v61, %v1385_v4  ;;  %v1391_v28 = vmul.f32 %v5756_v39, %v5521_v32  ;;  %v1392_v23 = vmul.f32 %v5756_v39, %v5531_v33  ;;  %v1418_v4 = vld [vmem:[#allocation2 + $0x28] sm:$0xff] }
 0x197   :  { %4104 = vmatpush3.bf16.msra.mxu1 %v4254_v21  ;;  %v1472_v35 = vpack.c.bf16 %v1388_v42, %v1387_v2  ;;  %v1473_v13 = vpack.c.bf16 %v1390_v10, %v1389_v6  ;;  %v1393_v1 = vmul.f32 %v5756_v39, %v5535_v62  ;;  %v1394_v46 = vmul.f32 %v5756_v39, %v5543_v20 }
 0x198   :  { %4205 = vmatprep.subr.bf16.mxu1 %v4489_v56  ;;  %v1474_v60 = vpack.c.bf16 %v1392_v23, %v1391_v28  ;;  %v1395_v36 = vmul.f32 %v5756_v39, %v5553_v59  ;;  %v1396_v32 = vmul.f32 %v5756_v39, %v5559_v14  ;;  %v1397_v33 = vmul.f32 %v5756_v39, %v5561_v41 }
 0x199   :  { %v1475_v57 = vpack.c.bf16 %v1394_v46, %v1393_v1  ;;  %v1398_v62 = vmul.f32 %v5756_v39, %v5567_v15  ;;  %v1399_v38 = vmul.f32 %v5756_v39, %v5577_v34  ;;  %v1400_v59 = vmul.f32 %v5756_v39, %v5582_v48  ;;  %v1421_v1 = vld [vmem:[#allocation2 + $0x40] sm:$0xff] }
 0x19a   :  { %4058 = vmatmul.mubr.msk.bf16.gmra.mrb[4].mxu1 %vm1260_vm5, %v1464_v27  ;;  %v1476_v21 = vpack.c.bf16 %v1396_v32, %v1395_v36  ;;  %v1401_v14 = vmul.f32 %v5756_v39, %v5584_v16  ;;  %v1402_v41 = vmul.f32 %v5756_v39, %v5589_v40  ;;  %v1403_v12 = vmul.f32 %v5756_v39, %v5598_v49 }
 0x19b   :  { %4061 = vmatprep.mubr.msk.bf16.mxu1 %vm1260_vm5, %v1465_v63  ;;  %v1477_v20 = vpack.c.bf16 %v1398_v62, %v1397_v33  ;;  %v1478_v19 = vpack.c.bf16 %v1400_v59, %v1399_v38  ;;  %v1404_v34 = vmul.f32 %v5756_v39, %v5602_v5  ;;  %v1405_v48 = vmul.f32 %v5756_v39, %v5604_v18  ;;  %v1422_v33 = vld [vmem:[#allocation2 + $0x48] sm:$0xff] }
 0x19c   :  { %v1479_v15 = vpack.c.bf16 %v1402_v41, %v1401_v14  ;;  %v1406_v16 = vmul.f32 %v5756_v39, %v5614_v22  ;;  %v1407_v58 = vmul.f32 %v5756_v39, %v5623_v55  ;;  %v1408_v49 = vmul.f32 %v5756_v39, %v5627_v24  ;;  %v4255_v24 = vld [vmem:[%s6341_s8] sm:$0xff]  }
 0x19d   :  { %v1480_v45 = vpack.c.bf16 %v1404_v34, %v1403_v12  ;;  %v1409_v5 = vmul.f32 %v5756_v39, %v5629_v44  ;;  %v1410_v18 = vmul.f32 %v5756_v39, %v5634_v54  ;;  %v1411_v63 = vmul.f32 %v5756_v39, %v5746_v25  ;;  %v4256_v44 = vld [vmem:[%s6341_s8 + $0x8] sm:$0xff]   ;;  %4153 = vmatprep.subr.bf16.mxu0 %v4255_v24  ;;  %v1415_v54 = vld [vmem:[#allocation2 + $0x10] sm:$0xff]  ;;  %v1413_v25 = vld [vmem:[#allocation2] sm:$0xff] }
 0x19e   :  { %v1481_v40 = vpack.c.bf16 %v1406_v16, %v1405_v48  ;;  %v1482_v27 = vpack.c.bf16 %v1408_v49, %v1407_v58  ;;  %v1412_v55 = vmul.f32 %v5756_v39, %v5750_v31  ;;  %4154 = vmatpush3.bf16.msra.mxu0 %v4255_v24  ;;  %v1416_v39 = vld [vmem:[#allocation2 + $0x18] sm:$0xff]  ;;  %v1425_v48 = vld [vmem:[#allocation2 + $0x60] sm:$0xff] }
 0x19f   :  { %v1483_v22 = vpack.c.bf16 %v1410_v18, %v1409_v5  ;;  %4155 = vmatprep.subr.bf16.mxu0 %v4256_v44  ;;  %v1426_v5 = vld [vmem:[#allocation2 + $0x68] sm:$0xff] }
 0x1a0   :  { %v1484_v0 = vpack.c.bf16 %v1412_v55, %v1411_v63 }
 0x1a2   :  { %4062 = vmatmul.mubr.msk.bf16.gmra.mrb[8].mxu1 %vm1260_vm5, %v1466_v26  ;;  %4156 = vmatpush3.bf16.msra.mxu0 %v4256_v44 }
 0x1a3   :  { %4065 = vmatprep.mubr.msk.bf16.mxu1 %vm1260_vm5, %v1467_v17  ;;  %4213 = vmatprep.subr.bf16.mxu0 %v4489_v56 }
 0x1aa   :  { %4066 = vmatmul.mubr.msk.bf16.gmra.mrb[12].mxu1 %vm1260_vm5, %v1468_v8 }
 0x1ab   :  { %4069 = vmatprep.mubr.msk.bf16.mxu1 %vm1260_vm5, %v1469_v53  ;;  %v1420_v53 = vld [vmem:[#allocation2 + $0x38] sm:$0xff] }
 0x1b2   :  { %4070 = vmatmul.mubr.msk.bf16.gmra.mrb[16].mxu1 %vm1260_vm5, %v1470_v29 }
 0x1b3   :  { %4073 = vmatprep.mubr.msk.bf16.mxu1 %vm1260_vm5, %v1471_v52 }
 0x1ba   :  { %4074 = vmatmul.mubr.msk.bf16.gmra.mrb[20].mxu1 %vm1260_vm5, %v1472_v35 }
 0x1bb   :  { %4077 = vmatprep.mubr.msk.bf16.mxu1 %vm1260_vm5, %v1473_v13  ;;  %v1423_v13 = vld [vmem:[#allocation2 + $0x50] sm:$0xff] }
 0x1c2   :  { %4078 = vmatmul.mubr.msk.bf16.gmra.mrb[24].mxu1 %vm1260_vm5, %v1474_v60 }
 0x1c3   :  { %4081 = vmatprep.mubr.msk.bf16.mxu1 %vm1260_vm5, %v1475_v57  ;;  %v1424_v57 = vld [vmem:[#allocation2 + $0x58] sm:$0xff] }
 0x1ca   :  { %4082 = vmatmul.mubr.msk.bf16.gmra.mrb[28].mxu1 %vm1260_vm5, %v1476_v21 }
 0x1cb   :  { %4085 = vmatprep.mubr.msk.bf16.mxu1 %vm1260_vm5, %v1477_v20 }
 0x1d2   :  { %4086 = vmatmul.mubr.msk.bf16.gmra.mrb[32].mxu1 %vm1260_vm5, %v1478_v19 }
 0x1d3   :  { %4089 = vmatprep.mubr.msk.bf16.mxu1 %vm1260_vm5, %v1479_v15  ;;  %v1427_v15 = vld [vmem:[#allocation2 + $0x70] sm:$0xff] }
 0x1da   :  { %4090 = vmatmul.mubr.msk.bf16.gmra.mrb[36].mxu1 %vm1260_vm5, %v1480_v45 }
 0x1db   :  { %4093 = vmatprep.mubr.msk.bf16.mxu1 %vm1260_vm5, %v1481_v40  ;;  %v1428_v40 = vld [vmem:[#allocation2 + $0x78] sm:$0xff] }
 0x1e2   :  { %4094 = vmatmul.mubr.msk.bf16.gmra.mrb[40].mxu1 %vm1260_vm5, %v1482_v27 }
 0x1e3   :  { %4097 = vmatprep.mubr.msk.bf16.mxu1 %vm1260_vm5, %v1483_v22 }
 0x1ea   :  { %4098 = vmatmul.mubr.msk.bf16.gmra.mrb[44].mxu1 %vm1260_vm5, %v1484_v0  ;;  %vm4490_vm5 = vmmov 0  }
 0x265   :  { %v4055_v31 = vpop.f32.mrb[0].mxu1 }
 0x266   :  { %v1792_v11 = vadd.f32 %v4055_v31, %v1415_v54  ;;  %v1599_v43 = vpop.f32.mrb[1].mxu1  ;;  %v1431_v54 = vld [vmem:[#allocation2 + $0x90] sm:$0xff] }
 0x267   :  { %v1790_v50 = vadd.f32 %v1599_v43, %v1413_v25  ;;  %v4056_v26 = vpop.f32.mrb[2].mxu1 }
 0x268   :  { %1840 = vst.msk [vmem:[#allocation2 + $0x10] sm:$0xff] %vm52_vm0, %v1792_v11  ;;  %v1793_v17 = vadd.f32 %v4056_v26, %v1416_v39  ;;  %v1602_v51 = vpop.f32.mrb[3].mxu1  ;;  %v1429_v39 = vld [vmem:[#allocation2 + $0x80] sm:$0xff] }
 0x269   :  { %1838 = vst.msk [vmem:[#allocation2] sm:$0xff] %vm52_vm0, %v1790_v50  ;;  %v1791_v7 = vadd.f32 %v1602_v51, %v1414_v9  ;;  %v1432_v9 = vld [vmem:[#allocation2 + $0x98] sm:$0xff] }
 0x26a   :  { %1841 = vst.msk [vmem:[#allocation2 + $0x18] sm:$0xff] %vm52_vm0, %v1793_v17  ;;  %v1430_v17 = vld [vmem:[#allocation2 + $0x88] sm:$0xff] }
 0x26b   :  { %1839 = vst.msk [vmem:[#allocation2 + $0x8] sm:$0xff] %vm52_vm0, %v1791_v7 }
 0x26d   :  { %v4059_v8 = vpop.f32.mrb[4].mxu1 }
 0x26e   :  { %v1796_v47 = vadd.f32 %v4059_v8, %v1419_v37  ;;  %v1615_v3 = vpop.f32.mrb[5].mxu1 }
 0x26f   :  { %v1794_v61 = vadd.f32 %v1615_v3, %v1417_v30  ;;  %v4060_v29 = vpop.f32.mrb[6].mxu1  ;;  %v1891_v23 = vld [vmem:[#allocation2 + $0x10] sm:$0xff] }
 0x270   :  { %1844 = vst.msk [vmem:[#allocation2 + $0x30] sm:$0xff] %vm52_vm0, %v1796_v47  ;;  %v1797_v52 = vadd.f32 %v4060_v29, %v1420_v53  ;;  %v1618_v2 = vpop.f32.mrb[7].mxu1  ;;  %v1889_v10 = vld [vmem:[#allocation2] sm:$0xff] }
 0x271   :  { %1842 = vst.msk [vmem:[#allocation2 + $0x20] sm:$0xff] %vm52_vm0, %v1794_v61  ;;  %v1795_v42 = vadd.f32 %v1618_v2, %v1418_v4  ;;  %v1892_v6 = vld [vmem:[#allocation2 + $0x18] sm:$0xff]  ;;  %v1435_v4 = vld [vmem:[#allocation2 + $0xb0] sm:$0xff] }
 0x272   :  { %1845 = vst.msk [vmem:[#allocation2 + $0x38] sm:$0xff] %vm52_vm0, %v1797_v52  ;;  %v1890_v35 = vld [vmem:[#allocation2 + $0x8] sm:$0xff]  ;;  %v1938_v46 = vpack.c.bf16 %v1892_v6, %v1891_v23  ;;  %v1433_v52 = vld [vmem:[#allocation2 + $0xa0] sm:$0xff]  ;;  %v1436_v6 = vld [vmem:[#allocation2 + $0xb8] sm:$0xff] }
 0x273   :  { %1843 = vst.msk [vmem:[#allocation2 + $0x28] sm:$0xff] %vm52_vm0, %v1795_v42  ;;  %v1937_v28 = vpack.c.bf16 %v1890_v35, %v1889_v10 }
 0x275   :  { %v4063_v60 = vpop.f32.mrb[8].mxu1  ;;  %4105 = vmatprep.mubr.msk.bf16.mxu1 %vm52_vm0, %v1937_v28 }
 0x276   :  { %v1800_v36 = vadd.f32 %v4063_v60, %v1423_v13  ;;  %v1631_v32 = vpop.f32.mrb[9].mxu1  ;;  %4106 = vmatmul.mubr.msk.bf16.vlgmr.msra.gmra.mrb[48].mxu1 %vm52_vm0, %v1938_v46  ;;  %v1434_v13 = vld [vmem:[#allocation2 + $0xa8] sm:$0xff] }
 0x277   :  { %v1798_v62 = vadd.f32 %v1631_v32, %v1421_v1  ;;  %v4064_v21 = vpop.f32.mrb[10].mxu1  ;;  %v1895_v34 = vld [vmem:[#allocation2 + $0x30] sm:$0xff] }
 0x278   :  { %1848 = vst.msk [vmem:[#allocation2 + $0x50] sm:$0xff] %vm52_vm0, %v1800_v36  ;;  %v1801_v20 = vadd.f32 %v4064_v21, %v1424_v57  ;;  %v1634_v38 = vpop.f32.mrb[11].mxu1  ;;  %v1893_v41 = vld [vmem:[#allocation2 + $0x20] sm:$0xff] }
 0x279   :  { %1846 = vst.msk [vmem:[#allocation2 + $0x40] sm:$0xff] %vm52_vm0, %v1798_v62  ;;  %v1799_v59 = vadd.f32 %v1634_v38, %v1422_v33  ;;  %v1896_v14 = vld [vmem:[#allocation2 + $0x38] sm:$0xff]  ;;  %v1439_v33 = vld [vmem:[#allocation2 + $0xd0] sm:$0xff] }
 0x27a   :  { %1849 = vst.msk [vmem:[#allocation2 + $0x58] sm:$0xff] %vm52_vm0, %v1801_v20  ;;  %v1894_v19 = vld [vmem:[#allocation2 + $0x28] sm:$0xff]  ;;  %v1940_v16 = vpack.c.bf16 %v1896_v14, %v1895_v34  ;;  %v1437_v20 = vld [vmem:[#allocation2 + $0xc0] sm:$0xff]  ;;  %v1440_v14 = vld [vmem:[#allocation2 + $0xd8] sm:$0xff] }
 0x27b   :  { %1847 = vst.msk [vmem:[#allocation2 + $0x48] sm:$0xff] %vm52_vm0, %v1799_v59  ;;  %v1939_v12 = vpack.c.bf16 %v1894_v19, %v1893_v41 }
 0x27d   :  { %v4067_v45 = vpop.f32.mrb[12].mxu1  ;;  %4109 = vmatprep.mubr.msk.bf16.mxu1 %vm52_vm0, %v1939_v12 }
 0x27e   :  { %v1804_v58 = vadd.f32 %v4067_v45, %v1427_v15  ;;  %v1647_v49 = vpop.f32.mrb[13].mxu1  ;;  %4110 = vmatmul.mubr.msk.bf16.gmra.mrb[52].mxu1 %vm52_vm0, %v1940_v16  ;;  %v1438_v15 = vld [vmem:[#allocation2 + $0xc8] sm:$0xff] }
 0x27f   :  { %v1802_v18 = vadd.f32 %v1647_v49, %v1425_v48  ;;  %v4068_v27 = vpop.f32.mrb[14].mxu1  ;;  %v1899_v31 = vld [vmem:[#allocation2 + $0x50] sm:$0xff] }
 0x280   :  { %1852 = vst.msk [vmem:[#allocation2 + $0x70] sm:$0xff] %vm52_vm0, %v1804_v58  ;;  %v1805_v22 = vadd.f32 %v4068_v27, %v1428_v40  ;;  %v1650_v63 = vpop.f32.mrb[15].mxu1  ;;  %v1897_v24 = vld [vmem:[#allocation2 + $0x40] sm:$0xff] }
 0x281   :  { %1850 = vst.msk [vmem:[#allocation2 + $0x60] sm:$0xff] %vm52_vm0, %v1802_v18  ;;  %v1803_v55 = vadd.f32 %v1650_v63, %v1426_v5  ;;  %v1900_v0 = vld [vmem:[#allocation2 + $0x58] sm:$0xff]  ;;  %v1443_v5 = vld [vmem:[#allocation2 + $0xf0] sm:$0xff] }
 0x282   :  { %1853 = vst.msk [vmem:[#allocation2 + $0x78] sm:$0xff] %vm52_vm0, %v1805_v22  ;;  %v1898_v44 = vld [vmem:[#allocation2 + $0x48] sm:$0xff]  ;;  %v1942_v11 = vpack.c.bf16 %v1900_v0, %v1899_v31  ;;  %v1441_v22 = vld [vmem:[#allocation2 + $0xe0] sm:$0xff]  ;;  %v1444_v0 = vld [vmem:[#allocation2 + $0xf8] sm:$0xff] }
 0x283   :  { %1851 = vst.msk [vmem:[#allocation2 + $0x68] sm:$0xff] %vm52_vm0, %v1803_v55  ;;  %v1941_v25 = vpack.c.bf16 %v1898_v44, %v1897_v24 }
 0x285   :  { %v4071_v43 = vpop.f32.mrb[16].mxu1  ;;  %4113 = vmatprep.mubr.msk.bf16.mxu1 %vm52_vm0, %v1941_v25 }
 0x286   :  { %v1808_v50 = vadd.f32 %v4071_v43, %v1431_v54  ;;  %v1663_v26 = vpop.f32.mrb[17].mxu1  ;;  %4114 = vmatmul.mubr.msk.bf16.gmra.mrb[56].mxu1 %vm52_vm0, %v1942_v11  ;;  %v1442_v54 = vld [vmem:[#allocation2 + $0xe8] sm:$0xff] }
 0x287   :  { %v1806_v51 = vadd.f32 %v1663_v26, %v1429_v39  ;;  %v4072_v7 = vpop.f32.mrb[18].mxu1  ;;  %v1903_v29 = vld [vmem:[#allocation2 + $0x70] sm:$0xff] }
 0x288   :  { %1856 = vst.msk [vmem:[#allocation2 + $0x90] sm:$0xff] %vm52_vm0, %v1808_v50  ;;  %v1809_v37 = vadd.f32 %v4072_v7, %v1432_v9  ;;  %v1666_v30 = vpop.f32.mrb[19].mxu1  ;;  %v1901_v47 = vld [vmem:[#allocation2 + $0x60] sm:$0xff] }
 0x289   :  { %1854 = vst.msk [vmem:[#allocation2 + $0x80] sm:$0xff] %vm52_vm0, %v1806_v51  ;;  %v1807_v8 = vadd.f32 %v1666_v30, %v1430_v17  ;;  %v1904_v53 = vld [vmem:[#allocation2 + $0x78] sm:$0xff]  ;;  %v1447_v17 = vld [vmem:[#allocation2 + $0x110] sm:$0xff] }
 0x28a   :  { %1857 = vst.msk [vmem:[#allocation2 + $0x98] sm:$0xff] %vm52_vm0, %v1809_v37  ;;  %v1902_v3 = vld [vmem:[#allocation2 + $0x68] sm:$0xff]  ;;  %v1944_v2 = vpack.c.bf16 %v1904_v53, %v1903_v29  ;;  %v1445_v37 = vld [vmem:[#allocation2 + $0x100] sm:$0xff]  ;;  %v1448_v53 = vld [vmem:[#allocation2 + $0x118] sm:$0xff] }
 0x28b   :  { %1855 = vst.msk [vmem:[#allocation2 + $0x88] sm:$0xff] %vm52_vm0, %v1807_v8  ;;  %v1943_v61 = vpack.c.bf16 %v1902_v3, %v1901_v47 }
 0x28d   :  { %v4075_v42 = vpop.f32.mrb[20].mxu1  ;;  %4117 = vmatprep.mubr.msk.bf16.mxu1 %vm52_vm0, %v1943_v61 }
 0x28e   :  { %v1812_v10 = vadd.f32 %v4075_v42, %v1435_v4  ;;  %v1679_v35 = vpop.f32.mrb[21].mxu1  ;;  %4118 = vmatmul.mubr.msk.bf16.gmra.mrb[60].mxu1 %vm52_vm0, %v1944_v2  ;;  %v1446_v4 = vld [vmem:[#allocation2 + $0x108] sm:$0xff] }
 0x28f   :  { %v1810_v28 = vadd.f32 %v1679_v35, %v1433_v52  ;;  %v4076_v23 = vpop.f32.mrb[22].mxu1  ;;  %v1907_v21 = vld [vmem:[#allocation2 + $0x90] sm:$0xff] }
 0x290   :  { %1860 = vst.msk [vmem:[#allocation2 + $0xb0] sm:$0xff] %vm52_vm0, %v1812_v10  ;;  %v1813_v1 = vadd.f32 %v4076_v23, %v1436_v6  ;;  %v1682_v46 = vpop.f32.mrb[23].mxu1  ;;  %v1905_v36 = vld [vmem:[#allocation2 + $0x80] sm:$0xff] }
 0x291   :  { %1858 = vst.msk [vmem:[#allocation2 + $0xa0] sm:$0xff] %vm52_vm0, %v1810_v28  ;;  %v1811_v60 = vadd.f32 %v1682_v46, %v1434_v13  ;;  %v1908_v57 = vld [vmem:[#allocation2 + $0x98] sm:$0xff]  ;;  %v1451_v13 = vld [vmem:[#allocation2 + $0x130] sm:$0xff] }
 0x292   :  { %1861 = vst.msk [vmem:[#allocation2 + $0xb8] sm:$0xff] %vm52_vm0, %v1813_v1  ;;  %v1906_v32 = vld [vmem:[#allocation2 + $0x88] sm:$0xff]  ;;  %v1946_v38 = vpack.c.bf16 %v1908_v57, %v1907_v21  ;;  %v1449_v1 = vld [vmem:[#allocation2 + $0x120] sm:$0xff]  ;;  %v1452_v57 = vld [vmem:[#allocation2 + $0x138] sm:$0xff] }
 0x293   :  { %1859 = vst.msk [vmem:[#allocation2 + $0xa8] sm:$0xff] %vm52_vm0, %v1811_v60  ;;  %v1945_v62 = vpack.c.bf16 %v1906_v32, %v1905_v36 }
 0x295   :  { %v4079_v59 = vpop.f32.mrb[24].mxu1  ;;  %4121 = vmatprep.mubr.msk.bf16.mxu1 %vm52_vm0, %v1945_v62 }
 0x296   :  { %v1816_v41 = vadd.f32 %v4079_v59, %v1439_v33  ;;  %v1695_v19 = vpop.f32.mrb[25].mxu1  ;;  %4122 = vmatmul.mubr.msk.bf16.gmra.mrb[64].mxu1 %vm52_vm0, %v1946_v38  ;;  %v1450_v33 = vld [vmem:[#allocation2 + $0x128] sm:$0xff] }
 0x297   :  { %v1814_v12 = vadd.f32 %v1695_v19, %v1437_v20  ;;  %v4080_v34 = vpop.f32.mrb[26].mxu1  ;;  %v1911_v27 = vld [vmem:[#allocation2 + $0xb0] sm:$0xff] }
 0x298   :  { %1864 = vst.msk [vmem:[#allocation2 + $0xd0] sm:$0xff] %vm52_vm0, %v1816_v41  ;;  %v1817_v48 = vadd.f32 %v4080_v34, %v1440_v14  ;;  %v1698_v16 = vpop.f32.mrb[27].mxu1  ;;  %v1909_v58 = vld [vmem:[#allocation2 + $0xa0] sm:$0xff] }
 0x299   :  { %1862 = vst.msk [vmem:[#allocation2 + $0xc0] sm:$0xff] %vm52_vm0, %v1814_v12  ;;  %v1815_v45 = vadd.f32 %v1698_v16, %v1438_v15  ;;  %v1912_v40 = vld [vmem:[#allocation2 + $0xb8] sm:$0xff]  ;;  %v1455_v15 = vld [vmem:[#allocation2 + $0x150] sm:$0xff] }
 0x29a   :  { %1865 = vst.msk [vmem:[#allocation2 + $0xd8] sm:$0xff] %vm52_vm0, %v1817_v48  ;;  %v1910_v49 = vld [vmem:[#allocation2 + $0xa8] sm:$0xff]  ;;  %v1948_v63 = vpack.c.bf16 %v1912_v40, %v1911_v27  ;;  %v1453_v48 = vld [vmem:[#allocation2 + $0x140] sm:$0xff]  ;;  %v1456_v40 = vld [vmem:[#allocation2 + $0x158] sm:$0xff] }
 0x29b   :  { %1863 = vst.msk [vmem:[#allocation2 + $0xc8] sm:$0xff] %vm52_vm0, %v1815_v45  ;;  %v1947_v18 = vpack.c.bf16 %v1910_v49, %v1909_v58 }
 0x29d   :  { %v4083_v55 = vpop.f32.mrb[28].mxu1  ;;  %4125 = vmatprep.mubr.msk.bf16.mxu1 %vm52_vm0, %v1947_v18 }
 0x29e   :  { %v1820_v24 = vadd.f32 %v4083_v55, %v1443_v5  ;;  %v1711_v44 = vpop.f32.mrb[29].mxu1  ;;  %4126 = vmatmul.mubr.msk.bf16.gmra.mrb[68].mxu1 %vm52_vm0, %v1948_v63  ;;  %v1454_v5 = vld [vmem:[#allocation2 + $0x148] sm:$0xff] }
 0x29f   :  { %v1818_v25 = vadd.f32 %v1711_v44, %v1441_v22  ;;  %v4084_v31 = vpop.f32.mrb[30].mxu1  ;;  %v1915_v7 = vld [vmem:[#allocation2 + $0xd0] sm:$0xff] }
 0x2a0   :  { %1868 = vst.msk [vmem:[#allocation2 + $0xf0] sm:$0xff] %vm52_vm0, %v1820_v24  ;;  %v1821_v39 = vadd.f32 %v4084_v31, %v1444_v0  ;;  %v1714_v11 = vpop.f32.mrb[31].mxu1  ;;  %v1913_v50 = vld [vmem:[#allocation2 + $0xc0] sm:$0xff] }
 0x2a1   :  { %1866 = vst.msk [vmem:[#allocation2 + $0xe0] sm:$0xff] %vm52_vm0, %v1818_v25  ;;  %v1819_v43 = vadd.f32 %v1714_v11, %v1442_v54  ;;  %v1916_v9 = vld [vmem:[#allocation2 + $0xd8] sm:$0xff]  ;;  %v1459_v54 = vld [vmem:[#allocation2 + $0x170] sm:$0xff] }
 0x2a2   :  { %1869 = vst.msk [vmem:[#allocation2 + $0xf8] sm:$0xff] %vm52_vm0, %v1821_v39  ;;  %v1914_v26 = vld [vmem:[#allocation2 + $0xc8] sm:$0xff]  ;;  %v1950_v30 = vpack.c.bf16 %v1916_v9, %v1915_v7  ;;  %v1457_v39 = vld [vmem:[#allocation2 + $0x160] sm:$0xff]  ;;  %v1460_v9 = vld [vmem:[#allocation2 + $0x178] sm:$0xff] }
 0x2a3   :  { %1867 = vst.msk [vmem:[#allocation2 + $0xe8] sm:$0xff] %vm52_vm0, %v1819_v43  ;;  %v1949_v51 = vpack.c.bf16 %v1914_v26, %v1913_v50 }
 0x2a5   :  { %v4087_v8 = vpop.f32.mrb[32].mxu1  ;;  %4129 = vmatprep.mubr.msk.bf16.mxu1 %vm52_vm0, %v1949_v51 }
 0x2a6   :  { %v1824_v47 = vadd.f32 %v4087_v8, %v1447_v17  ;;  %v1727_v3 = vpop.f32.mrb[33].mxu1  ;;  %4130 = vmatmul.mubr.msk.bf16.gmra.mrb[72].mxu1 %vm52_vm0, %v1950_v30  ;;  %v1458_v17 = vld [vmem:[#allocation2 + $0x168] sm:$0xff] }
 0x2a7   :  { %v1822_v61 = vadd.f32 %v1727_v3, %v1445_v37  ;;  %v4088_v29 = vpop.f32.mrb[34].mxu1  ;;  %v1919_v23 = vld [vmem:[#allocation2 + $0xf0] sm:$0xff] }
 0x2a8   :  { %1872 = vst.msk [vmem:[#allocation2 + $0x110] sm:$0xff] %vm52_vm0, %v1824_v47  ;;  %v1825_v52 = vadd.f32 %v4088_v29, %v1448_v53  ;;  %v1730_v2 = vpop.f32.mrb[35].mxu1  ;;  %v1917_v10 = vld [vmem:[#allocation2 + $0xe0] sm:$0xff] }
 0x2a9   :  { %1870 = vst.msk [vmem:[#allocation2 + $0x100] sm:$0xff] %vm52_vm0, %v1822_v61  ;;  %v1823_v42 = vadd.f32 %v1730_v2, %v1446_v4  ;;  %v1920_v6 = vld [vmem:[#allocation2 + $0xf8] sm:$0xff] }
 0x2aa   :  { %1873 = vst.msk [vmem:[#allocation2 + $0x118] sm:$0xff] %vm52_vm0, %v1825_v52  ;;  %v1918_v35 = vld [vmem:[#allocation2 + $0xe8] sm:$0xff]  ;;  %v1952_v46 = vpack.c.bf16 %v1920_v6, %v1919_v23 }
 0x2ab   :  { %1871 = vst.msk [vmem:[#allocation2 + $0x108] sm:$0xff] %vm52_vm0, %v1823_v42  ;;  %v1951_v28 = vpack.c.bf16 %v1918_v35, %v1917_v10 }
 0x2ad   :  { %v4091_v60 = vpop.f32.mrb[36].mxu1  ;;  %4133 = vmatprep.mubr.msk.bf16.mxu1 %vm52_vm0, %v1951_v28 }
 0x2ae   :  { %v1828_v36 = vadd.f32 %v4091_v60, %v1451_v13  ;;  %v1743_v32 = vpop.f32.mrb[37].mxu1  ;;  %4134 = vmatmul.mubr.msk.bf16.gmra.mrb[76].mxu1 %vm52_vm0, %v1952_v46  ;;  %v5965_v13 = vld [vmem:[%s6342_s7] ss:$0 sm:$0xff] }
 0x2af   :  { %v1826_v62 = vadd.f32 %v1743_v32, %v1449_v1  ;;  %v4092_v21 = vpop.f32.mrb[38].mxu1  ;;  %v1923_v34 = vld [vmem:[#allocation2 + $0x110] sm:$0xff] }
 0x2b0   :  { %1876 = vst.msk [vmem:[#allocation2 + $0x130] sm:$0xff] %vm52_vm0, %v1828_v36  ;;  %v1829_v20 = vadd.f32 %v4092_v21, %v1452_v57  ;;  %v1746_v38 = vpop.f32.mrb[39].mxu1  ;;  %v1921_v41 = vld [vmem:[#allocation2 + $0x100] sm:$0xff] }
 0x2b1   :  { %1874 = vst.msk [vmem:[#allocation2 + $0x120] sm:$0xff] %vm52_vm0, %v1826_v62  ;;  %v1827_v59 = vadd.f32 %v1746_v38, %v1450_v33  ;;  %v1924_v14 = vld [vmem:[#allocation2 + $0x118] sm:$0xff] }
 0x2b2   :  { %1877 = vst.msk [vmem:[#allocation2 + $0x138] sm:$0xff] %vm52_vm0, %v1829_v20  ;;  %v1922_v19 = vld [vmem:[#allocation2 + $0x108] sm:$0xff]  ;;  %v1954_v16 = vpack.c.bf16 %v1924_v14, %v1923_v34 }
 0x2b3   :  { %1875 = vst.msk [vmem:[#allocation2 + $0x128] sm:$0xff] %vm52_vm0, %v1827_v59  ;;  %v1953_v12 = vpack.c.bf16 %v1922_v19, %v1921_v41 }
 0x2b5   :  { %v4095_v45 = vpop.f32.mrb[40].mxu1  ;;  %4137 = vmatprep.mubr.msk.bf16.mxu1 %vm52_vm0, %v1953_v12 }
 0x2b6   :  { %v1832_v58 = vadd.f32 %v4095_v45, %v1455_v15  ;;  %v1759_v49 = vpop.f32.mrb[41].mxu1  ;;  %4138 = vmatmul.mubr.msk.bf16.gmra.mrb[80].mxu1 %vm52_vm0, %v1954_v16 }
 0x2b7   :  { %v1830_v18 = vadd.f32 %v1759_v49, %v1453_v48  ;;  %v4096_v27 = vpop.f32.mrb[42].mxu1  ;;  %v1927_v31 = vld [vmem:[#allocation2 + $0x130] sm:$0xff] }
 0x2b8   :  { %1880 = vst.msk [vmem:[#allocation2 + $0x150] sm:$0xff] %vm52_vm0, %v1832_v58  ;;  %v1833_v22 = vadd.f32 %v4096_v27, %v1456_v40  ;;  %v1762_v63 = vpop.f32.mrb[43].mxu1  ;;  %v1925_v24 = vld [vmem:[#allocation2 + $0x120] sm:$0xff] }
 0x2b9   :  { %1878 = vst.msk [vmem:[#allocation2 + $0x140] sm:$0xff] %vm52_vm0, %v1830_v18  ;;  %v1831_v55 = vadd.f32 %v1762_v63, %v1454_v5  ;;  %v1928_v0 = vld [vmem:[#allocation2 + $0x138] sm:$0xff] }
 0x2ba   :  { %1881 = vst.msk [vmem:[#allocation2 + $0x158] sm:$0xff] %vm52_vm0, %v1833_v22  ;;  %v1926_v44 = vld [vmem:[#allocation2 + $0x128] sm:$0xff]  ;;  %v1956_v11 = vpack.c.bf16 %v1928_v0, %v1927_v31 }
 0x2bb   :  { %1879 = vst.msk [vmem:[#allocation2 + $0x148] sm:$0xff] %vm52_vm0, %v1831_v55  ;;  %v1955_v25 = vpack.c.bf16 %v1926_v44, %v1925_v24 }
 0x2bd   :  { %v4099_v43 = vpop.f32.mrb[44].mxu1  ;;  %4141 = vmatprep.mubr.msk.bf16.mxu1 %vm52_vm0, %v1955_v25 }
 0x2be   :  { %v1836_v50 = vadd.f32 %v4099_v43, %v1459_v54  ;;  %v1775_v26 = vpop.f32.mrb[45].mxu1  ;;  %4142 = vmatmul.mubr.msk.bf16.gmra.mrb[84].mxu1 %vm52_vm0, %v1956_v11 }
 0x2bf   :  { %v1834_v51 = vadd.f32 %v1775_v26, %v1457_v39  ;;  %v4100_v7 = vpop.f32.mrb[46].mxu1  ;;  %v1931_v61 = vld [vmem:[#allocation2 + $0x150] sm:$0xff] }
 0x2c0   :  { %1884 = vst.msk [vmem:[#allocation2 + $0x170] sm:$0xff] %vm52_vm0, %v1836_v50  ;;  %v1837_v37 = vadd.f32 %v4100_v7, %v1460_v9  ;;  %v1778_v30 = vpop.f32.mrb[47].mxu1  ;;  %v1929_v47 = vld [vmem:[#allocation2 + $0x140] sm:$0xff] }
 0x2c1   :  { %1882 = vst.msk [vmem:[#allocation2 + $0x160] sm:$0xff] %vm52_vm0, %v1834_v51  ;;  %v1835_v8 = vadd.f32 %v1778_v30, %v1458_v17  ;;  %v1932_v53 = vld [vmem:[#allocation2 + $0x158] sm:$0xff] }
 0x2c2   :  { %1885 = vst.msk [vmem:[#allocation2 + $0x178] sm:$0xff] %vm52_vm0, %v1837_v37  ;;  %v1930_v3 = vld [vmem:[#allocation2 + $0x148] sm:$0xff]  ;;  %v1958_v29 = vpack.c.bf16 %v1932_v53, %v1931_v61 }
 0x2c3   :  { %1883 = vst.msk [vmem:[#allocation2 + $0x168] sm:$0xff] %vm52_vm0, %v1835_v8  ;;  %v1957_v4 = vpack.c.bf16 %v1930_v3, %v1929_v47 }
 0x2c5   :  { %4145 = vmatprep.mubr.msk.bf16.mxu1 %vm52_vm0, %v1957_v4 }
 0x2c6   :  { %4146 = vmatmul.mubr.msk.bf16.gmra.mrb[88].mxu1 %vm52_vm0, %v1958_v29 }
 0x2c7   :  { %v1935_v10 = vld [vmem:[#allocation2 + $0x170] sm:$0xff] }
 0x2c8   :  { %v1933_v2 = vld [vmem:[#allocation2 + $0x160] sm:$0xff] }
 0x2c9   :  { %v1936_v52 = vld [vmem:[#allocation2 + $0x178] sm:$0xff] }
 0x2ca   :  { %v1934_v42 = vld [vmem:[#allocation2 + $0x168] sm:$0xff]  ;;  %v1960_v35 = vpack.c.bf16 %v1936_v52, %v1935_v10 }
 0x2cb   :  { %v1959_v6 = vpack.c.bf16 %v1934_v42, %v1933_v2 }
 0x2cd   :  { %4149 = vmatprep.mubr.msk.bf16.mxu1 %vm52_vm0, %v1959_v6 }
 0x2ce   :  { %4150 = vmatmul.mubr.msk.bf16.gmra.mrb[92].mxu1 %vm52_vm0, %v1960_v35 }
 0x2cf   :  { %4209 = vmatprep.mubr.msk.bf16.mxu1 %vm4490_vm5, %v4489_v56 }
 0x349   :  { %v4107_v28 = vpop.f32.mrb[48].mxu1 }
 0x34a   :  { %v2099_v23 = vadd.f32 %v4107_v28, %v5965_v13  ;;  %v2090_v1 = vpop.f32.mrb[49].mxu1 }
 0x34b   :  { %v2091_v46 = vadd.f32 %v5965_v13, %v2090_v1  ;;  %v4108_v60 = vpop.f32.mrb[50].mxu1 }
 0x34c   :  { %v2102_v57 = vadd.f32 %v4108_v60, %v5965_v13  ;;  %v2093_v36 = vpop.f32.mrb[51].mxu1  ;;  %v2283_v33 = vmax.f32 %v2099_v23, 0.0 }
 0x34d   :  { %v2094_v32 = vadd.f32 %v5965_v13, %v2093_v36  ;;  %v2281_v21 = vmax.f32 %v2091_v46, 0.0 }
 0x34e   :  { %v2284_v62 = vmax.f32 %v2102_v57, 0.0 }
 0x34f   :  { %v2282_v20 = vmax.f32 %v2094_v32, 0.0 }
 0x350   :  { %v2330_v38 = vpack.c.bf16 %v2284_v62, %v2283_v33 }
 0x351   :  { %v2329_v59 = vpack.c.bf16 %v2282_v20, %v2281_v21  ;;  %v4111_v14 = vpop.f32.mrb[52].mxu1 }
 0x352   :  { %v2115_v41 = vadd.f32 %v4111_v14, %v5965_v13  ;;  %v2106_v19 = vpop.f32.mrb[53].mxu1 }
 0x353   :  { %v2107_v15 = vadd.f32 %v5965_v13, %v2106_v19  ;;  %v4112_v12 = vpop.f32.mrb[54].mxu1  ;;  %4157 = vmatprep.mubr.msk.bf16.mxu0 %vm52_vm0, %v2329_v59 }
 0x354   :  { %v2118_v34 = vadd.f32 %v4112_v12, %v5965_v13  ;;  %v2109_v48 = vpop.f32.mrb[55].mxu1  ;;  %4158 = vmatmul.mubr.msk.bf16.vlgmr.msra.gmra.mrb[48].mxu0 %vm52_vm0, %v2330_v38  ;;  %v2287_v45 = vmax.f32 %v2115_v41, 0.0 }
 0x355   :  { %v2110_v16 = vadd.f32 %v5965_v13, %v2109_v48  ;;  %v2285_v58 = vmax.f32 %v2107_v15, 0.0 }
 0x356   :  { %v2288_v40 = vmax.f32 %v2118_v34, 0.0 }
 0x357   :  { %v2286_v49 = vmax.f32 %v2110_v16, 0.0 }
 0x358   :  { %v2332_v5 = vpack.c.bf16 %v2288_v40, %v2287_v45 }
 0x359   :  { %v2331_v18 = vpack.c.bf16 %v2286_v49, %v2285_v58  ;;  %v4115_v27 = vpop.f32.mrb[56].mxu1 }
 0x35a   :  { %v2131_v22 = vadd.f32 %v4115_v27, %v5965_v13  ;;  %v2122_v63 = vpop.f32.mrb[57].mxu1 }
 0x35b   :  { %v2123_v55 = vadd.f32 %v5965_v13, %v2122_v63  ;;  %v4116_v0 = vpop.f32.mrb[58].mxu1  ;;  %4161 = vmatprep.mubr.msk.bf16.mxu0 %vm52_vm0, %v2331_v18 }
 0x35c   :  { %v2134_v24 = vadd.f32 %v4116_v0, %v5965_v13  ;;  %v2125_v44 = vpop.f32.mrb[59].mxu1  ;;  %4162 = vmatmul.mubr.msk.bf16.gmra.mrb[52].mxu0 %vm52_vm0, %v2332_v5  ;;  %v2291_v25 = vmax.f32 %v2131_v22, 0.0 }
 0x35d   :  { %v2126_v54 = vadd.f32 %v5965_v13, %v2125_v44  ;;  %v2289_v39 = vmax.f32 %v2123_v55, 0.0 }
 0x35e   :  { %v2292_v31 = vmax.f32 %v2134_v24, 0.0 }
 0x35f   :  { %v2290_v11 = vmax.f32 %v2126_v54, 0.0 }
 0x360   :  { %v2334_v43 = vpack.c.bf16 %v2292_v31, %v2291_v25 }
 0x361   :  { %v2333_v9 = vpack.c.bf16 %v2290_v11, %v2289_v39  ;;  %v4119_v50 = vpop.f32.mrb[60].mxu1 }
 0x362   :  { %v2147_v26 = vadd.f32 %v4119_v50, %v5965_v13  ;;  %v2138_v17 = vpop.f32.mrb[61].mxu1 }
 0x363   :  { %v2139_v51 = vadd.f32 %v5965_v13, %v2138_v17  ;;  %v4120_v7 = vpop.f32.mrb[62].mxu1  ;;  %4165 = vmatprep.mubr.msk.bf16.mxu0 %vm52_vm0, %v2333_v9 }
 0x364   :  { %v2150_v37 = vadd.f32 %v4120_v7, %v5965_v13  ;;  %v2141_v30 = vpop.f32.mrb[63].mxu1  ;;  %4166 = vmatmul.mubr.msk.bf16.gmra.mrb[56].mxu0 %vm52_vm0, %v2334_v43  ;;  %v2295_v53 = vmax.f32 %v2147_v26, 0.0 }
 0x365   :  { %v2142_v8 = vadd.f32 %v5965_v13, %v2141_v30  ;;  %v2293_v3 = vmax.f32 %v2139_v51, 0.0 }
 0x366   :  { %v2296_v47 = vmax.f32 %v2150_v37, 0.0 }
 0x367   :  { %v2294_v4 = vmax.f32 %v2142_v8, 0.0 }
 0x368   :  { %v2336_v61 = vpack.c.bf16 %v2296_v47, %v2295_v53 }
 0x369   :  { %v2335_v29 = vpack.c.bf16 %v2294_v4, %v2293_v3  ;;  %v4123_v52 = vpop.f32.mrb[64].mxu1 }
 0x36a   :  { %v2163_v2 = vadd.f32 %v4123_v52, %v5965_v13  ;;  %v2154_v42 = vpop.f32.mrb[65].mxu1 }
 0x36b   :  { %v2155_v6 = vadd.f32 %v5965_v13, %v2154_v42  ;;  %v4124_v10 = vpop.f32.mrb[66].mxu1  ;;  %4169 = vmatprep.mubr.msk.bf16.mxu0 %vm52_vm0, %v2335_v29 }
 0x36c   :  { %v2166_v35 = vadd.f32 %v4124_v10, %v5965_v13  ;;  %v2157_v28 = vpop.f32.mrb[67].mxu1  ;;  %4170 = vmatmul.mubr.msk.bf16.gmra.mrb[60].mxu0 %vm52_vm0, %v2336_v61  ;;  %v2299_v1 = vmax.f32 %v2163_v2, 0.0 }
 0x36d   :  { %v2158_v23 = vadd.f32 %v5965_v13, %v2157_v28  ;;  %v2297_v60 = vmax.f32 %v2155_v6, 0.0 }
 0x36e   :  { %v2300_v46 = vmax.f32 %v2166_v35, 0.0 }
 0x36f   :  { %v2298_v57 = vmax.f32 %v2158_v23, 0.0 }
 0x370   :  { %v2338_v36 = vpack.c.bf16 %v2300_v46, %v2299_v1 }
 0x371   :  { %v2337_v32 = vpack.c.bf16 %v2298_v57, %v2297_v60  ;;  %v4127_v33 = vpop.f32.mrb[68].mxu1 }
 0x372   :  { %v2179_v62 = vadd.f32 %v4127_v33, %v5965_v13  ;;  %v2170_v21 = vpop.f32.mrb[69].mxu1 }
 0x373   :  { %v2171_v20 = vadd.f32 %v5965_v13, %v2170_v21  ;;  %v4128_v38 = vpop.f32.mrb[70].mxu1  ;;  %4173 = vmatprep.mubr.msk.bf16.mxu0 %vm52_vm0, %v2337_v32 }
 0x374   :  { %v2182_v59 = vadd.f32 %v4128_v38, %v5965_v13  ;;  %v2173_v14 = vpop.f32.mrb[71].mxu1  ;;  %4174 = vmatmul.mubr.msk.bf16.gmra.mrb[64].mxu0 %vm52_vm0, %v2338_v36  ;;  %v2303_v19 = vmax.f32 %v2179_v62, 0.0 }
 0x375   :  { %v2174_v41 = vadd.f32 %v5965_v13, %v2173_v14  ;;  %v2301_v12 = vmax.f32 %v2171_v20, 0.0 }
 0x376   :  { %v2304_v15 = vmax.f32 %v2182_v59, 0.0 }
 0x377   :  { %v2302_v34 = vmax.f32 %v2174_v41, 0.0 }
 0x378   :  { %v2340_v48 = vpack.c.bf16 %v2304_v15, %v2303_v19 }
 0x379   :  { %v2339_v16 = vpack.c.bf16 %v2302_v34, %v2301_v12  ;;  %v4131_v45 = vpop.f32.mrb[72].mxu1  ;;  %v6026_v34 = vpop.permute.xlu0 %2916 }
 0x37a   :  { %v2195_v40 = vadd.f32 %v4131_v45, %v5965_v13  ;;  %v2186_v58 = vpop.f32.mrb[73].mxu1 }
 0x37b   :  { %v2187_v49 = vadd.f32 %v5965_v13, %v2186_v58  ;;  %v4132_v5 = vpop.f32.mrb[74].mxu1  ;;  %4177 = vmatprep.mubr.msk.bf16.mxu0 %vm52_vm0, %v2339_v16 }
 0x37c   :  { %v2198_v18 = vadd.f32 %v4132_v5, %v5965_v13  ;;  %v2189_v27 = vpop.f32.mrb[75].mxu1  ;;  %4178 = vmatmul.mubr.msk.bf16.gmra.mrb[68].mxu0 %vm52_vm0, %v2340_v48  ;;  %v2307_v63 = vmax.f32 %v2195_v40, 0.0 }
 0x37d   :  { %v2190_v22 = vadd.f32 %v5965_v13, %v2189_v27  ;;  %v2305_v0 = vmax.f32 %v2187_v49, 0.0 }
 0x37e   :  { %v2308_v55 = vmax.f32 %v2198_v18, 0.0 }
 0x37f   :  { %v2306_v24 = vmax.f32 %v2190_v22, 0.0 }
 0x380   :  { %v2342_v44 = vpack.c.bf16 %v2308_v55, %v2307_v63  ;;  %v6033_v63 = vpop.permute.xlu0 %2931 }
 0x381   :  { %v2341_v54 = vpack.c.bf16 %v2306_v24, %v2305_v0  ;;  %v4135_v25 = vpop.f32.mrb[76].mxu1 }
 0x382   :  { %v2211_v31 = vadd.f32 %v4135_v25, %v5965_v13  ;;  %v2202_v39 = vpop.f32.mrb[77].mxu1 }
 0x383   :  { %v2203_v11 = vadd.f32 %v5965_v13, %v2202_v39  ;;  %v4136_v43 = vpop.f32.mrb[78].mxu1  ;;  %4181 = vmatprep.mubr.msk.bf16.mxu0 %vm52_vm0, %v2341_v54 }
 0x384   :  { %v2214_v9 = vadd.f32 %v4136_v43, %v5965_v13  ;;  %v2205_v50 = vpop.f32.mrb[79].mxu1  ;;  %4182 = vmatmul.mubr.msk.bf16.gmra.mrb[72].mxu0 %vm52_vm0, %v2342_v44  ;;  %v2311_v17 = vmax.f32 %v2211_v31, 0.0 }
 0x385   :  { %v2206_v26 = vadd.f32 %v5965_v13, %v2205_v50  ;;  %v2309_v7 = vmax.f32 %v2203_v11, 0.0  ;;  %v6041_v50 = vpop.permute.xlu0 %3036 }
 0x386   :  { %v2312_v51 = vmax.f32 %v2214_v9, 0.0 }
 0x387   :  { %v2310_v37 = vmax.f32 %v2206_v26, 0.0 }
 0x388   :  { %v2344_v30 = vpack.c.bf16 %v2312_v51, %v2311_v17  ;;  %v6043_v51 = vpop.permute.xlu1 %2921 }
 0x389   :  { %v2343_v8 = vpack.c.bf16 %v2310_v37, %v2309_v7  ;;  %v4139_v53 = vpop.f32.mrb[80].mxu1 }
 0x38a   :  { %v2227_v47 = vadd.f32 %v4139_v53, %v5965_v13  ;;  %v2218_v3 = vpop.f32.mrb[81].mxu1 }
 0x38b   :  { %v2219_v4 = vadd.f32 %v5965_v13, %v2218_v3  ;;  %v4140_v61 = vpop.f32.mrb[82].mxu1  ;;  %4185 = vmatprep.mubr.msk.bf16.mxu0 %vm52_vm0, %v2343_v8 }
 0x38c   :  { %v2230_v29 = vadd.f32 %v4140_v61, %v5965_v13  ;;  %v2221_v52 = vpop.f32.mrb[83].mxu1  ;;  %4186 = vmatmul.mubr.msk.bf16.gmra.mrb[76].mxu0 %vm52_vm0, %v2344_v30  ;;  %v2315_v42 = vmax.f32 %v2227_v47, 0.0  ;;  %v6047_v30 = vpop.permute.xlu0 %3051 }
 0x38d   :  { %v2222_v2 = vadd.f32 %v5965_v13, %v2221_v52  ;;  %v2313_v10 = vmax.f32 %v2219_v4, 0.0  ;;  %v6049_v8 = vpop.permute.xlu1 %2936 }
 0x38e   :  { %v2316_v6 = vmax.f32 %v2230_v29, 0.0 }
 0x38f   :  { %v2314_v35 = vmax.f32 %v2222_v2, 0.0 }
 0x390   :  { %v2346_v28 = vpack.c.bf16 %v2316_v6, %v2315_v42  ;;  %v6051_v53 = vpop.permute.xlu0 %2946 }
 0x391   :  { %v2345_v23 = vpack.c.bf16 %v2314_v35, %v2313_v10  ;;  %v4143_v1 = vpop.f32.mrb[84].mxu1 }
 0x392   :  { %v2243_v46 = vadd.f32 %v4143_v1, %v5965_v13  ;;  %v2234_v60 = vpop.f32.mrb[85].mxu1 }
 0x393   :  { %v2235_v57 = vadd.f32 %v5965_v13, %v2234_v60  ;;  %v4144_v36 = vpop.f32.mrb[86].mxu1  ;;  %4189 = vmatprep.mubr.msk.bf16.mxu0 %vm52_vm0, %v2345_v23 }
 0x394   :  { %v2246_v32 = vadd.f32 %v4144_v36, %v5965_v13  ;;  %v2237_v33 = vpop.f32.mrb[87].mxu1  ;;  %4190 = vmatmul.mubr.msk.bf16.gmra.mrb[80].mxu0 %vm52_vm0, %v2346_v28  ;;  %v2319_v21 = vmax.f32 %v2243_v46, 0.0  ;;  %v6055_v47 = vpop.permute.xlu0 %3066  ;;  %v4257_v28 = vld [vmem:[%s6343_s10] sm:$0xff]  }
 0x395   :  { %v2238_v62 = vadd.f32 %v5965_v13, %v2237_v33  ;;  %v2317_v38 = vmax.f32 %v2235_v57, 0.0  ;;  %4206 = vmatpush3.bf16.msra.mxu1 %v4257_v28 }
 0x396   :  { %v2320_v20 = vmax.f32 %v2246_v32, 0.0  ;;  %4207 = vmatprep.subr.bf16.mxu1 %v4489_v56 }
 0x397   :  { %v2318_v59 = vmax.f32 %v2238_v62, 0.0 }
 0x398   :  { %v2348_v14 = vpack.c.bf16 %v2320_v20, %v2319_v21  ;;  %v6059_v4 = vpop.permute.xlu0 %2926 }
 0x399   :  { %v2347_v41 = vpack.c.bf16 %v2318_v59, %v2317_v38  ;;  %v4147_v19 = vpop.f32.mrb[88].mxu1 }
 0x39a   :  { %v2259_v15 = vadd.f32 %v4147_v19, %v5965_v13  ;;  %v2250_v12 = vpop.f32.mrb[89].mxu1  ;;  %v4258_v19 = vld [vmem:[%s6343_s10 + $0x8] sm:$0xff]  }
 0x39b   :  { %v2251_v48 = vadd.f32 %v5965_v13, %v2250_v12  ;;  %v4148_v16 = vpop.f32.mrb[90].mxu1  ;;  %4193 = vmatprep.mubr.msk.bf16.mxu0 %vm52_vm0, %v2347_v41  ;;  %4208 = vmatpush3.bf16.msra.mxu1 %v4258_v19 }
 0x39c   :  { %v2262_v45 = vadd.f32 %v4148_v16, %v5965_v13  ;;  %v2253_v40 = vpop.f32.mrb[91].mxu1  ;;  %4194 = vmatmul.mubr.msk.bf16.gmra.mrb[84].mxu0 %vm52_vm0, %v2348_v14  ;;  %v2323_v49 = vmax.f32 %v2259_v15, 0.0  ;;  %v6063_v29 = vpop.permute.xlu0 %2961 }
 0x39d   :  { %v2254_v58 = vadd.f32 %v5965_v13, %v2253_v40  ;;  %v2321_v18 = vmax.f32 %v2251_v48, 0.0 }
 0x39e   :  { %v2324_v5 = vmax.f32 %v2262_v45, 0.0 }
 0x39f   :  { %v2322_v27 = vmax.f32 %v2254_v58, 0.0 }
 0x3a0   :  { %v2350_v22 = vpack.c.bf16 %v2324_v5, %v2323_v49  ;;  %v6067_v2 = vpop.permute.xlu0 %3046 }
 0x3a1   :  { %v2349_v55 = vpack.c.bf16 %v2322_v27, %v2321_v18  ;;  %v4151_v0 = vpop.f32.mrb[92].mxu1  ;;  %v4259_v27 = vld [vmem:[%s6344_s12] sm:$0xff]  }
 0x3a2   :  { %v2275_v24 = vadd.f32 %v4151_v0, %v5965_v13  ;;  %v2266_v44 = vpop.f32.mrb[93].mxu1  ;;  %4214 = vmatpush3.bf16.msra.mxu0 %v4259_v27 }
 0x3a3   :  { %v2267_v54 = vadd.f32 %v5965_v13, %v2266_v44  ;;  %v4152_v25 = vpop.f32.mrb[94].mxu1  ;;  %4197 = vmatprep.mubr.msk.bf16.mxu0 %vm52_vm0, %v2349_v55  ;;  %4215 = vmatprep.subr.bf16.mxu0 %v4489_v56 }
 0x3a4   :  { %v2278_v31 = vadd.f32 %v4152_v25, %v5965_v13  ;;  %v2269_v39 = vpop.f32.mrb[95].mxu1  ;;  %4198 = vmatmul.mubr.msk.bf16.gmra.mrb[88].mxu0 %vm52_vm0, %v2350_v22  ;;  %v2327_v43 = vmax.f32 %v2275_v24, 0.0  ;;  %v6071_v6 = vpop.permute.xlu0 %3081  ;;  %v4260_v22 = vld [vmem:[%s6344_s12 + $0x8] sm:$0xff]   ;;  %v6150_v24 = vld [vmem:[%s6345_s9] ss:$0 sm:$0xff] }
 0x3a5   :  { %v2270_v11 = vadd.f32 %v5965_v13, %v2269_v39  ;;  %v2325_v26 = vmax.f32 %v2267_v54, 0.0  ;;  %v6053_v13 = vpop.permute.xlu1 %3041 }
 0x3a6   :  { %v2328_v9 = vmax.f32 %v2278_v31, 0.0  ;;  %4216 = vmatpush3.bf16.msra.mxu0 %v4260_v22 }
 0x3a7   :  { %v2326_v17 = vmax.f32 %v2270_v11, 0.0 }
 0x3a8   :  { %v2352_v7 = vpack.c.bf16 %v2328_v9, %v2327_v43  ;;  %v6075_v35 = vpop.permute.xlu0 %2956 }
 0x3a9   :  { %v2351_v37 = vpack.c.bf16 %v2326_v17, %v2325_v26  ;;  %v6057_v3 = vpop.permute.xlu1 %3056 }
 0x3ab   :  { %4201 = vmatprep.mubr.msk.bf16.mxu0 %vm52_vm0, %v2351_v37 }
 0x3ac   :  { %4202 = vmatmul.mubr.msk.bf16.gmra.mrb[92].mxu0 %vm52_vm0, %v2352_v7  ;;  %v6083_v1 = vpop.permute.xlu0 %2981 }
 0x3ad   :  { %v6061_v61 = vpop.permute.xlu1 %2951  ;;  %4217 = vmatprep.mubr.msk.bf16.mxu0 %vm4490_vm5, %v4489_v56 }
 0x3b0   :  { %v6087_v60 = vpop.permute.xlu0 %3096 }
 0x3b1   :  { %v6065_v52 = vpop.permute.xlu1 %3071 }
 0x3b4   :  { %v6091_v36 = vpop.permute.xlu0 %2971 }
 0x3b5   :  { %v6069_v42 = vpop.permute.xlu1 %2941 }
 0x3b8   :  { %v6095_v33 = vpop.permute.xlu0 %2996 }
 0x3b9   :  { %v6073_v10 = vpop.permute.xlu1 %2966 }
 0x3bc   :  { %v6099_v21 = vpop.permute.xlu0 %3111 }
 0x3bd   :  { %v6080_v23 = vpop.permute.xlu1 %3061 }
 0x3c0   :  { %v6103_v38 = vpop.permute.xlu0 %2986 }
 0x3c1   :  { %v6085_v46 = vpop.permute.xlu1 %3086 }
 0x3c4   :  { %v6107_v14 = vpop.permute.xlu0 %3011 }
 0x3c5   :  { %v6089_v57 = vpop.permute.xlu1 %2976 }
 0x3c8   :  { %v6114_v15 = vpop.permute.xlu0 %3126 }
 0x3c9   :  { %v6093_v32 = vpop.permute.xlu1 %3076 }
 0x3cc   :  { %v6118_v48 = vpop.permute.xlu0 %3001 }
 0x3cd   :  { %v6097_v62 = vpop.permute.xlu1 %3101 }
 0x3d0   :  { %v6122_v45 = vpop.permute.xlu0 %3026 }
 0x3d1   :  { %v6101_v20 = vpop.permute.xlu1 %2991 }
 0x3d4   :  { %v6126_v58 = vpop.permute.xlu0 %3141 }
 0x3d5   :  { %v6105_v59 = vpop.permute.xlu1 %3091  ;;  %6355 = vst [vmem:[#allocation3_spill] sm:$0xff] %v6126_v58 }
 0x3d8   :  { %v6132_v5 = vpop.permute.xlu0 %3016 }
 0x3d9   :  { %v6109_v41 = vpop.permute.xlu1 %3116 }
 0x3dc   :  { %v6142_v55 = vpop.permute.xlu0 %3031 }
 0x3dd   :  { %v6116_v12 = vpop.permute.xlu1 %3006 }
 0x3e0   :  { %v3381_v43 = vpop.permute.xlu0 %3380 }
 0x3e1   :  { %v6120_v16 = vpop.permute.xlu1 %3106  ;;  %4455 = vrcp.f32 %v3381_v43 }
 0x3e5   :  { %v6124_v40 = vpop.permute.xlu1 %3131 }
 0x3e9   :  { %v6128_v49 = vpop.permute.xlu1 %3021 }
 0x3ed   :  { %v6134_v18 = vpop.permute.xlu1 %3121 }
 0x3f1   :  { %v6145_v0 = vpop.permute.xlu1 %3146 }
 0x3f5   :  { %v6156_v26 = vpop.permute.xlu1 %3136 }
 0x427   :  { %v4159_v44 = vpop.f32.mrb[48].mxu0 }
 0x428   :  { %v2482_v54 = vpop.f32.mrb[49].mxu0  ;;  %v2491_v25 = vadd.f32 %v4159_v44, %v6150_v24 }
 0x429   :  { %v2483_v31 = vadd.f32 %v6150_v24, %v2482_v54  ;;  %v4160_v39 = vpop.f32.mrb[50].mxu0 }
 0x42a   :  { %v2485_v11 = vpop.f32.mrb[51].mxu0  ;;  %v3156_v17 = vmul.f32 %v6059_v4, %v2491_v25  ;;  %v2494_v7 = vadd.f32 %v4160_v39, %v6150_v24  ;;  %v6169_v39 = vpop.permute.xlu1 %3151 }
 0x42b   :  { %v3154_v9 = vmul.f32 %v6026_v34, %v2483_v31  ;;  %v2486_v56 = vadd.f32 %v6150_v24, %v2485_v11  ;;  %v6164_v34 = vpop.permute.xlu0 %3420 }
 0x42c   :  { %v3205_v31 = vsel %vm52_vm0, %v3156_v17, 0.0  ;;  %v3157_v11 = vmul.f32 %v6033_v63, %v2494_v7 }
 0x42d   :  { %v3155_v37 = vmul.f32 %v6043_v51, %v2486_v56  ;;  %v3202_v28 = vsel %vm52_vm0, %v3154_v9, 0.0 }
 0x42e   :  { %v3213_v63 = vsel %vm52_vm0, %v3157_v11, 0.0  ;;  %v3386_v58 = vpop.permute.xlu1 %3385 }
 0x42f   :  { %v3203_v19 = vsel %vm52_vm0, %v3155_v37, 0.0  ;;  %v4163_v27 = vpop.f32.mrb[52].mxu0  ;;  %4457 = vrcp.f32 %v3386_v58 }
 0x430   :  { %v3204_v22 = vadd.f32 %v3203_v19, %v3202_v28  ;;  %v2507_v44 = vadd.f32 %v4163_v27, %v6150_v24  ;;  %v2498_v54 = vpop.f32.mrb[53].mxu0 }
 0x431   :  { %v2499_v4 = vadd.f32 %v6150_v24, %v2498_v54  ;;  %v4164_v25 = vpop.f32.mrb[54].mxu0 }
 0x432   :  { %v3206_v51 = vadd.f32 %v3205_v31, %v3204_v22  ;;  %v3160_v9 = vmul.f32 %v6051_v53, %v2507_v44  ;;  %v2510_v56 = vadd.f32 %v4164_v25, %v6150_v24  ;;  %v2501_v37 = vpop.f32.mrb[55].mxu0  ;;  %v3391_v25 = vpop.permute.xlu0 %3390 }
 0x433   :  { %v3158_v28 = vmul.f32 %v6049_v8, %v2499_v4  ;;  %v2502_v19 = vadd.f32 %v6150_v24, %v2501_v37  ;;  %4459 = vrcp.f32 %v3391_v25 }
 0x434   :  { %v3207_v27 = vrot.slane %v3206_v51, 4  ;;  %v3161_v17 = vmul.f32 %v6061_v61, %v2510_v56  ;;  %v3224_v53 = vsel %vm52_vm0, %v3160_v9, 0.0 }
 0x435   :  { %v3214_v7 = vsel %vm52_vm0, %v3158_v28, 0.0  ;;  %v3159_v54 = vmul.f32 %v6069_v42, %v2502_v19 }
 0x436   :  { %v3208_v22 = vadd.f32 %v3207_v27, %v3206_v51  ;;  %v3215_v44 = vadd.f32 %v3214_v7, %v3213_v63  ;;  %v3225_v31 = vsel %vm52_vm0, %v3161_v17, 0.0 }
 0x437   :  { %v3226_v8 = vadd.f32 %v3225_v31, %v3224_v53  ;;  %v3216_v4 = vsel %vm52_vm0, %v3159_v54, 0.0  ;;  %v4167_v37 = vpop.f32.mrb[56].mxu0 }
 0x438   :  { %v3209_v61 = vrot.slane %v3208_v22, 2  ;;  %v3217_v43 = vadd.f32 %v3216_v4, %v3215_v44  ;;  %v2523_v11 = vadd.f32 %v4167_v37, %v6150_v24  ;;  %v2514_v56 = vpop.f32.mrb[57].mxu0  ;;  %v3396_v44 = vpop.permute.xlu0 %3395 }
 0x439   :  { %v2515_v28 = vadd.f32 %v6150_v24, %v2514_v56  ;;  %v4168_v42 = vpop.f32.mrb[58].mxu0  ;;  %4461 = vrcp.f32 %v3396_v44 }
 0x43a   :  { %v3210_v51 = vadd.f32 %v3209_v61, %v3208_v22  ;;  %v3218_v19 = vrot.slane %v3217_v43, 4  ;;  %v2526_v9 = vadd.f32 %v4168_v42, %v6150_v24  ;;  %v2517_v27 = vpop.f32.mrb[59].mxu0  ;;  %v3164_v17 = vmul.f32 %v6073_v10, %v2523_v11  ;;  %v4456_v42 = vpop.eup %4455 }
 0x43b   :  { %v3162_v63 = vmul.f32 %v6075_v35, %v2515_v28  ;;  %v2518_v7 = vadd.f32 %v6150_v24, %v2517_v27 }
 0x43c   :  { %v3211_v54 = vrot.slane %v3210_v51, 1  ;;  %v3219_v53 = vadd.f32 %v3218_v19, %v3217_v43  ;;  %v3165_v4 = vmul.f32 %v6091_v36, %v2526_v9  ;;  %v3236_v58 = vsel %vm52_vm0, %v3164_v17, 0.0 }
 0x43d   :  { %v3227_v31 = vsel %vm52_vm0, %v3162_v63, 0.0  ;;  %v3163_v22 = vmul.f32 %v6063_v29, %v2518_v7 }
 0x43e   :  { %v3212_v37 = vadd.f32 %v3211_v54, %v3210_v51  ;;  %v3220_v61 = vrot.slane %v3219_v53, 2  ;;  %v3228_v56 = vadd.f32 %v3227_v31, %v3226_v8  ;;  %v3238_v63 = vsel %vm52_vm0, %v3165_v4, 0.0  ;;  %v3401_v54 = vpop.permute.xlu0 %3400 }
 0x43f   :  { %v3235_v10 = vsel %vm52_vm0, %v3163_v22, 0.0  ;;  %v4171_v35 = vpop.f32.mrb[60].mxu0  ;;  %4463 = vrcp.f32 %v3401_v54 }
 0x440   :  { %v3459_v11 = vmul.f32 %v4456_v42, %v3212_v37  ;;  %v3221_v28 = vadd.f32 %v3220_v61, %v3219_v53  ;;  %v3229_v27 = vrot.slane %v3228_v56, 4  ;;  %v3237_v43 = vadd.f32 %v3236_v58, %v3235_v10  ;;  %v2530_v19 = vpop.f32.mrb[61].mxu0  ;;  %v4458_v42 = vpop.eup %4457 }
 0x441   :  { %v2539_v36 = vadd.f32 %v4171_v35, %v6150_v24  ;;  %v2531_v29 = vadd.f32 %v6150_v24, %v2530_v19  ;;  %v4172_v51 = vpop.f32.mrb[62].mxu0 }
 0x442   :  { %v3222_v8 = vrot.slane %v3221_v28, 1  ;;  %v3230_v9 = vadd.f32 %v3229_v27, %v3228_v56  ;;  %v3239_v7 = vadd.f32 %v3238_v63, %v3237_v43  ;;  %v2533_v17 = vpop.f32.mrb[63].mxu0  ;;  %v3490_v31 = vpack.c.bf16 %v3459_v11, %v3459_v11 }
 0x443   :  { %v3166_v22 = vmul.f32 %v6089_v57, %v2531_v29  ;;  %v2534_v53 = vadd.f32 %v6150_v24, %v2533_v17  ;;  %v3168_v4 = vmul.f32 %v6103_v38, %v2539_v36  ;;  %v2542_v58 = vadd.f32 %v4172_v51, %v6150_v24 }
 0x444   :  { %v3223_v37 = vadd.f32 %v3222_v8, %v3221_v28  ;;  %v3231_v61 = vrot.slane %v3230_v9, 2  ;;  %v3240_v25 = vrot.slane %v3239_v7, 4  ;;  %v3533_v11 = vunpack.c.l.b16 %v3490_v31 }
 0x445   :  { %v3167_v10 = vmul.f32 %v6083_v1, %v2534_v53  ;;  %v3246_v57 = vsel %vm52_vm0, %v3166_v22, 0.0  ;;  %v3249_v36 = vsel %vm52_vm0, %v3168_v4, 0.0  ;;  %v3169_v1 = vmul.f32 %v6101_v20, %v2542_v58  ;;  %v4460_v53 = vpop.eup %4459 }
 0x446   :  { %v3461_v56 = vmul.f32 %v4458_v42, %v3223_v37  ;;  %v3232_v35 = vadd.f32 %v3231_v61, %v3230_v9  ;;  %v3241_v27 = vadd.f32 %v3240_v25, %v3239_v7 }
 0x447   :  { %v3247_v28 = vsel %vm52_vm0, %v3167_v10, 0.0  ;;  %v4175_v43 = vpop.f32.mrb[64].mxu0 }
 0x448   :  { %v3491_v19 = vpack.c.bf16 %v3461_v56, %v3461_v56  ;;  %v3233_v63 = vrot.slane %v3232_v35, 1  ;;  %v3242_v44 = vrot.slane %v3241_v27, 2  ;;  %v3248_v29 = vadd.f32 %v3247_v28, %v3246_v57  ;;  %v2546_v38 = vpop.f32.mrb[65].mxu0 }
 0x449   :  { %v2555_v51 = vadd.f32 %v4175_v43, %v6150_v24  ;;  %v2547_v8 = vadd.f32 %v6150_v24, %v2546_v38  ;;  %v4176_v9 = vpop.f32.mrb[66].mxu0  ;;  %v3257_v56 = vsel %vm52_vm0, %v3169_v1, 0.0 }
 0x44a   :  { %v3534_v7 = vunpack.c.l.b16 %v3491_v19  ;;  %v3234_v17 = vadd.f32 %v3233_v63, %v3232_v35  ;;  %v3243_v54 = vadd.f32 %v3242_v44, %v3241_v27  ;;  %v3250_v31 = vadd.f32 %v3249_v36, %v3248_v29  ;;  %v2549_v22 = vpop.f32.mrb[67].mxu0  ;;  %v4462_v63 = vpop.eup %4461 }
 0x44b   :  { %v3172_v37 = vmul.f32 %v6116_v12, %v2555_v51  ;;  %v3170_v61 = vmul.f32 %v6095_v33, %v2547_v8  ;;  %v2558_v25 = vadd.f32 %v4176_v9, %v6150_v24  ;;  %v2550_v42 = vadd.f32 %v6150_v24, %v2549_v22  ;;  %v3406_v12 = vpop.permute.xlu0 %3405  ;;  %v4464_v36 = vpop.eup %4463 }
 0x44c   :  { %v3550_v20 = vsel %vm3549_vm10, %v3534_v7, %v3533_v11  ;;  %v3463_v4 = vmul.f32 %v4460_v53, %v3234_v17  ;;  %v3244_v58 = vrot.slane %v3243_v54, 1  ;;  %v3251_v10 = vrot.slane %v3250_v31, 4 }
 0x44d   :  { %v3258_v35 = vsel %vm52_vm0, %v3170_v61, 0.0  ;;  %v3173_v27 = vmul.f32 %v6107_v14, %v2558_v25  ;;  %v3171_v57 = vmul.f32 %v6118_v48, %v2550_v42  ;;  %v3268_v11 = vsel %vm52_vm0, %v3172_v37, 0.0 }
 0x44e   :  { %v3492_v28 = vpack.c.bf16 %v3463_v4, %v3463_v4  ;;  %v3245_v33 = vadd.f32 %v3244_v58, %v3243_v54  ;;  %v3252_v43 = vadd.f32 %v3251_v10, %v3250_v31  ;;  %v3259_v19 = vadd.f32 %v3258_v35, %v3257_v56 }
 0x44f   :  { %v3269_v44 = vsel %vm52_vm0, %v3173_v27, 0.0  ;;  %v3260_v29 = vsel %vm52_vm0, %v3171_v57, 0.0  ;;  %v4179_v38 = vpop.f32.mrb[68].mxu0  ;;  %4465 = vrcp.f32 %v3406_v12  ;;  %v3411_v10 = vpop.permute.xlu0 %3410 }
 0x450   :  { %v3535_v1 = vunpack.c.l.b16 %v3492_v28  ;;  %v3465_v51 = vmul.f32 %v4462_v63, %v3245_v33  ;;  %v3253_v14 = vrot.slane %v3252_v43, 2  ;;  %v3270_v8 = vadd.f32 %v3269_v44, %v3268_v11  ;;  %v2562_v48 = vpop.f32.mrb[69].mxu0 }
 0x451   :  { %v3261_v9 = vadd.f32 %v3260_v29, %v3259_v19  ;;  %v2571_v7 = vadd.f32 %v4179_v38, %v6150_v24  ;;  %v2563_v17 = vadd.f32 %v6150_v24, %v2562_v48  ;;  %v4180_v54 = vpop.f32.mrb[70].mxu0  ;;  %4467 = vrcp.f32 %v3411_v10 }
 0x452   :  { %v3552_v31 = vsel %vm3551_vm11, %v3535_v1, %v3550_v20  ;;  %v3493_v22 = vpack.c.bf16 %v3465_v51, %v3465_v51  ;;  %v3254_v53 = vadd.f32 %v3253_v14, %v3252_v43  ;;  %v2574_v37 = vadd.f32 %v4180_v54, %v6150_v24  ;;  %v2565_v61 = vpop.f32.mrb[71].mxu0 }
 0x453   :  { %v3262_v25 = vrot.slane %v3261_v9, 4  ;;  %v3176_v42 = vmul.f32 %v6122_v45, %v2571_v7  ;;  %v3174_v4 = vmul.f32 %v6132_v5, %v2563_v17  ;;  %v2566_v58 = vadd.f32 %v6150_v24, %v2565_v61 }
 0x454   :  { %v3536_v56 = vunpack.c.l.b16 %v3493_v22  ;;  %v3255_v35 = vrot.slane %v3254_v53, 1  ;;  %v3177_v20 = vmul.f32 %v6142_v55, %v2574_v37 }
 0x455   :  { %v3263_v27 = vadd.f32 %v3262_v25, %v3261_v9  ;;  %v3271_v57 = vsel %vm52_vm0, %v3174_v4, 0.0  ;;  %v3175_v28 = vmul.f32 %v6128_v49, %v2566_v58  ;;  %v3280_v5 = vsel %vm52_vm0, %v3176_v42, 0.0 }
 0x456   :  { %v3554_v33 = vsel %vm3553_vm12, %v3536_v56, %v3552_v31  ;;  %v3256_v43 = vadd.f32 %v3255_v35, %v3254_v53  ;;  %v3272_v19 = vadd.f32 %v3271_v57, %v3270_v8  ;;  %v3282_v55 = vsel %vm52_vm0, %v3177_v20, 0.0  ;;  %v3416_v8 = vpop.permute.xlu0 %3415 }
 0x457   :  { %v3264_v45 = vrot.slane %v3263_v27, 2  ;;  %v3279_v63 = vsel %vm52_vm0, %v3175_v28, 0.0  ;;  %v4183_v12 = vpop.f32.mrb[72].mxu0  ;;  %4469 = vrcp.f32 %v3416_v8 }
 0x458   :  { %v3467_v11 = vmul.f32 %v4464_v36, %v3256_v43  ;;  %v3273_v44 = vrot.slane %v3272_v19, 4  ;;  %v3281_v29 = vadd.f32 %v3280_v5, %v3279_v63  ;;  %v2578_v38 = vpop.f32.mrb[73].mxu0  ;;  %v2587_v49 = vadd.f32 %v4183_v12, %v6150_v24  ;;  %v3426_v5 = vpop.permute.xlu1 %3425 }
 0x459   :  { %v3265_v1 = vadd.f32 %v3264_v45, %v3263_v27  ;;  %v2579_v51 = vadd.f32 %v6150_v24, %v2578_v38  ;;  %v4184_v14 = vpop.f32.mrb[74].mxu0  ;;  %v4466_v58 = vpop.eup %4465  ;;  %4471 = vrcp.f32 %v6164_v34 }
 0x45a   :  { %v3494_v48 = vpack.c.bf16 %v3467_v11, %v3467_v11  ;;  %v3274_v9 = vadd.f32 %v3273_v44, %v3272_v19  ;;  %v3283_v7 = vadd.f32 %v3282_v55, %v3281_v29  ;;  %v2581_v17 = vpop.f32.mrb[75].mxu0  ;;  %v2590_v31 = vadd.f32 %v4184_v14, %v6150_v24 }
 0x45b   :  { %v3266_v54 = vrot.slane %v3265_v1, 1  ;;  %v3178_v36 = vmul.f32 %v6041_v50, %v2579_v51  ;;  %v2582_v22 = vadd.f32 %v6150_v24, %v2581_v17  ;;  %v3180_v42 = vmul.f32 %v6067_v2, %v2587_v49  ;;  %v4468_v11 = vpop.eup %4467 }
 0x45c   :  { %v3537_v53 = vunpack.c.l.b16 %v3494_v48  ;;  %v3275_v37 = vrot.slane %v3274_v9, 2  ;;  %v3284_v61 = vrot.slane %v3283_v7, 4  ;;  %v3181_v57 = vmul.f32 %v6047_v30, %v2590_v31 }
 0x45d   :  { %v3267_v25 = vadd.f32 %v3266_v54, %v3265_v1  ;;  %v3179_v4 = vmul.f32 %v6053_v13, %v2582_v22  ;;  %v3290_v27 = vsel %vm52_vm0, %v3178_v36, 0.0  ;;  %4473 = vrcp.f32 %v3426_v5 }
 0x45e   :  { %v3556_v10 = vsel %vm3555_vm13, %v3537_v53, %v3554_v33  ;;  %v3276_v56 = vadd.f32 %v3275_v37, %v3274_v9  ;;  %v3285_v50 = vadd.f32 %v3284_v61, %v3283_v7  ;;  %v3293_v33 = vsel %vm52_vm0, %v3180_v42, 0.0  ;;  %v3431_v61 = vpop.permute.xlu1 %3430 }
 0x45f   :  { %v3469_v35 = vmul.f32 %v4466_v58, %v3267_v25  ;;  %v3291_v20 = vsel %vm52_vm0, %v3179_v4, 0.0  ;;  %v4187_v28 = vpop.f32.mrb[76].mxu0  ;;  %v3301_v9 = vsel %vm52_vm0, %v3181_v57, 0.0  ;;  %4475 = vrcp.f32 %v3431_v61 }
 0x460   :  { %v3277_v43 = vrot.slane %v3276_v56, 1  ;;  %v3286_v19 = vrot.slane %v3285_v50, 2  ;;  %v3292_v2 = vadd.f32 %v3291_v20, %v3290_v27  ;;  %v2603_v13 = vadd.f32 %v4187_v28, %v6150_v24  ;;  %v2594_v45 = vpop.f32.mrb[77].mxu0 }
 0x461   :  { %v3495_v34 = vpack.c.bf16 %v3469_v35, %v3469_v35  ;;  %v2595_v63 = vadd.f32 %v6150_v24, %v2594_v45  ;;  %v4188_v12 = vpop.f32.mrb[78].mxu0  ;;  %v4470_v37 = vpop.eup %4469 }
 0x462   :  { %v3278_v44 = vadd.f32 %v3277_v43, %v3276_v56  ;;  %v3287_v30 = vadd.f32 %v3286_v19, %v3285_v50  ;;  %v3294_v29 = vadd.f32 %v3293_v33, %v3292_v2  ;;  %v3184_v38 = vmul.f32 %v6055_v47, %v2603_v13  ;;  %v2597_v1 = vpop.f32.mrb[79].mxu0 }
 0x463   :  { %v3538_v55 = vunpack.c.l.b16 %v3495_v34  ;;  %v3182_v49 = vmul.f32 %v6057_v3, %v2595_v63  ;;  %v2606_v51 = vadd.f32 %v4188_v12, %v6150_v24  ;;  %v2598_v14 = vadd.f32 %v6150_v24, %v2597_v1 }
 0x464   :  { %v3471_v8 = vmul.f32 %v4468_v11, %v3278_v44  ;;  %v3288_v48 = vrot.slane %v3287_v30, 1  ;;  %v3295_v7 = vrot.slane %v3294_v29, 4  ;;  %v3312_v25 = vsel %vm52_vm0, %v3184_v38, 0.0 }
 0x465   :  { %v3558_v17 = vsel %vm3557_vm14, %v3538_v55, %v3556_v10  ;;  %v3302_v54 = vsel %vm52_vm0, %v3182_v49, 0.0  ;;  %v3185_v36 = vmul.f32 %v6065_v52, %v2606_v51  ;;  %v3183_v47 = vmul.f32 %v6080_v23, %v2598_v14  ;;  %v4472_v10 = vpop.eup %4471 }
 0x466   :  { %v3496_v31 = vpack.c.bf16 %v3471_v8, %v3471_v8  ;;  %v3289_v22 = vadd.f32 %v3288_v48, %v3287_v30  ;;  %v3296_v3 = vadd.f32 %v3295_v7, %v3294_v29  ;;  %v3303_v53 = vadd.f32 %v3302_v54, %v3301_v9  ;;  %v3436_v29 = vpop.permute.xlu1 %3435 }
 0x467   :  { %v3313_v42 = vsel %vm52_vm0, %v3185_v36, 0.0  ;;  %v3304_v4 = vsel %vm52_vm0, %v3183_v47, 0.0  ;;  %v4191_v58 = vpop.f32.mrb[80].mxu0  ;;  %4477 = vrcp.f32 %v3436_v29 }
 0x468   :  { %v3539_v56 = vunpack.c.l.b16 %v3496_v31  ;;  %v3473_v50 = vmul.f32 %v4470_v37, %v3289_v22  ;;  %v3297_v52 = vrot.slane %v3296_v3, 2  ;;  %v3314_v35 = vadd.f32 %v3313_v42, %v3312_v25  ;;  %v2610_v23 = vpop.f32.mrb[81].mxu0 }
 0x469   :  { %v3305_v27 = vadd.f32 %v3304_v4, %v3303_v53  ;;  %v2619_v57 = vadd.f32 %v4191_v58, %v6150_v24  ;;  %v2611_v20 = vadd.f32 %v6150_v24, %v2610_v23  ;;  %v4192_v28 = vpop.f32.mrb[82].mxu0 }
 0x46a   :  { %v3560_v43 = vsel %vm3559_vm15, %v3539_v56, %v3558_v17  ;;  %v3497_v19 = vpack.c.bf16 %v3473_v50, %v3473_v50  ;;  %v3298_v2 = vadd.f32 %v3297_v52, %v3296_v3  ;;  %v2622_v13 = vadd.f32 %v4192_v28, %v6150_v24  ;;  %v2613_v45 = vpop.f32.mrb[83].mxu0  ;;  %v3441_v53 = vpop.permute.xlu1 %3440 }
 0x46b   :  { %v3306_v34 = vrot.slane %v3305_v27, 4  ;;  %v3188_v33 = vmul.f32 %v6085_v46, %v2619_v57  ;;  %v3186_v63 = vmul.f32 %v6093_v32, %v2611_v20  ;;  %v2614_v12 = vadd.f32 %v6150_v24, %v2613_v45 }
 0x46c   :  { %v3540_v11 = vunpack.c.l.b16 %v3497_v19  ;;  %v3299_v44 = vrot.slane %v3298_v2, 1  ;;  %v3189_v30 = vmul.f32 %v6105_v59, %v2622_v13  ;;  %4479 = vrcp.f32 %v3441_v53 }
 0x46d   :  { %v3307_v38 = vadd.f32 %v3306_v34, %v3305_v27  ;;  %v3315_v1 = vsel %vm52_vm0, %v3186_v63, 0.0  ;;  %v3187_v55 = vmul.f32 %v6071_v6, %v2614_v12  ;;  %v3324_v32 = vsel %vm52_vm0, %v3188_v33, 0.0 }
 0x46e   :  { %v3300_v49 = vadd.f32 %v3299_v44, %v3298_v2  ;;  %v3316_v51 = vadd.f32 %v3315_v1, %v3314_v35  ;;  %v6271_v14 = vsel %vm3561_vm1, %v3540_v11, %v3560_v43  ;;  %v3326_v59 = vsel %vm52_vm0, %v3189_v30, 0.0  ;;  %v4474_v35 = vpop.eup %4473 }
 0x46f   :  { %v3308_v46 = vrot.slane %v3307_v38, 2  ;;  %v3323_v5 = vsel %vm52_vm0, %v3187_v55, 0.0  ;;  %v4195_v8 = vpop.f32.mrb[84].mxu0  ;;  %v4476_v11 = vpop.eup %4475 }
 0x470   :  { %v3317_v48 = vrot.slane %v3316_v51, 4  ;;  %v3325_v9 = vadd.f32 %v3324_v32, %v3323_v5  ;;  %v2626_v7 = vpop.f32.mrb[85].mxu0  ;;  %v3475_v17 = vmul.f32 %v4472_v10, %v3300_v49  ;;  %v2635_v6 = vadd.f32 %v4195_v8, %v6150_v24 }
 0x471   :  { %v3309_v54 = vadd.f32 %v3308_v46, %v3307_v38  ;;  %v2627_v36 = vadd.f32 %v6150_v24, %v2626_v7  ;;  %v4196_v47 = vpop.f32.mrb[86].mxu0  ;;  %v4478_v7 = vpop.eup %4477 }
 0x472   :  { %v3318_v31 = vadd.f32 %v3317_v48, %v3316_v51  ;;  %v3327_v22 = vadd.f32 %v3326_v59, %v3325_v9  ;;  %v2629_v3 = vpop.f32.mrb[87].mxu0  ;;  %v2638_v61 = vadd.f32 %v4196_v47, %v6150_v24  ;;  %v3498_v10 = vpack.c.bf16 %v3475_v17, %v3475_v17  ;;  %v3446_v17 = vpop.permute.xlu1 %3445 }
 0x473   :  { %v3310_v37 = vrot.slane %v3309_v54, 1  ;;  %v3190_v25 = vmul.f32 %v6087_v60, %v2627_v36  ;;  %v2630_v42 = vadd.f32 %v6150_v24, %v2629_v3  ;;  %v3192_v50 = vmul.f32 %v6120_v16, %v2635_v6 }
 0x474   :  { %v3319_v4 = vrot.slane %v3318_v31, 2  ;;  %v3328_v58 = vrot.slane %v3327_v22, 4  ;;  %v3193_v20 = vmul.f32 %v6099_v21, %v2638_v61  ;;  %v3541_v34 = vunpack.c.l.b16 %v3498_v10 }
 0x475   :  { %v3311_v56 = vadd.f32 %v3310_v37, %v3309_v54  ;;  %v3191_v52 = vmul.f32 %v6097_v62, %v2630_v42  ;;  %v3334_v60 = vsel %vm52_vm0, %v3190_v25, 0.0  ;;  %v3337_v33 = vsel %vm52_vm0, %v3192_v50, 0.0 }
 0x476   :  { %v3320_v23 = vadd.f32 %v3319_v4, %v3318_v31  ;;  %v3329_v27 = vadd.f32 %v3328_v58, %v3327_v22  ;;  %v3345_v5 = vsel %vm52_vm0, %v3193_v20, 0.0  ;;  %v4480_v53 = vpop.eup %4479  ;;  %4481 = vrcp.f32 %v3446_v17 }
 0x477   :  { %v3477_v57 = vmul.f32 %v4474_v35, %v3311_v56  ;;  %v3335_v28 = vsel %vm52_vm0, %v3191_v52, 0.0  ;;  %v4199_v43 = vpop.f32.mrb[88].mxu0 }
 0x478   :  { %v3321_v19 = vrot.slane %v3320_v23, 1  ;;  %v3330_v2 = vrot.slane %v3329_v27, 2  ;;  %v3336_v13 = vadd.f32 %v3335_v28, %v3334_v60  ;;  %v2651_v45 = vadd.f32 %v4199_v43, %v6150_v24  ;;  %v2642_v16 = vpop.f32.mrb[89].mxu0  ;;  %v3451_v28 = vpop.permute.xlu1 %3450 }
 0x479   :  { %v3499_v62 = vpack.c.bf16 %v3477_v57, %v3477_v57  ;;  %v2643_v63 = vadd.f32 %v6150_v24, %v2642_v16  ;;  %v4200_v12 = vpop.f32.mrb[90].mxu0  ;;  %v6356_v16 = vld [vmem:[#allocation3_spill] sm:$0xff]  ;;  %4483 = vrcp.f32 %v3451_v28 }
 0x47a   :  { %v3322_v44 = vadd.f32 %v3321_v19, %v3320_v23  ;;  %v3331_v30 = vadd.f32 %v3330_v2, %v3329_v27  ;;  %v3338_v21 = vadd.f32 %v3337_v33, %v3336_v13  ;;  %v3196_v29 = vmul.f32 %v6114_v15, %v2651_v45  ;;  %v2645_v38 = vpop.f32.mrb[91].mxu0 }
 0x47b   :  { %v3542_v1 = vunpack.c.l.b16 %v3499_v62  ;;  %v3194_v55 = vmul.f32 %v6109_v41, %v2643_v63  ;;  %v2654_v49 = vadd.f32 %v4200_v12, %v6150_v24  ;;  %v2646_v51 = vadd.f32 %v6150_v24, %v2645_v38 }
 0x47c   :  { %v3479_v46 = vmul.f32 %v4476_v11, %v3322_v44  ;;  %v3332_v32 = vrot.slane %v3331_v30, 1  ;;  %v3339_v8 = vrot.slane %v3338_v21, 4  ;;  %v3356_v47 = vsel %vm52_vm0, %v3196_v29, 0.0  ;;  %v3456_v29 = vpop.permute.xlu1 %3455 }
 0x47d   :  { %v3563_v48 = vsel %vm3549_vm10, %v3542_v1, %v3541_v34  ;;  %v3346_v59 = vsel %vm52_vm0, %v3194_v55, 0.0  ;;  %v3197_v9 = vmul.f32 %v6124_v40, %v2654_v49  ;;  %v3195_v15 = vmul.f32 %v6134_v18, %v2646_v51 }
 0x47e   :  { %v3500_v41 = vpack.c.bf16 %v3479_v46, %v3479_v46  ;;  %v3333_v54 = vadd.f32 %v3332_v32, %v3331_v30  ;;  %v3340_v6 = vadd.f32 %v3339_v8, %v3338_v21  ;;  %v3347_v36 = vadd.f32 %v3346_v59, %v3345_v5 }
 0x47f   :  { %v3357_v31 = vsel %vm52_vm0, %v3197_v9, 0.0  ;;  %v3348_v22 = vsel %vm52_vm0, %v3195_v15, 0.0  ;;  %v4203_v3 = vpop.f32.mrb[92].mxu0  ;;  %4485 = vrcp.f32 %v3456_v29 }
 0x480   :  { %v3543_v37 = vunpack.c.l.b16 %v3500_v41  ;;  %v3481_v25 = vmul.f32 %v4478_v7, %v3333_v54  ;;  %v3341_v61 = vrot.slane %v3340_v6, 2  ;;  %v3358_v40 = vadd.f32 %v3357_v31, %v3356_v47  ;;  %v2658_v42 = vpop.f32.mrb[93].mxu0  ;;  %v4482_v5 = vpop.eup %4481 }
 0x481   :  { %v3349_v18 = vadd.f32 %v3348_v22, %v3347_v36  ;;  %v2667_v4 = vadd.f32 %v4203_v3, %v6150_v24  ;;  %v2659_v58 = vadd.f32 %v6150_v24, %v2658_v42  ;;  %v4204_v10 = vpop.f32.mrb[94].mxu0 }
 0x482   :  { %v3564_v56 = vsel %vm3551_vm11, %v3543_v37, %v3563_v48  ;;  %v3501_v50 = vpack.c.bf16 %v3481_v25, %v3481_v25  ;;  %v3342_v52 = vadd.f32 %v3341_v61, %v3340_v6  ;;  %v2670_v35 = vadd.f32 %v4204_v10, %v6150_v24  ;;  %v2661_v23 = vpop.f32.mrb[95].mxu0  ;;  %v3882_v10 = vld [vmem:[%s6346_s11] ss:$0 sm:$0xff] }
 0x483   :  { %v3350_v27 = vrot.slane %v3349_v18, 4  ;;  %v3200_v57 = vmul.f32 %v6145_v0, %v2667_v4  ;;  %v3198_v60 = vmul.f32 %v6156_v26, %v2659_v58  ;;  %v2662_v20 = vadd.f32 %v6150_v24, %v2661_v23  ;;  %v4484_v6 = vpop.eup %4483 }
 0x484   :  { %v3544_v43 = vunpack.c.l.b16 %v3501_v50  ;;  %v3343_v19 = vrot.slane %v3342_v52, 1  ;;  %v3201_v45 = vmul.f32 %v6169_v39, %v2670_v35 }
 0x485   :  { %v3351_v2 = vadd.f32 %v3350_v27, %v3349_v18  ;;  %v3359_v13 = vsel %vm52_vm0, %v3198_v60, 0.0  ;;  %v3199_v34 = vmul.f32 %v6356_v16, %v2662_v20  ;;  %v3368_v26 = vsel %vm52_vm0, %v3200_v57, 0.0 }
 0x486   :  { %v3565_v62 = vsel %vm3553_vm12, %v3544_v43, %v3564_v56  ;;  %v3344_v33 = vadd.f32 %v3343_v19, %v3342_v52  ;;  %v3360_v63 = vadd.f32 %v3359_v13, %v3358_v40  ;;  %v3370_v21 = vsel %vm52_vm0, %v3201_v45, 0.0 }
 0x487   :  { %v3352_v0 = vrot.slane %v3351_v2, 2  ;;  %v3367_v24 = vsel %vm52_vm0, %v3199_v34, 0.0 }
 0x488   :  { %v3483_v12 = vmul.f32 %v4480_v53, %v3344_v33  ;;  %v3361_v11 = vrot.slane %v3360_v63, 4  ;;  %v3369_v44 = vadd.f32 %v3368_v26, %v3367_v24 }
 0x489   :  { %v3353_v30 = vadd.f32 %v3352_v0, %v3351_v2  ;;  %v4486_v37 = vpop.eup %4485 }
 0x48a   :  { %v3502_v39 = vpack.c.bf16 %v3483_v12, %v3483_v12  ;;  %v3362_v38 = vadd.f32 %v3361_v11, %v3360_v63  ;;  %v3371_v1 = vadd.f32 %v3370_v21, %v3369_v44 }
 0x48b   :  { %v3354_v55 = vrot.slane %v3353_v30, 1 }
 0x48c   :  { %v3545_v49 = vunpack.c.l.b16 %v3502_v39  ;;  %v3363_v51 = vrot.slane %v3362_v38, 2  ;;  %v3372_v46 = vrot.slane %v3371_v1, 4 }
 0x48d   :  { %v3355_v32 = vadd.f32 %v3354_v55, %v3353_v30 }
 0x48e   :  { %v3566_v8 = vsel %vm3555_vm13, %v3545_v49, %v3565_v62  ;;  %v3364_v48 = vadd.f32 %v3363_v51, %v3362_v38  ;;  %v3373_v59 = vadd.f32 %v3372_v46, %v3371_v1 }
 0x48f   :  { %v3485_v9 = vmul.f32 %v4482_v5, %v3355_v32 }
 0x490   :  { %v3365_v15 = vrot.slane %v3364_v48, 1  ;;  %v3374_v7 = vrot.slane %v3373_v59, 2 }
 0x491   :  { %v3503_v17 = vpack.c.bf16 %v3485_v9, %v3485_v9 }
 0x492   :  { %v3366_v41 = vadd.f32 %v3365_v15, %v3364_v48  ;;  %v3375_v54 = vadd.f32 %v3374_v7, %v3373_v59 }
 0x493   :  { %v3546_v36 = vunpack.c.l.b16 %v3503_v17 }
 0x494   :  { %v3487_v47 = vmul.f32 %v4484_v6, %v3366_v41  ;;  %v3376_v31 = vrot.slane %v3375_v54, 1 }
 0x495   :  { %v3567_v22 = vsel %vm3557_vm14, %v3546_v36, %v3566_v8 }
 0x496   :  { %v3504_v3 = vpack.c.bf16 %v3487_v47, %v3487_v47  ;;  %v3377_v53 = vadd.f32 %v3376_v31, %v3375_v54 }
 0x498   :  { %v3547_v25 = vunpack.c.l.b16 %v3504_v3  ;;  %v3489_v61 = vmul.f32 %v4486_v37, %v3377_v53 }
 0x49a   :  { %v3568_v40 = vsel %vm3559_vm15, %v3547_v25, %v3567_v22  ;;  %v3505_v42 = vpack.c.bf16 %v3489_v61, %v3489_v61 }
 0x49c   :  { %v3548_v18 = vunpack.c.l.b16 %v3505_v42 }
 0x49e   :  { %v3569_v4 = vsel %vm3561_vm1, %v3548_v18, %v3568_v40 }
 0x49f   :  { %v3570_v58 = vpack.c.b16 %v3569_v4, %v6271_v14  ;;  %v3886_v14 = vld [vmem:[%s6347_s13] ss:$0 sm:$0xff] }
 0x4a1   :  { %4210 = vmatmul.mubr.msk.bf16.vlgmr.msra.gmra.mrb[96].mxu1 %vm52_vm0, %v3570_v58 }
 0x574   :  { %v3620_v56 = vpop.f32.mrb[96].mxu1 }
 0x575   :  { %v3621_v50 = vadd.f32 %v3882_v10, %v3620_v56  ;;  %v4211_v52 = vpop.f32.mrb[97].mxu1 }
 0x576   :  { %v3623_v35 = vpop.f32.mrb[98].mxu1 }
 0x577   :  { %v3624_v23 = vadd.f32 %v3882_v10, %v3623_v35  ;;  %v4212_v27 = vpop.f32.mrb[99].mxu1  ;;  %v3627_v57 = vmax.f32 %v3621_v50, 0.0 }
 0x579   :  { %v3628_v60 = vmax.f32 %v3624_v23, 0.0 }
 0x57b   :  { %v3629_v20 = vpack.c.bf16 %v3628_v60, %v3627_v57 }
 0x57d   :  { %4218 = vmatmul.mubr.msk.bf16.vlgmr.msra.gmra.mrb[96].mxu0 %vm52_vm0, %v3629_v20 }
 0x650   :  { %v3690_v28 = vpop.f32.mrb[96].mxu0 }
 0x651   :  { %v3691_v43 = vadd.f32 %v3886_v14, %v3690_v28  ;;  %v4219_v19 = vpop.f32.mrb[97].mxu0 }
 0x652   :  { %v3693_v2 = vpop.f32.mrb[98].mxu0 }
 0x653   :  { %3698 = vst.msk [vmem:[%s6348_s14] sm:$0xff] %vm3697_vm2, %v3691_v43  ;;  %v3694_v13 = vadd.f32 %v3886_v14, %v3693_v2  ;;  %v4220_v45 = vpop.f32.mrb[99].mxu0 }
 0x655   :  { %3699 = vst.msk [vmem:[%s6348_s14 + $0x8] sm:$0xff] %vm3697_vm2, %v3694_v13 }

</bundles_post_ra>
